<compile_context>
chip_gen: v7x
topology: tpu7x:2x2x1
jax: 0.10.0
libtpu: 0.0.40
codegen_flags: <defaults>
</compile_context>

<pallas_src>
import jax
import jax.numpy as jnp
from jax import lax
from jax.experimental import pallas as pl
from jax.experimental.pallas import tpu as pltpu

# Shapes implied by the module (fc1 expects 2828 = 28 * 101 features).
W_IN, C_IN = 214, 7          # input width / channels  (NCHW: (N, 7, 1, 214))
C1, KW = 14, 5               # conv1 out channels / kernel width (conv1 width 210)
W_POOL = 105                 # after MaxPool2d((1, 2), stride=2): 210 -> 105
W_POOL_PAD = 112             # per-sample row stride inside the conv kernel (8-aligned)
W2, C2 = 101, 28             # conv2: 105 - 4 = 101, 28 channels
FLAT = W2 * C2               # 2828
HID, HID_PAD = 120, 128

BT_CONV_MAX = 8              # samples per conv grid step
BT_FC_MAX = 256              # samples per fc grid step (keep <=512 or raise vmem limit)


def make_conv_kernel(bt):
    """conv1 -> maxpool(1,2)/2 -> relu -> conv2 -> relu for `bt` samples."""
    rows = bt * W_POOL_PAD

    def conv_kernel(xc_ref, w1_ref, b1_ref, w2c_ref, b2_ref, out_ref):
        w1 = w1_ref[...]                                   # (35, 14)
        b1 = b1_ref[...]                                   # (1, 14)
        w2c = w2c_ref[...]                                 # (28, 70)
        b2b = jnp.broadcast_to(b2_ref[...], (C2, W2))      # hoisted bias broadcast

        # conv1 for the whole sample block: one MXU push per pooling parity.
        ye = jnp.dot(xc_ref[0], w1, preferred_element_type=jnp.float32)  # (rows, 14)
        yo = jnp.dot(xc_ref[1], w1, preferred_element_type=jnp.float32)
        # MaxPool2d((1,2),2) == max(even, odd); bias commutes with max.
        p = jnp.maximum(jnp.maximum(ye, yo) + b1, 0.0)                   # (rows, 14)

        # conv2: fuse the 5 taps into a single K=70 contraction.  Build the
        # shifted lane-concat once for the whole slab (sublane shifts go to the
        # XLU, not the MXU slot), then one dot_general per sample with a
        # transposed (28, 101) output (channels in sublanes -> free flatten).
        pcat = jnp.concatenate(
            [p[k:k + rows - (KW - 1)] for k in range(KW)], axis=-1)      # (rows-4, 70)
        dn = (((1,), (1,)), ((), ()))                  # contract both lane dims (rhs.T)
        for s in range(bt):
            r0 = s * W_POOL_PAD
            acc = lax.dot_general(w2c, pcat[r0:r0 + W2], dn,
                                  preferred_element_type=jnp.float32)    # (28, 101)
            out_ref[s] = jnp.maximum(acc + b2b, 0.0)

    return conv_kernel


def fc_kernel(f_ref, wf1_ref, bf1_ref, wf2_ref, bf2_ref, o_ref):
    """fc1 (padded to 128 lanes) -> relu -> fc2 as multiply + lane reduce."""
    # One resident (bt_fc, 2828) @ (2828, 128) matmul; Mosaic tiles K internally.
    h = jnp.dot(f_ref[...], wf1_ref[...], preferred_element_type=jnp.float32)
    h = jnp.maximum(h + bf1_ref[...], 0.0)             # (bt_fc, 128)
    # fc2: VPU multiply + cross-lane (XLU) reduce instead of a 1-lane matmul.
    o_ref[...] = jnp.sum(h * wf2_ref[...], axis=-1, keepdims=True) + bf2_ref[...]


def _round_up(x, m):
    return -(-x // m) * m


def _block_plan(n):
    """Pick (n_pad, bt_conv, bt_fc): decoupled conv/fc tiles, >=2 grid steps
    when possible so the 'parallel' axis can split across v7x's two TCs."""
    bt_fc = min(BT_FC_MAX, _round_up(max(-(-n // 2), 1), 8))
    n_pad = _round_up(max(n, 1), bt_fc)
    bt_conv = BT_CONV_MAX if n_pad >= 2 * BT_CONV_MAX else max(1, n_pad // 2)
    return n_pad, bt_conv, bt_fc


def _im2col_conv1(x2d, n_pad):
    """(n_pad, 7, 214) -> (2, n_pad*112, 35): even/odd pooling-parity windows."""
    taps_e = [x2d[:, :, k:k + 2 * W_POOL - 1:2] for k in range(KW)]   # each (n, 7, 105)
    taps_o = [x2d[:, :, k + 1:k + 2 * W_POOL:2] for k in range(KW)]

    def pack(taps):
        t = jnp.stack(taps, axis=1)                    # (n, 5, 7, 105)
        t = t.reshape(n_pad, KW * C_IN, W_POOL)        # feature index k*7 + c
        t = jnp.transpose(t, (0, 2, 1))                # (n, 105, 35)
        return jnp.pad(t, ((0, 0), (0, W_POOL_PAD - W_POOL), (0, 0)))

    xc = jnp.stack([pack(taps_e), pack(taps_o)], axis=0)              # (2, n, 112, 35)
    return xc.reshape(2, n_pad * W_POOL_PAD, KW * C_IN)


def net_forward(x_nchw, params):
    conv1_w, conv1_b, conv2_w, conv2_b, fc1_w, fc1_b, fc2_w, fc2_b = params
    n = x_nchw.shape[0]
    n_pad, bt_conv, bt_fc = _block_plan(n)
    nb_conv = n_pad // bt_conv
    nb_fc = n_pad // bt_fc

    x2d = x_nchw[:, :, 0, :].astype(jnp.float32)       # (n, 7, 214)
    if n_pad != n:
        x2d = jnp.pad(x2d, ((0, n_pad - n), (0, 0), (0, 0)))
    xc = _im2col_conv1(x2d, n_pad)                     # (2, n_pad*112, 35)

    # conv weights:
    #   w1col[k*7+c, o] = conv1_w[o, c, 0, k]
    #   w2cat[o, k*14+c] = conv2_w[o, c, 0, k]   (matches pcat's K layout)
    w1col = jnp.transpose(conv1_w[:, :, 0, :], (2, 1, 0)).reshape(KW * C_IN, C1)
    b1row = conv1_b.reshape(1, C1)
    w2cat = jnp.transpose(conv2_w[:, :, 0, :], (0, 2, 1)).reshape(C2, KW * C1)
    b2col = conv2_b.reshape(C2, 1)

    y = pl.pallas_call(
        make_conv_kernel(bt_conv),
        out_shape=jax.ShapeDtypeStruct((n_pad, C2, W2), jnp.float32),
        grid=(nb_conv,),
        in_specs=[
            pl.BlockSpec((2, bt_conv * W_POOL_PAD, KW * C_IN), lambda i: (0, i, 0)),
            pl.BlockSpec((KW * C_IN, C1), lambda i: (0, 0)),
            pl.BlockSpec((1, C1), lambda i: (0, 0)),
            pl.BlockSpec((C2, KW * C1), lambda i: (0, 0)),
            pl.BlockSpec((C2, 1), lambda i: (0, 0)),
        ],
        out_specs=pl.BlockSpec((bt_conv, C2, W2), lambda i: (i, 0, 0)),
        compiler_params=pltpu.CompilerParams(dimension_semantics=("parallel",)),
    )(xc, w1col, b1row, w2cat, b2col)

    # PyTorch x.view(N, -1) on (N, 28, 1, 101) is channel-major; the conv kernel
    # already emitted (N, 28, 101), so this is a free reshape.  (The F.relu on
    # the flattened features is a no-op: conv2's output is already ReLU'ed.)
    flat = y.reshape(n_pad, FLAT)

    wf1p = jnp.pad(fc1_w.T, ((0, 0), (0, HID_PAD - HID)))             # (2828, 128)
    bf1p = jnp.pad(fc1_b, (0, HID_PAD - HID)).reshape(1, HID_PAD)
    wf2p = jnp.pad(fc2_w.reshape(-1), (0, HID_PAD - HID)).reshape(1, HID_PAD)
    bf2 = fc2_b.reshape(1, 1)

    out = pl.pallas_call(
        fc_kernel,
        out_shape=jax.ShapeDtypeStruct((n_pad, 1), jnp.float32),
        grid=(nb_fc,),
        in_specs=[
            pl.BlockSpec((bt_fc, FLAT), lambda i: (i, 0)),
            pl.BlockSpec((FLAT, HID_PAD), lambda i: (0, 0)),
            pl.BlockSpec((1, HID_PAD), lambda i: (0, 0)),
            pl.BlockSpec((1, HID_PAD), lambda i: (0, 0)),
            pl.BlockSpec((1, 1), lambda i: (0, 0)),
        ],
        out_specs=pl.BlockSpec((bt_fc, 1), lambda i: (i, 0)),
        compiler_params=pltpu.CompilerParams(dimension_semantics=("parallel",)),
    )(flat, wf1p, bf1p, wf2p, bf2)

    return out[:n].reshape(-1)                         # x.view(-1)


def net_reference(x, params):
    """Pure-JAX reference of the PyTorch forward pass (for correctness check)."""
    conv1_w, conv1_b, conv2_w, conv2_b, fc1_w, fc1_b, fc2_w, fc2_b = params
    n = x.shape[0]
    x2d = x[:, :, 0, :].astype(jnp.float32)

    def conv1d(xs, w, b):                              # xs (n,cin,L), w (cout,cin,k)
        k = w.shape[-1]
        L = xs.shape[-1] - k + 1
        out = sum(jnp.einsum('ncl,oc->nol', xs[:, :, i:i + L], w[:, :, i])
                  for i in range(k))
        return out + b[None, :, None]

    y1 = conv1d(x2d, conv1_w[:, :, 0, :], conv1_b)                    # (n, 14, 210)
    p1 = jnp.maximum(jnp.maximum(y1[:, :, 0::2], y1[:, :, 1::2]), 0.0)
    y2 = jnp.maximum(conv1d(p1, conv2_w[:, :, 0, :], conv2_b), 0.0)   # (n, 28, 101)
    v = jnp.maximum(y2.reshape(n, -1), 0.0)
    h = jnp.maximum(v @ fc1_w.T + fc1_b, 0.0)
    return (h @ fc2_w.T + fc2_b).reshape(-1)


if __name__ == "__main__":
    key = jax.random.PRNGKey(0)
    keys = jax.random.split(key, 9)

    # Input consistent with fc1's 2828 features: (N, 7, 1, 214)
    x = jax.random.normal(keys[0], (2, C_IN, 1, W_IN), jnp.float32)

    def init(k, shape, fan_in):
        bound = 1.0 / float(fan_in) ** 0.5
        return jax.random.uniform(k, shape, jnp.float32, -bound, bound)

    conv1_w = init(keys[1], (C1, C_IN, 1, KW), C_IN * KW)
    conv1_b = init(keys[2], (C1,), C_IN * KW)
    conv2_w = init(keys[3], (C2, C1, 1, KW), C1 * KW)
    conv2_b = init(keys[4], (C2,), C1 * KW)
    fc1_w = init(keys[5], (HID, FLAT), FLAT)
    fc1_b = init(keys[6], (HID,), FLAT)
    fc2_w = init(keys[7], (1, HID), HID)
    fc2_b = init(keys[8], (1,), HID)

    params = (conv1_w, conv1_b, conv2_w, conv2_b,
              fc1_w, fc1_b, fc2_w, fc2_b)

    y = jax.jit(net_forward)(x, params)
    jax.block_until_ready(y)
    assert y.shape == (2,) and y.dtype == jnp.float32

    y_ref = net_reference(x, params)
    assert jnp.allclose(y, y_ref, rtol=1e-3, atol=1e-3), (y, y_ref)

    print("KERNEL_OK")
</pallas_src>

<mosaic_0001>
module attributes {stable_mosaic.version = 11 : i64} {
  func.func @conv_kernel(%arg0: i32, %arg1: memref<2x448x35xf32, #tpu.memory_space<vmem>>, %arg2: memref<35x14xf32, #tpu.memory_space<vmem>>, %arg3: memref<1x14xf32, #tpu.memory_space<vmem>>, %arg4: memref<28x70xf32, #tpu.memory_space<vmem>>, %arg5: memref<28x1xf32, #tpu.memory_space<vmem>>, %arg6: memref<4x28x101xf32, #tpu.memory_space<vmem>>) attributes {dimension_semantics = [#tpu.dimension_semantics<parallel>], iteration_bounds = array<i64: 2>, scalar_prefetch = 0 : i64, scratch_operands = 0 : i64, tpu.core_type = #tpu.core_type<tc>, window_params = [{transform_indices = @transform_0, window_bounds = array<i64: 2, 448, 35>}, {pipeline_mode = #tpu.pipeline_mode<synchronous>, transform_indices = @transform_1, window_bounds = array<i64: 35, 14>}, {pipeline_mode = #tpu.pipeline_mode<synchronous>, transform_indices = @transform_2, window_bounds = array<i64: 1, 14>}, {pipeline_mode = #tpu.pipeline_mode<synchronous>, transform_indices = @transform_3, window_bounds = array<i64: 28, 70>}, {pipeline_mode = #tpu.pipeline_mode<synchronous>, transform_indices = @transform_4, window_bounds = array<i64: 28, 1>}, {transform_indices = @transform_5, window_bounds = array<i64: 4, 28, 101>}]} {
    %c0 = arith.constant 0 : index
    %c0_0 = arith.constant 0 : index
    %0 = vector.load %arg2[%c0, %c0_0] : memref<35x14xf32, #tpu.memory_space<vmem>>, vector<35x14xf32>
    %c0_1 = arith.constant 0 : index
    %c0_2 = arith.constant 0 : index
    %1 = vector.load %arg3[%c0_1, %c0_2] : memref<1x14xf32, #tpu.memory_space<vmem>>, vector<1x14xf32>
    %c0_3 = arith.constant 0 : index
    %c0_4 = arith.constant 0 : index
    %2 = vector.load %arg4[%c0_3, %c0_4] : memref<28x70xf32, #tpu.memory_space<vmem>>, vector<28x70xf32>
    %c0_5 = arith.constant 0 : index
    %c0_6 = arith.constant 0 : index
    %3 = vector.load %arg5[%c0_5, %c0_6] : memref<28x1xf32, #tpu.memory_space<vmem>>, vector<28x1xf32>
    %4 = vector.shape_cast %3 : vector<28x1xf32> to vector<28x1xf32>
    %5 = vector.broadcast %4 : vector<28x1xf32> to vector<28x101xf32>
    %c0_7 = arith.constant 0 : index
    %c0_8 = arith.constant 0 : index
    %c0_9 = arith.constant 0 : index
    %6 = vector.load %arg1[%c0_7, %c0_8, %c0_9] : memref<2x448x35xf32, #tpu.memory_space<vmem>>, vector<1x448x35xf32>
    %7 = vector.shape_cast %6 : vector<1x448x35xf32> to vector<448x35xf32>
    %cst = arith.constant dense<0.000000e+00> : vector<448x14xf32>
    %8 = tpu.matmul %7, %0, %cst {dimension_numbers = #tpu.dot_dimension_numbers<[1], [0], [0], [1], [0, 0, 1, 1], [], []>} : vector<448x35xf32>, vector<35x14xf32>, vector<448x14xf32> -> vector<448x14xf32>
    %c1 = arith.constant 1 : index
    %c0_10 = arith.constant 0 : index
    %c0_11 = arith.constant 0 : index
    %9 = vector.load %arg1[%c1, %c0_10, %c0_11] : memref<2x448x35xf32, #tpu.memory_space<vmem>>, vector<1x448x35xf32>
    %10 = vector.shape_cast %9 : vector<1x448x35xf32> to vector<448x35xf32>
    %cst_12 = arith.constant dense<0.000000e+00> : vector<448x14xf32>
    %11 = tpu.matmul %10, %0, %cst_12 {dimension_numbers = #tpu.dot_dimension_numbers<[1], [0], [0], [1], [0, 0, 1, 1], [], []>} : vector<448x35xf32>, vector<35x14xf32>, vector<448x14xf32> -> vector<448x14xf32>
    %12 = arith.maximumf %8, %11 : vector<448x14xf32>
    %13 = vector.broadcast %1 : vector<1x14xf32> to vector<448x14xf32>
    %14 = arith.addf %12, %13 : vector<448x14xf32>
    %cst_13 = arith.constant 0.000000e+00 : f32
    %15 = vector.broadcast %cst_13 : f32 to vector<448x14xf32>
    %16 = arith.maximumf %14, %15 : vector<448x14xf32>
    %17 = vector.extract_strided_slice %16 {offsets = [0, 0], sizes = [444, 14], strides = [1, 1]} : vector<448x14xf32> to vector<444x14xf32>
    %18 = vector.extract_strided_slice %16 {offsets = [1, 0], sizes = [444, 14], strides = [1, 1]} : vector<448x14xf32> to vector<444x14xf32>
    %19 = vector.extract_strided_slice %16 {offsets = [2, 0], sizes = [444, 14], strides = [1, 1]} : vector<448x14xf32> to vector<444x14xf32>
    %20 = vector.extract_strided_slice %16 {offsets = [3, 0], sizes = [444, 14], strides = [1, 1]} : vector<448x14xf32> to vector<444x14xf32>
    %21 = vector.extract_strided_slice %16 {offsets = [4, 0], sizes = [444, 14], strides = [1, 1]} : vector<448x14xf32> to vector<444x14xf32>
    %22 = tpu.concatenate %17, %18, %19, %20, %21 in 1 : vector<444x14xf32>, vector<444x14xf32>, vector<444x14xf32>, vector<444x14xf32>, vector<444x14xf32> -> vector<444x70xf32>
    %23 = vector.extract_strided_slice %22 {offsets = [0, 0], sizes = [101, 70], strides = [1, 1]} : vector<444x70xf32> to vector<101x70xf32>
    %cst_14 = arith.constant dense<0.000000e+00> : vector<28x101xf32>
    %24 = tpu.matmul %2, %23, %cst_14 {dimension_numbers = #tpu.dot_dimension_numbers<[1], [1], [0], [0], [0, 0, 1, 0], [], []>} : vector<28x70xf32>, vector<101x70xf32>, vector<28x101xf32> -> vector<28x101xf32>
    %25 = arith.addf %24, %5 : vector<28x101xf32>
    %cst_15 = arith.constant 0.000000e+00 : f32
    %26 = vector.broadcast %cst_15 : f32 to vector<28x101xf32>
    %27 = arith.maximumf %25, %26 : vector<28x101xf32>
    %c0_16 = arith.constant 0 : index
    %c0_17 = arith.constant 0 : index
    %c0_18 = arith.constant 0 : index
    %28 = vector.load %arg6[%c0_16, %c0_17, %c0_18] : memref<4x28x101xf32, #tpu.memory_space<vmem>>, vector<1x28x101xf32>
    %29 = vector.shape_cast %28 : vector<1x28x101xf32> to vector<28x101xf32>
    %30 = vector.shape_cast %27 : vector<28x101xf32> to vector<1x28x101xf32>
    tpu.vector_store %arg6[%c0_16, %c0_17, %c0_18], %30 {strides = array<i32>} : memref<4x28x101xf32, #tpu.memory_space<vmem>>, vector<1x28x101xf32>,
    %31 = vector.extract_strided_slice %22 {offsets = [112, 0], sizes = [101, 70], strides = [1, 1]} : vector<444x70xf32> to vector<101x70xf32>
    %cst_19 = arith.constant dense<0.000000e+00> : vector<28x101xf32>
    %32 = tpu.matmul %2, %31, %cst_19 {dimension_numbers = #tpu.dot_dimension_numbers<[1], [1], [0], [0], [0, 0, 1, 0], [], []>} : vector<28x70xf32>, vector<101x70xf32>, vector<28x101xf32> -> vector<28x101xf32>
    %33 = arith.addf %32, %5 : vector<28x101xf32>
    %cst_20 = arith.constant 0.000000e+00 : f32
    %34 = vector.broadcast %cst_20 : f32 to vector<28x101xf32>
    %35 = arith.maximumf %33, %34 : vector<28x101xf32>
    %c1_21 = arith.constant 1 : index
    %c0_22 = arith.constant 0 : index
    %c0_23 = arith.constant 0 : index
    %36 = vector.load %arg6[%c1_21, %c0_22, %c0_23] : memref<4x28x101xf32, #tpu.memory_space<vmem>>, vector<1x28x101xf32>
    %37 = vector.shape_cast %36 : vector<1x28x101xf32> to vector<28x101xf32>
    %38 = vector.shape_cast %35 : vector<28x101xf32> to vector<1x28x101xf32>
    tpu.vector_store %arg6[%c1_21, %c0_22, %c0_23], %38 {strides = array<i32>} : memref<4x28x101xf32, #tpu.memory_space<vmem>>, vector<1x28x101xf32>,
    %39 = vector.extract_strided_slice %22 {offsets = [224, 0], sizes = [101, 70], strides = [1, 1]} : vector<444x70xf32> to vector<101x70xf32>
    %cst_24 = arith.constant dense<0.000000e+00> : vector<28x101xf32>
    %40 = tpu.matmul %2, %39, %cst_24 {dimension_numbers = #tpu.dot_dimension_numbers<[1], [1], [0], [0], [0, 0, 1, 0], [], []>} : vector<28x70xf32>, vector<101x70xf32>, vector<28x101xf32> -> vector<28x101xf32>
    %41 = arith.addf %40, %5 : vector<28x101xf32>
    %cst_25 = arith.constant 0.000000e+00 : f32
    %42 = vector.broadcast %cst_25 : f32 to vector<28x101xf32>
    %43 = arith.maximumf %41, %42 : vector<28x101xf32>
    %c2 = arith.constant 2 : index
    %c0_26 = arith.constant 0 : index
    %c0_27 = arith.constant 0 : index
    %44 = vector.load %arg6[%c2, %c0_26, %c0_27] : memref<4x28x101xf32, #tpu.memory_space<vmem>>, vector<1x28x101xf32>
    %45 = vector.shape_cast %44 : vector<1x28x101xf32> to vector<28x101xf32>
    %46 = vector.shape_cast %43 : vector<28x101xf32> to vector<1x28x101xf32>
    tpu.vector_store %arg6[%c2, %c0_26, %c0_27], %46 {strides = array<i32>} : memref<4x28x101xf32, #tpu.memory_space<vmem>>, vector<1x28x101xf32>,
    %47 = vector.extract_strided_slice %22 {offsets = [336, 0], sizes = [101, 70], strides = [1, 1]} : vector<444x70xf32> to vector<101x70xf32>
    %cst_28 = arith.constant dense<0.000000e+00> : vector<28x101xf32>
    %48 = tpu.matmul %2, %47, %cst_28 {dimension_numbers = #tpu.dot_dimension_numbers<[1], [1], [0], [0], [0, 0, 1, 0], [], []>} : vector<28x70xf32>, vector<101x70xf32>, vector<28x101xf32> -> vector<28x101xf32>
    %49 = arith.addf %48, %5 : vector<28x101xf32>
    %cst_29 = arith.constant 0.000000e+00 : f32
    %50 = vector.broadcast %cst_29 : f32 to vector<28x101xf32>
    %51 = arith.maximumf %49, %50 : vector<28x101xf32>
    %c3 = arith.constant 3 : index
    %c0_30 = arith.constant 0 : index
    %c0_31 = arith.constant 0 : index
    %52 = vector.load %arg6[%c3, %c0_30, %c0_31] : memref<4x28x101xf32, #tpu.memory_space<vmem>>, vector<1x28x101xf32>
    %53 = vector.shape_cast %52 : vector<1x28x101xf32> to vector<28x101xf32>
    %54 = vector.shape_cast %51 : vector<28x101xf32> to vector<1x28x101xf32>
    tpu.vector_store %arg6[%c3, %c0_30, %c0_31], %54 {strides = array<i32>} : memref<4x28x101xf32, #tpu.memory_space<vmem>>, vector<1x28x101xf32>,
    return
  }
  func.func @transform_0(%arg0: i32) -> (i32, i32, i32) {
    %c0_i32 = arith.constant 0 : i32
    %c0_i32_0 = arith.constant 0 : i32
    %c0_i32_1 = arith.constant 0 : i32
    return %c0_i32, %arg0, %c0_i32_0 : i32, i32, i32
  }
  func.func @transform_1(%arg0: i32) -> (i32, i32) {
    %c0_i32 = arith.constant 0 : i32
    %c0_i32_0 = arith.constant 0 : i32
    %c0_i32_1 = arith.constant 0 : i32
    return %c0_i32, %c0_i32_0 : i32, i32
  }
  func.func @transform_2(%arg0: i32) -> (i32, i32) {
    %c0_i32 = arith.constant 0 : i32
    %c0_i32_0 = arith.constant 0 : i32
    %c0_i32_1 = arith.constant 0 : i32
    return %c0_i32, %c0_i32_0 : i32, i32
  }
  func.func @transform_3(%arg0: i32) -> (i32, i32) {
    %c0_i32 = arith.constant 0 : i32
    %c0_i32_0 = arith.constant 0 : i32
    %c0_i32_1 = arith.constant 0 : i32
    return %c0_i32, %c0_i32_0 : i32, i32
  }
  func.func @transform_4(%arg0: i32) -> (i32, i32) {
    %c0_i32 = arith.constant 0 : i32
    %c0_i32_0 = arith.constant 0 : i32
    %c0_i32_1 = arith.constant 0 : i32
    return %c0_i32, %c0_i32_0 : i32, i32
  }
  func.func @transform_5(%arg0: i32) -> (i32, i32, i32) {
    %c0_i32 = arith.constant 0 : i32
    %c0_i32_0 = arith.constant 0 : i32
    %c0_i32_1 = arith.constant 0 : i32
    return %arg0, %c0_i32, %c0_i32_0 : i32, i32, i32
  }
}

module attributes {stable_mosaic.version = 11 : i64} {
  func.func @fc_kernel(%arg0: i32, %arg1: memref<8x2828xf32, #tpu.memory_space<vmem>>, %arg2: memref<2828x128xf32, #tpu.memory_space<vmem>>, %arg3: memref<1x128xf32, #tpu.memory_space<vmem>>, %arg4: memref<1x128xf32, #tpu.memory_space<vmem>>, %arg5: memref<1x1xf32, #tpu.memory_space<vmem>>, %arg6: memref<8x1xf32, #tpu.memory_space<vmem>>) attributes {dimension_semantics = [#tpu.dimension_semantics<parallel>], iteration_bounds = array<i64: 1>, scalar_prefetch = 0 : i64, scratch_operands = 0 : i64, tpu.core_type = #tpu.core_type<tc>, window_params = [{transform_indices = @transform_0, window_bounds = array<i64: 8, 2828>}, {pipeline_mode = #tpu.pipeline_mode<synchronous>, transform_indices = @transform_1, window_bounds = array<i64: 2828, 128>}, {pipeline_mode = #tpu.pipeline_mode<synchronous>, transform_indices = @transform_2, window_bounds = array<i64: 1, 128>}, {pipeline_mode = #tpu.pipeline_mode<synchronous>, transform_indices = @transform_3, window_bounds = array<i64: 1, 128>}, {pipeline_mode = #tpu.pipeline_mode<synchronous>, transform_indices = @transform_4, window_bounds = array<i64: 1, 1>}, {transform_indices = @transform_5, window_bounds = array<i64: 8, 1>}]} {
    %c0 = arith.constant 0 : index
    %c0_0 = arith.constant 0 : index
    %0 = vector.load %arg1[%c0, %c0_0] : memref<8x2828xf32, #tpu.memory_space<vmem>>, vector<8x2828xf32>
    %c0_1 = arith.constant 0 : index
    %c0_2 = arith.constant 0 : index
    %1 = vector.load %arg2[%c0_1, %c0_2] : memref<2828x128xf32, #tpu.memory_space<vmem>>, vector<2828x128xf32>
    %cst = arith.constant dense<0.000000e+00> : vector<8x128xf32>
    %2 = tpu.matmul %0, %1, %cst {dimension_numbers = #tpu.dot_dimension_numbers<[1], [0], [0], [1], [0, 0, 1, 1], [], []>} : vector<8x2828xf32>, vector<2828x128xf32>, vector<8x128xf32> -> vector<8x128xf32>
    %c0_3 = arith.constant 0 : index
    %c0_4 = arith.constant 0 : index
    %3 = vector.load %arg3[%c0_3, %c0_4] : memref<1x128xf32, #tpu.memory_space<vmem>>, vector<1x128xf32>
    %4 = vector.broadcast %3 : vector<1x128xf32> to vector<8x128xf32>
    %5 = arith.addf %2, %4 : vector<8x128xf32>
    %cst_5 = arith.constant 0.000000e+00 : f32
    %6 = vector.broadcast %cst_5 : f32 to vector<8x128xf32>
    %7 = arith.maximumf %5, %6 : vector<8x128xf32>
    %c0_6 = arith.constant 0 : index
    %c0_7 = arith.constant 0 : index
    %8 = vector.load %arg4[%c0_6, %c0_7] : memref<1x128xf32, #tpu.memory_space<vmem>>, vector<1x128xf32>
    %9 = vector.broadcast %8 : vector<1x128xf32> to vector<8x128xf32>
    %10 = arith.mulf %7, %9 : vector<8x128xf32>
    %cst_8 = arith.constant dense<0.000000e+00> : vector<8xf32>
    %11 = vector.multi_reduction <add>, %10, %cst_8 [1] : vector<8x128xf32> to vector<8xf32>
    %12 = vector.shape_cast %11 : vector<8xf32> to vector<8x1xf32>
    %c0_9 = arith.constant 0 : index
    %c0_10 = arith.constant 0 : index
    %13 = vector.load %arg5[%c0_9, %c0_10] : memref<1x1xf32, #tpu.memory_space<vmem>>, vector<1x1xf32>
    %14 = vector.broadcast %13 : vector<1x1xf32> to vector<8x1xf32>
    %15 = arith.addf %12, %14 : vector<8x1xf32>
    %c0_11 = arith.constant 0 : index
    %c0_12 = arith.constant 0 : index
    %16 = vector.load %arg6[%c0_11, %c0_12] : memref<8x1xf32, #tpu.memory_space<vmem>>, vector<8x1xf32>
    tpu.vector_store %arg6[%c0_11, %c0_12], %15 {strides = array<i32>} : memref<8x1xf32, #tpu.memory_space<vmem>>, vector<8x1xf32>,
    return
  }
  func.func @transform_0(%arg0: i32) -> (i32, i32) {
    %c0_i32 = arith.constant 0 : i32
    %c0_i32_0 = arith.constant 0 : i32
    return %arg0, %c0_i32 : i32, i32
  }
  func.func @transform_1(%arg0: i32) -> (i32, i32) {
    %c0_i32 = arith.constant 0 : i32
    %c0_i32_0 = arith.constant 0 : i32
    %c0_i32_1 = arith.constant 0 : i32
    return %c0_i32, %c0_i32_0 : i32, i32
  }
  func.func @transform_2(%arg0: i32) -> (i32, i32) {
    %c0_i32 = arith.constant 0 : i32
    %c0_i32_0 = arith.constant 0 : i32
    %c0_i32_1 = arith.constant 0 : i32
    return %c0_i32, %c0_i32_0 : i32, i32
  }
  func.func @transform_3(%arg0: i32) -> (i32, i32) {
    %c0_i32 = arith.constant 0 : i32
    %c0_i32_0 = arith.constant 0 : i32
    %c0_i32_1 = arith.constant 0 : i32
    return %c0_i32, %c0_i32_0 : i32, i32
  }
  func.func @transform_4(%arg0: i32) -> (i32, i32) {
    %c0_i32 = arith.constant 0 : i32
    %c0_i32_0 = arith.constant 0 : i32
    %c0_i32_1 = arith.constant 0 : i32
    return %c0_i32, %c0_i32_0 : i32, i32
  }
  func.func @transform_5(%arg0: i32) -> (i32, i32) {
    %c0_i32 = arith.constant 0 : i32
    %c0_i32_0 = arith.constant 0 : i32
    return %arg0, %c0_i32 : i32, i32
  }
}

</mosaic_0001>

<bundles_post_ra>
// kernel: net_forward.3
= control target key start
LH: loop header
LB: loop body
LE: loop exit
PB: predicated region body
PF: predicated region fallthrough
CT: control target
= control target key end

     0   :  { %vm410_vm0 = vcmask 1043456   ;;  %vm2040_vm1 = vmmov 1   ;;  %vm2041_vm3 = vmmov 0   ;;  %vm406_vm4 = vcmask 97280   ;;  %s3217_s1 = inlined_call_operand.vmem [shape: f32[2828,128], index: 1, kind: input, shape index: {}]   ;;  %s3218_s0 = inlined_call_operand.vmem [shape: f32[8,2828], index: 0, kind: input, shape index: {}]   ;;  %s3219_s2 = inlined_call_operand.vmem [shape: f32[1,128], index: 2, kind: input, shape index: {}]   ;;  %s3220_s4 = inlined_call_operand.<no memory space> [shape: f32[1,1], index: 4, kind: input, shape index: {}]   ;;  %s3221_s3 = inlined_call_operand.vmem [shape: f32[1,128], index: 3, kind: input, shape index: {}]   ;;  %s3222_s5 = inlined_call_operand.vmem [shape: f32[8,1], index: 5, kind: output, shape index: {}]  }
   0x1   :  { %v61_v0 = vld [vmem:[%s3217_s1 + $0x80] sm:$0xff]  ;;  %v62_v1 = vld [vmem:[%s3217_s1 + $0x88] sm:$0xff]  ;;  %v63_v11 = vld [vmem:[%s3217_s1 + $0x90] sm:$0xff]  ;;  %vm1273_vm5 = vcmask 7168  }
   0x2   :  { %v45_v2 = vld [vmem:[%s3217_s1] sm:$0xff]  ;;  %v1679_v3 = vpack.c.bf16 %v62_v1, %v61_v0  ;;  %v46_v4 = vld [vmem:[%s3217_s1 + $0x8] sm:$0xff]  ;;  %v64_v13 = vld [vmem:[%s3217_s1 + $0x98] sm:$0xff] }
   0x3   :  { %v93_v5 = vld [vmem:[%s3217_s1 + $0x180] sm:$0xff]  ;;  %v94_v6 = vld [vmem:[%s3217_s1 + $0x188] sm:$0xff]  ;;  %v1681_v7 = vpack.c.bf16 %v46_v4, %v45_v2  ;;  %v47_v14 = vld [vmem:[%s3217_s1 + $0x10] sm:$0xff]  ;;  %v1683_v16 = vpack.c.bf16 %v64_v13, %v63_v11 }
   0x4   :  { %v1711_v8 = vpack.c.bf16 %v94_v6, %v93_v5  ;;  %v77_v9 = vld [vmem:[%s3217_s1 + $0x100] sm:$0xff]  ;;  %v78_v10 = vld [vmem:[%s3217_s1 + $0x108] sm:$0xff]  ;;  %1680 = vmatprep.subr.bf16.mxu0 %v1679_v3  ;;  %v48_v15 = vld [vmem:[%s3217_s1 + $0x18] sm:$0xff] }
   0x5   :  { %v1713_v12 = vpack.c.bf16 %v78_v10, %v77_v9  ;;  %1682 = vmatpush3.bf16.msra.mxu0 %v1681_v7  ;;  %v1685_v17 = vpack.c.bf16 %v48_v15, %v47_v14  ;;  %v95_v18 = vld [vmem:[%s3217_s1 + $0x190] sm:$0xff]  ;;  %v96_v19 = vld [vmem:[%s3217_s1 + $0x198] sm:$0xff]  ;;  %v65_v23 = vld [vmem:[%s3217_s1 + $0xa0] sm:$0xff] }
   0x6   :  { %1712 = vmatprep.subr.bf16.mxu1 %v1711_v8  ;;  %v79_v20 = vld [vmem:[%s3217_s1 + $0x110] sm:$0xff]  ;;  %v1715_v21 = vpack.c.bf16 %v96_v19, %v95_v18  ;;  %v80_v22 = vld [vmem:[%s3217_s1 + $0x118] sm:$0xff]  ;;  %v66_v24 = vld [vmem:[%s3217_s1 + $0xa8] sm:$0xff]  ;;  %1684 = vmatprep.subr.bf16.mxu0 %v1683_v16 }
   0x7   :  { %1714 = vmatpush3.bf16.msra.mxu1 %v1713_v12  ;;  %v1717_v25 = vpack.c.bf16 %v80_v22, %v79_v20  ;;  %v1687_v26 = vpack.c.bf16 %v66_v24, %v65_v23  ;;  %v49_v27 = vld [vmem:[%s3217_s1 + $0x20] sm:$0xff]  ;;  %v50_v28 = vld [vmem:[%s3217_s1 + $0x28] sm:$0xff]  ;;  %v67_v35 = vld [vmem:[%s3217_s1 + $0xb0] sm:$0xff] }
   0x8   :  { %v97_v29 = vld [vmem:[%s3217_s1 + $0x1a0] sm:$0xff]  ;;  %1716 = vmatprep.subr.bf16.mxu1 %v1715_v21  ;;  %v98_v30 = vld [vmem:[%s3217_s1 + $0x1a8] sm:$0xff]  ;;  %v1689_v33 = vpack.c.bf16 %v50_v28, %v49_v27  ;;  %v68_v36 = vld [vmem:[%s3217_s1 + $0xb8] sm:$0xff] }
   0x9   :  { %v81_v31 = vld [vmem:[%s3217_s1 + $0x120] sm:$0xff]  ;;  %v82_v32 = vld [vmem:[%s3217_s1 + $0x128] sm:$0xff]  ;;  %1686 = vmatpush3.bf16.msra.mxu0 %v1685_v17  ;;  %v1719_v34 = vpack.c.bf16 %v98_v30, %v97_v29  ;;  %v51_v37 = vld [vmem:[%s3217_s1 + $0x30] sm:$0xff]  ;;  %v1691_v39 = vpack.c.bf16 %v68_v36, %v67_v35 }
   0xa   :  { %1688 = vmatprep.subr.bf16.mxu0 %v1687_v26  ;;  %v1721_v38 = vpack.c.bf16 %v82_v32, %v81_v31  ;;  %v52_v40 = vld [vmem:[%s3217_s1 + $0x38] sm:$0xff]  ;;  %v99_v41 = vld [vmem:[%s3217_s1 + $0x1b0] sm:$0xff]  ;;  %v69_v46 = vld [vmem:[%s3217_s1 + $0xc0] sm:$0xff] }
   0xb   :  { %1718 = vmatpush3.bf16.msra.mxu1 %v1717_v25  ;;  %v100_v42 = vld [vmem:[%s3217_s1 + $0x1b8] sm:$0xff]  ;;  %v83_v44 = vld [vmem:[%s3217_s1 + $0x130] sm:$0xff]  ;;  %v70_v47 = vld [vmem:[%s3217_s1 + $0xc8] sm:$0xff]  ;;  %v1693_v48 = vpack.c.bf16 %v52_v40, %v51_v37 }
   0xc   :  { %1720 = vmatprep.subr.bf16.mxu1 %v1719_v34  ;;  %v1723_v43 = vpack.c.bf16 %v100_v42, %v99_v41  ;;  %v84_v45 = vld [vmem:[%s3217_s1 + $0x138] sm:$0xff]  ;;  %v101_v49 = vld [vmem:[%s3217_s1 + $0x1c0] sm:$0xff]  ;;  %v102_v50 = vld [vmem:[%s3217_s1 + $0x1c8] sm:$0xff]  ;;  %v1695_v52 = vpack.c.bf16 %v70_v47, %v69_v46 }
   0xd   :  { %1690 = vmatpush3.bf16.msra.mxu0 %v1689_v33  ;;  %v1725_v51 = vpack.c.bf16 %v84_v45, %v83_v44  ;;  %v53_v53 = vld [vmem:[%s3217_s1 + $0x40] sm:$0xff]  ;;  %v54_v54 = vld [vmem:[%s3217_s1 + $0x48] sm:$0xff]  ;;  %v1727_v56 = vpack.c.bf16 %v102_v50, %v101_v49  ;;  %v71_v58 = vld [vmem:[%s3217_s1 + $0xd0] sm:$0xff] }
   0xe   :  { %1692 = vmatprep.subr.bf16.mxu0 %v1691_v39  ;;  %v85_v55 = vld [vmem:[%s3217_s1 + $0x140] sm:$0xff]  ;;  %v86_v57 = vld [vmem:[%s3217_s1 + $0x148] sm:$0xff]  ;;  %v72_v59 = vld [vmem:[%s3217_s1 + $0xd8] sm:$0xff]  ;;  %v1697_v62 = vpack.c.bf16 %v54_v54, %v53_v53 }
   0xf   :  { %1722 = vmatpush3.bf16.msra.mxu1 %v1721_v38  ;;  %v103_v60 = vld [vmem:[%s3217_s1 + $0x1d0] sm:$0xff]  ;;  %v104_v61 = vld [vmem:[%s3217_s1 + $0x1d8] sm:$0xff]  ;;  %v1729_v63 = vpack.c.bf16 %v86_v57, %v85_v55  ;;  %v1699_v0 = vpack.c.bf16 %v72_v59, %v71_v58  ;;  %v73_v6 = vld [vmem:[%s3217_s1 + $0xe0] sm:$0xff] }
  0x10   :  { %1724 = vmatprep.subr.bf16.mxu1 %v1723_v43  ;;  %v55_v1 = vld [vmem:[%s3217_s1 + $0x50] sm:$0xff]  ;;  %v56_v2 = vld [vmem:[%s3217_s1 + $0x58] sm:$0xff]  ;;  %v1731_v4 = vpack.c.bf16 %v104_v61, %v103_v60  ;;  %v74_v7 = vld [vmem:[%s3217_s1 + $0xe8] sm:$0xff] }
  0x11   :  { %1694 = vmatpush3.bf16.msra.mxu0 %v1693_v48  ;;  %v87_v3 = vld [vmem:[%s3217_s1 + $0x150] sm:$0xff]  ;;  %v88_v5 = vld [vmem:[%s3217_s1 + $0x158] sm:$0xff]  ;;  %v105_v8 = vld [vmem:[%s3217_s1 + $0x1e0] sm:$0xff]  ;;  %v1701_v10 = vpack.c.bf16 %v56_v2, %v55_v1  ;;  %v1703_v14 = vpack.c.bf16 %v74_v7, %v73_v6 }
  0x12   :  { %1696 = vmatprep.subr.bf16.mxu0 %v1695_v52  ;;  %v106_v9 = vld [vmem:[%s3217_s1 + $0x1e8] sm:$0xff]  ;;  %v57_v11 = vld [vmem:[%s3217_s1 + $0x60] sm:$0xff]  ;;  %v1733_v13 = vpack.c.bf16 %v88_v5, %v87_v3  ;;  %v75_v19 = vld [vmem:[%s3217_s1 + $0xf0] sm:$0xff] }
  0x13   :  { %1726 = vmatpush3.bf16.msra.mxu1 %v1725_v51  ;;  %v23_v12 = vld [vmem:[%s3218_s0 + $0x8] sm:$0xff]  ;;  %v89_v16 = vld [vmem:[%s3217_s1 + $0x160] sm:$0xff]  ;;  %v1735_v18 = vpack.c.bf16 %v106_v9, %v105_v8  ;;  %v76_v20 = vld [vmem:[%s3217_s1 + $0xf8] sm:$0xff] }
  0x14   :  { %1728 = vmatprep.subr.bf16.mxu1 %v1727_v56  ;;  %v58_v15 = vld [vmem:[%s3217_s1 + $0x68] sm:$0xff]  ;;  %478 = vmatprep.mubr.f32.mxu0 %v23_v12  ;;  %v25_v21 = vld [vmem:[%s3218_s0 + $0x18] sm:$0xff]  ;;  %v107_v22 = vld [vmem:[%s3217_s1 + $0x1f0] sm:$0xff]  ;;  %v1707_v26 = vpack.c.bf16 %v76_v20, %v75_v19 }
  0x15   :  { %1698 = vmatpush3.bf16.msra.mxu0 %v1697_v62  ;;  %v90_v17 = vld [vmem:[%s3217_s1 + $0x168] sm:$0xff]  ;;  %v108_v23 = vld [vmem:[%s3217_s1 + $0x1f8] sm:$0xff]  ;;  %548 = vmatprep.mubr.f32.mxu1 %v25_v21  ;;  %v1705_v24 = vpack.c.bf16 %v58_v15, %v57_v11  ;;  %v59_v27 = vld [vmem:[%s3217_s1 + $0x70] sm:$0xff] }
  0x16   :  { %1700 = vmatprep.subr.bf16.mxu0 %v1699_v0  ;;  %v1737_v25 = vpack.c.bf16 %v90_v17, %v89_v16  ;;  %v60_v28 = vld [vmem:[%s3217_s1 + $0x78] sm:$0xff]  ;;  %v91_v29 = vld [vmem:[%s3217_s1 + $0x170] sm:$0xff]  ;;  %v1739_v30 = vpack.c.bf16 %v108_v23, %v107_v22  ;;  %v125_v32 = vld [vmem:[%s3217_s1 + $0x280] sm:$0xff] }
  0x17   :  { %1730 = vmatpush3.bf16.msra.mxu1 %v1729_v63  ;;  %v92_v31 = vld [vmem:[%s3217_s1 + $0x178] sm:$0xff]  ;;  %v126_v33 = vld [vmem:[%s3217_s1 + $0x288] sm:$0xff]  ;;  %v157_v34 = vld [vmem:[%s3217_s1 + $0x380] sm:$0xff]  ;;  %v1709_v36 = vpack.c.bf16 %v60_v28, %v59_v27 }
  0x18   :  { %1732 = vmatprep.subr.bf16.mxu1 %v1731_v4  ;;  %v158_v35 = vld [vmem:[%s3217_s1 + $0x388] sm:$0xff]  ;;  %v1741_v37 = vpack.c.bf16 %v92_v31, %v91_v29  ;;  %v1743_v38 = vpack.c.bf16 %v126_v33, %v125_v32  ;;  %v109_v39 = vld [vmem:[%s3217_s1 + $0x200] sm:$0xff]  ;;  %v127_v44 = vld [vmem:[%s3217_s1 + $0x290] sm:$0xff] }
  0x19   :  { %1702 = vmatpush3.bf16.msra.mxu0 %v1701_v10  ;;  %v110_v40 = vld [vmem:[%s3217_s1 + $0x208] sm:$0xff]  ;;  %v141_v41 = vld [vmem:[%s3217_s1 + $0x300] sm:$0xff]  ;;  %v1775_v42 = vpack.c.bf16 %v158_v35, %v157_v34  ;;  %v128_v45 = vld [vmem:[%s3217_s1 + $0x298] sm:$0xff] }
  0x1a   :  { %1704 = vmatprep.subr.bf16.mxu0 %v1703_v14  ;;  %v142_v43 = vld [vmem:[%s3217_s1 + $0x308] sm:$0xff]  ;;  %v159_v46 = vld [vmem:[%s3217_s1 + $0x390] sm:$0xff]  ;;  %v160_v47 = vld [vmem:[%s3217_s1 + $0x398] sm:$0xff]  ;;  %v1745_v49 = vpack.c.bf16 %v110_v40, %v109_v39  ;;  %v1747_v52 = vpack.c.bf16 %v128_v45, %v127_v44 }
  0x1b   :  { %1734 = vmatpush3.bf16.msra.mxu1 %v1733_v13  ;;  %v22_v48 = vld [vmem:[%s3218_s0] sm:$0xff]  ;;  %v24_v50 = vld [vmem:[%s3218_s0 + $0x10] sm:$0xff]  ;;  %v1777_v51 = vpack.c.bf16 %v142_v43, %v141_v41  ;;  %v112_v54 = vld [vmem:[%s3217_s1 + $0x218] sm:$0xff]  ;;  %v1779_v56 = vpack.c.bf16 %v160_v47, %v159_v46 }
  0x1c   :  { %1736 = vmatprep.subr.bf16.mxu1 %v1735_v18  ;;  %v111_v53 = vld [vmem:[%s3217_s1 + $0x210] sm:$0xff]  ;;  %v144_v57 = vld [vmem:[%s3217_s1 + $0x318] sm:$0xff]  ;;  %v129_v58 = vld [vmem:[%s3217_s1 + $0x2a0] sm:$0xff] }
  0x1d   :  { %1706 = vmatpush3.bf16.msra.mxu0 %v1705_v24  ;;  %v143_v55 = vld [vmem:[%s3217_s1 + $0x310] sm:$0xff]  ;;  %v130_v59 = vld [vmem:[%s3217_s1 + $0x2a8] sm:$0xff]  ;;  %v161_v60 = vld [vmem:[%s3217_s1 + $0x3a0] sm:$0xff]  ;;  %v1749_v62 = vpack.c.bf16 %v112_v54, %v111_v53 }
  0x1e   :  { %1708 = vmatprep.subr.bf16.mxu0 %v1707_v26  ;;  %v162_v61 = vld [vmem:[%s3217_s1 + $0x3a8] sm:$0xff]  ;;  %v1781_v63 = vpack.c.bf16 %v144_v57, %v143_v55  ;;  %v1751_v0 = vpack.c.bf16 %v130_v59, %v129_v58  ;;  %v113_v1 = vld [vmem:[%s3217_s1 + $0x220] sm:$0xff]  ;;  %v131_v6 = vld [vmem:[%s3217_s1 + $0x2b0] sm:$0xff] }
  0x1f   :  { %1738 = vmatpush3.bf16.msra.mxu1 %v1737_v25  ;;  %v114_v2 = vld [vmem:[%s3217_s1 + $0x228] sm:$0xff]  ;;  %v145_v3 = vld [vmem:[%s3217_s1 + $0x320] sm:$0xff]  ;;  %v1783_v4 = vpack.c.bf16 %v162_v61, %v161_v60  ;;  %v132_v7 = vld [vmem:[%s3217_s1 + $0x2b8] sm:$0xff] }
  0x20   :  { %1740 = vmatprep.subr.bf16.mxu1 %v1739_v30  ;;  %v146_v5 = vld [vmem:[%s3217_s1 + $0x328] sm:$0xff]  ;;  %v163_v8 = vld [vmem:[%s3217_s1 + $0x3b0] sm:$0xff]  ;;  %v164_v9 = vld [vmem:[%s3217_s1 + $0x3b8] sm:$0xff]  ;;  %v1753_v10 = vpack.c.bf16 %v114_v2, %v113_v1  ;;  %v1755_v12 = vpack.c.bf16 %v132_v7, %v131_v6 }
  0x21   :  { %1710 = vmatpush3.bf16.msra.mxu0 %v1709_v36  ;;  %v1785_v11 = vpack.c.bf16 %v146_v5, %v145_v3  ;;  %v115_v13 = vld [vmem:[%s3217_s1 + $0x230] sm:$0xff]  ;;  %v116_v14 = vld [vmem:[%s3217_s1 + $0x238] sm:$0xff]  ;;  %v1787_v16 = vpack.c.bf16 %v164_v9, %v163_v8  ;;  %v133_v18 = vld [vmem:[%s3217_s1 + $0x2c0] sm:$0xff] }
  0x22   :  { %1744 = vmatprep.subr.bf16.mxu0 %v1743_v38  ;;  %v147_v15 = vld [vmem:[%s3217_s1 + $0x330] sm:$0xff]  ;;  %v148_v17 = vld [vmem:[%s3217_s1 + $0x338] sm:$0xff]  ;;  %v134_v19 = vld [vmem:[%s3217_s1 + $0x2c8] sm:$0xff]  ;;  %v1757_v23 = vpack.c.bf16 %v116_v14, %v115_v13 }
  0x23   :  { %1742 = vmatpush3.bf16.msra.mxu1 %v1741_v37  ;;  %v165_v20 = vld [vmem:[%s3217_s1 + $0x3c0] sm:$0xff]  ;;  %v166_v21 = vld [vmem:[%s3217_s1 + $0x3c8] sm:$0xff]  ;;  %v1789_v25 = vpack.c.bf16 %v148_v17, %v147_v15  ;;  %v1759_v26 = vpack.c.bf16 %v134_v19, %v133_v18  ;;  %v29_v29 = vld [vmem:[%s3218_s0 + $0x38] sm:$0xff] }
  0x24   :  { %1776 = vmatprep.subr.bf16.mxu1 %v1775_v42  ;;  %479 = vmatmul.mubr.f32.vlgmr.msra.gmra.mrb[0].mxu0 %v22_v48  ;;  %v27_v22 = vld [vmem:[%s3218_s0 + $0x28] sm:$0xff]  ;;  %v117_v24 = vld [vmem:[%s3217_s1 + $0x240] sm:$0xff]  ;;  %v1791_v30 = vpack.c.bf16 %v166_v21, %v165_v20  ;;  %v135_v32 = vld [vmem:[%s3217_s1 + $0x2d0] sm:$0xff] }
  0x25   :  { %1746 = vmatpush3.bf16.msra.mxu0 %v1745_v49  ;;  %618 = vmatprep.mubr.f32.mxu0 %v27_v22  ;;  %v118_v27 = vld [vmem:[%s3217_s1 + $0x248] sm:$0xff]  ;;  %v149_v28 = vld [vmem:[%s3217_s1 + $0x340] sm:$0xff]  ;;  %v136_v33 = vld [vmem:[%s3217_s1 + $0x2d8] sm:$0xff] }
  0x26   :  { %549 = vmatmul.mubr.f32.vlgmr.msra.gmra.mrb[0].mxu1 %v24_v50  ;;  %1748 = vmatprep.subr.bf16.mxu0 %v1747_v52  ;;  %v150_v31 = vld [vmem:[%s3217_s1 + $0x348] sm:$0xff]  ;;  %v167_v34 = vld [vmem:[%s3217_s1 + $0x3d0] sm:$0xff]  ;;  %v168_v35 = vld [vmem:[%s3217_s1 + $0x3d8] sm:$0xff]  ;;  %v1761_v36 = vpack.c.bf16 %v118_v27, %v117_v24  ;;  %v1763_v38 = vpack.c.bf16 %v136_v33, %v135_v32 }
  0x27   :  { %1778 = vmatpush3.bf16.msra.mxu1 %v1777_v51  ;;  %688 = vmatprep.mubr.f32.mxu1 %v29_v29  ;;  %v1793_v37 = vpack.c.bf16 %v150_v31, %v149_v28  ;;  %v119_v39 = vld [vmem:[%s3217_s1 + $0x250] sm:$0xff]  ;;  %v120_v40 = vld [vmem:[%s3217_s1 + $0x258] sm:$0xff]  ;;  %v1795_v42 = vpack.c.bf16 %v168_v35, %v167_v34  ;;  %v137_v44 = vld [vmem:[%s3217_s1 + $0x2e0] sm:$0xff] }
  0x28   :  { %1780 = vmatprep.subr.bf16.mxu1 %v1779_v56  ;;  %v151_v41 = vld [vmem:[%s3217_s1 + $0x350] sm:$0xff]  ;;  %v152_v43 = vld [vmem:[%s3217_s1 + $0x358] sm:$0xff]  ;;  %v138_v45 = vld [vmem:[%s3217_s1 + $0x2e8] sm:$0xff]  ;;  %v1765_v48 = vpack.c.bf16 %v120_v40, %v119_v39 }
  0x29   :  { %1750 = vmatpush3.bf16.msra.mxu0 %v1749_v62  ;;  %v169_v46 = vld [vmem:[%s3217_s1 + $0x3e0] sm:$0xff]  ;;  %v170_v47 = vld [vmem:[%s3217_s1 + $0x3e8] sm:$0xff]  ;;  %v1797_v49 = vpack.c.bf16 %v152_v43, %v151_v41  ;;  %v1767_v50 = vpack.c.bf16 %v138_v45, %v137_v44  ;;  %v139_v56 = vld [vmem:[%s3217_s1 + $0x2f0] sm:$0xff] }
  0x2a   :  { %1752 = vmatprep.subr.bf16.mxu0 %v1751_v0  ;;  %v121_v51 = vld [vmem:[%s3217_s1 + $0x260] sm:$0xff]  ;;  %v122_v52 = vld [vmem:[%s3217_s1 + $0x268] sm:$0xff]  ;;  %v1799_v54 = vpack.c.bf16 %v170_v47, %v169_v46  ;;  %v140_v57 = vld [vmem:[%s3217_s1 + $0x2f8] sm:$0xff] }
  0x2b   :  { %1782 = vmatpush3.bf16.msra.mxu1 %v1781_v63  ;;  %v153_v53 = vld [vmem:[%s3217_s1 + $0x360] sm:$0xff]  ;;  %v154_v55 = vld [vmem:[%s3217_s1 + $0x368] sm:$0xff]  ;;  %v171_v58 = vld [vmem:[%s3217_s1 + $0x3f0] sm:$0xff]  ;;  %v1769_v60 = vpack.c.bf16 %v122_v52, %v121_v51  ;;  %v1771_v62 = vpack.c.bf16 %v140_v57, %v139_v56 }
  0x2c   :  { %1784 = vmatprep.subr.bf16.mxu1 %v1783_v4  ;;  %v172_v59 = vld [vmem:[%s3217_s1 + $0x3f8] sm:$0xff]  ;;  %v1801_v61 = vpack.c.bf16 %v154_v55, %v153_v53  ;;  %v123_v63 = vld [vmem:[%s3217_s1 + $0x270] sm:$0xff]  ;;  %v189_v4 = vld [vmem:[%s3217_s1 + $0x480] sm:$0xff] }
  0x2d   :  { %1754 = vmatpush3.bf16.msra.mxu0 %v1753_v10  ;;  %v124_v0 = vld [vmem:[%s3217_s1 + $0x278] sm:$0xff]  ;;  %v155_v1 = vld [vmem:[%s3217_s1 + $0x370] sm:$0xff]  ;;  %v1803_v2 = vpack.c.bf16 %v172_v59, %v171_v58  ;;  %v190_v5 = vld [vmem:[%s3217_s1 + $0x488] sm:$0xff] }
  0x2e   :  { %1756 = vmatprep.subr.bf16.mxu0 %v1755_v12  ;;  %v156_v3 = vld [vmem:[%s3217_s1 + $0x378] sm:$0xff]  ;;  %v221_v6 = vld [vmem:[%s3217_s1 + $0x580] sm:$0xff]  ;;  %v222_v7 = vld [vmem:[%s3217_s1 + $0x588] sm:$0xff]  ;;  %v1773_v8 = vpack.c.bf16 %v124_v0, %v123_v63  ;;  %v1807_v10 = vpack.c.bf16 %v190_v5, %v189_v4 }
  0x2f   :  { %1786 = vmatpush3.bf16.msra.mxu1 %v1785_v11  ;;  %v1805_v9 = vpack.c.bf16 %v156_v3, %v155_v1  ;;  %v173_v11 = vld [vmem:[%s3217_s1 + $0x400] sm:$0xff]  ;;  %v174_v12 = vld [vmem:[%s3217_s1 + $0x408] sm:$0xff]  ;;  %v1839_v14 = vpack.c.bf16 %v222_v7, %v221_v6  ;;  %v192_v17 = vld [vmem:[%s3217_s1 + $0x498] sm:$0xff] }
  0x30   :  { %1788 = vmatprep.subr.bf16.mxu1 %v1787_v16  ;;  %v205_v13 = vld [vmem:[%s3217_s1 + $0x500] sm:$0xff]  ;;  %v206_v15 = vld [vmem:[%s3217_s1 + $0x508] sm:$0xff]  ;;  %v191_v16 = vld [vmem:[%s3217_s1 + $0x490] sm:$0xff]  ;;  %v1809_v21 = vpack.c.bf16 %v174_v12, %v173_v11 }
  0x31   :  { %1758 = vmatpush3.bf16.msra.mxu0 %v1757_v23  ;;  %v223_v18 = vld [vmem:[%s3217_s1 + $0x590] sm:$0xff]  ;;  %v224_v19 = vld [vmem:[%s3217_s1 + $0x598] sm:$0xff]  ;;  %v26_v20 = vld [vmem:[%s3218_s0 + $0x20] sm:$0xff]  ;;  %v1841_v23 = vpack.c.bf16 %v206_v15, %v205_v13  ;;  %v1811_v24 = vpack.c.bf16 %v192_v17, %v191_v16 }
  0x32   :  { %1760 = vmatprep.subr.bf16.mxu0 %v1759_v26  ;;  %v28_v22 = vld [vmem:[%s3218_s0 + $0x30] sm:$0xff]  ;;  %v176_v26 = vld [vmem:[%s3217_s1 + $0x418] sm:$0xff]  ;;  %v1843_v28 = vpack.c.bf16 %v224_v19, %v223_v18  ;;  %v194_v31 = vld [vmem:[%s3217_s1 + $0x4a8] sm:$0xff] }
  0x33   :  { %1790 = vmatpush3.bf16.msra.mxu1 %v1789_v25  ;;  %v175_v25 = vld [vmem:[%s3217_s1 + $0x410] sm:$0xff]  ;;  %v208_v29 = vld [vmem:[%s3217_s1 + $0x518] sm:$0xff]  ;;  %v225_v32 = vld [vmem:[%s3217_s1 + $0x5a0] sm:$0xff] }
  0x34   :  { %1792 = vmatprep.subr.bf16.mxu1 %v1791_v30  ;;  %v207_v27 = vld [vmem:[%s3217_s1 + $0x510] sm:$0xff]  ;;  %v193_v30 = vld [vmem:[%s3217_s1 + $0x4a0] sm:$0xff]  ;;  %v226_v33 = vld [vmem:[%s3217_s1 + $0x5a8] sm:$0xff]  ;;  %v1813_v35 = vpack.c.bf16 %v176_v26, %v175_v25 }
  0x35   :  { %1762 = vmatpush3.bf16.msra.mxu0 %v1761_v36  ;;  %v31_v34 = vld [vmem:[%s3218_s0 + $0x48] sm:$0xff]  ;;  %v33_v36 = vld [vmem:[%s3218_s0 + $0x58] sm:$0xff]  ;;  %v177_v39 = vld [vmem:[%s3217_s1 + $0x420] sm:$0xff] }
  0x36   :  { %1764 = vmatprep.subr.bf16.mxu0 %v1763_v38  ;;  %v1815_v38 = vpack.c.bf16 %v194_v31, %v193_v30  ;;  %v178_v40 = vld [vmem:[%s3217_s1 + $0x428] sm:$0xff]  ;;  %v209_v41 = vld [vmem:[%s3217_s1 + $0x520] sm:$0xff]  ;;  %v195_v44 = vld [vmem:[%s3217_s1 + $0x4b0] sm:$0xff] }
  0x37   :  { %1794 = vmatpush3.bf16.msra.mxu1 %v1793_v37  ;;  %v1845_v37 = vpack.c.bf16 %v208_v29, %v207_v27  ;;  %v210_v43 = vld [vmem:[%s3217_s1 + $0x528] sm:$0xff]  ;;  %v196_v45 = vld [vmem:[%s3217_s1 + $0x4b8] sm:$0xff]  ;;  %v227_v46 = vld [vmem:[%s3217_s1 + $0x5b0] sm:$0xff] }
  0x38   :  { %1796 = vmatprep.subr.bf16.mxu1 %v1795_v42  ;;  %v1847_v42 = vpack.c.bf16 %v226_v33, %v225_v32  ;;  %v228_v47 = vld [vmem:[%s3217_s1 + $0x5b8] sm:$0xff]  ;;  %v179_v51 = vld [vmem:[%s3217_s1 + $0x430] sm:$0xff]  ;;  %v197_v56 = vld [vmem:[%s3217_s1 + $0x4c0] sm:$0xff] }
  0x39   :  { %1766 = vmatpush3.bf16.msra.mxu0 %v1765_v48  ;;  %v1817_v48 = vpack.c.bf16 %v178_v40, %v177_v39  ;;  %v180_v52 = vld [vmem:[%s3217_s1 + $0x438] sm:$0xff]  ;;  %v211_v53 = vld [vmem:[%s3217_s1 + $0x530] sm:$0xff]  ;;  %v198_v57 = vld [vmem:[%s3217_s1 + $0x4c8] sm:$0xff] }
  0x3a   :  { %1768 = vmatprep.subr.bf16.mxu0 %v1767_v50  ;;  %v1819_v50 = vpack.c.bf16 %v196_v45, %v195_v44  ;;  %v212_v55 = vld [vmem:[%s3217_s1 + $0x538] sm:$0xff]  ;;  %v229_v58 = vld [vmem:[%s3217_s1 + $0x5c0] sm:$0xff]  ;;  %v230_v59 = vld [vmem:[%s3217_s1 + $0x5c8] sm:$0xff] }
  0x3b   :  { %1798 = vmatpush3.bf16.msra.mxu1 %v1797_v49  ;;  %v1849_v49 = vpack.c.bf16 %v210_v43, %v209_v41  ;;  %v181_v63 = vld [vmem:[%s3217_s1 + $0x440] sm:$0xff]  ;;  %v182_v0 = vld [vmem:[%s3217_s1 + $0x448] sm:$0xff]  ;;  %v199_v4 = vld [vmem:[%s3217_s1 + $0x4d0] sm:$0xff] }
  0x3c   :  { %1800 = vmatprep.subr.bf16.mxu1 %v1799_v54  ;;  %v1851_v54 = vpack.c.bf16 %v228_v47, %v227_v46  ;;  %v213_v1 = vld [vmem:[%s3217_s1 + $0x540] sm:$0xff]  ;;  %v214_v3 = vld [vmem:[%s3217_s1 + $0x548] sm:$0xff]  ;;  %v200_v5 = vld [vmem:[%s3217_s1 + $0x4d8] sm:$0xff] }
  0x3d   :  { %1770 = vmatpush3.bf16.msra.mxu0 %v1769_v60  ;;  %v1821_v60 = vpack.c.bf16 %v180_v52, %v179_v51  ;;  %v231_v6 = vld [vmem:[%s3217_s1 + $0x5d0] sm:$0xff]  ;;  %v232_v7 = vld [vmem:[%s3217_s1 + $0x5d8] sm:$0xff]  ;;  %v201_v16 = vld [vmem:[%s3217_s1 + $0x4e0] sm:$0xff] }
  0x3e   :  { %1772 = vmatprep.subr.bf16.mxu0 %v1771_v62  ;;  %v1823_v62 = vpack.c.bf16 %v198_v57, %v197_v56  ;;  %v183_v11 = vld [vmem:[%s3217_s1 + $0x450] sm:$0xff]  ;;  %v184_v12 = vld [vmem:[%s3217_s1 + $0x458] sm:$0xff]  ;;  %v202_v17 = vld [vmem:[%s3217_s1 + $0x4e8] sm:$0xff] }
  0x3f   :  { %1802 = vmatpush3.bf16.msra.mxu1 %v1801_v61  ;;  %v1853_v61 = vpack.c.bf16 %v212_v55, %v211_v53  ;;  %v215_v13 = vld [vmem:[%s3217_s1 + $0x550] sm:$0xff]  ;;  %v216_v15 = vld [vmem:[%s3217_s1 + $0x558] sm:$0xff]  ;;  %v233_v18 = vld [vmem:[%s3217_s1 + $0x5e0] sm:$0xff] }
  0x40   :  { %1804 = vmatprep.subr.bf16.mxu1 %v1803_v2  ;;  %v1855_v2 = vpack.c.bf16 %v230_v59, %v229_v58  ;;  %v234_v19 = vld [vmem:[%s3217_s1 + $0x5e8] sm:$0xff]  ;;  %v217_v25 = vld [vmem:[%s3217_s1 + $0x560] sm:$0xff]  ;;  %v204_v29 = vld [vmem:[%s3217_s1 + $0x4f8] sm:$0xff] }
  0x41   :  { %1774 = vmatpush3.bf16.msra.mxu0 %v1773_v8  ;;  %v1825_v8 = vpack.c.bf16 %v182_v0, %v181_v63  ;;  %v1863_v26 = vpack.c.bf16 %v234_v19, %v233_v18  ;;  %v218_v27 = vld [vmem:[%s3217_s1 + $0x568] sm:$0xff]  ;;  %v235_v30 = vld [vmem:[%s3217_s1 + $0x5f0] sm:$0xff]  ;;  %v236_v31 = vld [vmem:[%s3217_s1 + $0x5f8] sm:$0xff] }
  0x42   :  { %1808 = vmatprep.subr.bf16.mxu0 %v1807_v10  ;;  %v1827_v10 = vpack.c.bf16 %v200_v5, %v199_v4  ;;  %v1865_v33 = vpack.c.bf16 %v218_v27, %v217_v25  ;;  %v220_v39 = vld [vmem:[%s3217_s1 + $0x578] sm:$0xff]  ;;  %v253_v40 = vld [vmem:[%s3217_s1 + $0x680] sm:$0xff]  ;;  %v254_v41 = vld [vmem:[%s3217_s1 + $0x688] sm:$0xff] }
  0x43   :  { %1806 = vmatpush3.bf16.msra.mxu1 %v1805_v9  ;;  %v1857_v9 = vpack.c.bf16 %v214_v3, %v213_v1  ;;  %v286_v43 = vld [vmem:[%s3217_s1 + $0x788] sm:$0xff]  ;;  %v1871_v46 = vpack.c.bf16 %v254_v41, %v253_v40  ;;  %v237_v47 = vld [vmem:[%s3217_s1 + $0x600] sm:$0xff]  ;;  %v255_v52 = vld [vmem:[%s3217_s1 + $0x690] sm:$0xff] }
  0x44   :  { %1840 = vmatprep.subr.bf16.mxu1 %v1839_v14  ;;  %619 = vmatmul.mubr.f32.vlgmr.msra.gmra.mrb[2].mxu0 %v26_v20  ;;  %v1859_v14 = vpack.c.bf16 %v232_v7, %v231_v6  ;;  %v1829_v20 = vpack.c.bf16 %v184_v12, %v183_v11  ;;  %v270_v51 = vld [vmem:[%s3217_s1 + $0x708] sm:$0xff]  ;;  %v256_v53 = vld [vmem:[%s3217_s1 + $0x698] sm:$0xff]  ;;  %v30_v56 = vld [vmem:[%s3218_s0 + $0x40] sm:$0xff] }
  0x45   :  { %1810 = vmatpush3.bf16.msra.mxu0 %v1809_v21  ;;  %758 = vmatprep.mubr.f32.mxu0 %v31_v34  ;;  %v1861_v21 = vpack.c.bf16 %v216_v15, %v215_v13  ;;  %v288_v55 = vld [vmem:[%s3217_s1 + $0x798] sm:$0xff]  ;;  %v32_v58 = vld [vmem:[%s3218_s0 + $0x50] sm:$0xff]  ;;  %v258_v3 = vld [vmem:[%s3217_s1 + $0x6a8] sm:$0xff] }
  0x46   :  { %689 = vmatmul.mubr.f32.vlgmr.msra.gmra.mrb[2].mxu1 %v28_v22  ;;  %1812 = vmatprep.subr.bf16.mxu0 %v1811_v24  ;;  %v1831_v22 = vpack.c.bf16 %v202_v17, %v201_v16  ;;  %v186_v24 = vld [vmem:[%s3217_s1 + $0x468] sm:$0xff]  ;;  %v271_v63 = vld [vmem:[%s3217_s1 + $0x710] sm:$0xff]  ;;  %v272_v1 = vld [vmem:[%s3217_s1 + $0x718] sm:$0xff] }
  0x47   :  { %1842 = vmatpush3.bf16.msra.mxu1 %v1841_v23  ;;  %828 = vmatprep.mubr.f32.mxu1 %v33_v36  ;;  %v185_v23 = vld [vmem:[%s3217_s1 + $0x460] sm:$0xff]  ;;  %v188_v36 = vld [vmem:[%s3217_s1 + $0x478] sm:$0xff]  ;;  %v290_v5 = vld [vmem:[%s3217_s1 + $0x7a8] sm:$0xff] }
  0x48   :  { %1844 = vmatprep.subr.bf16.mxu1 %v1843_v28  ;;  %v203_v28 = vld [vmem:[%s3217_s1 + $0x4f0] sm:$0xff]  ;;  %v1833_v32 = vpack.c.bf16 %v186_v24, %v185_v23  ;;  %v289_v4 = vld [vmem:[%s3217_s1 + $0x7a0] sm:$0xff]  ;;  %v35_v6 = vld [vmem:[%s3218_s0 + $0x68] sm:$0xff] }
  0x49   :  { %1814 = vmatpush3.bf16.msra.mxu0 %v1813_v35  ;;  %v1835_v34 = vpack.c.bf16 %v204_v29, %v203_v28  ;;  %v187_v35 = vld [vmem:[%s3217_s1 + $0x470] sm:$0xff]  ;;  %v241_v11 = vld [vmem:[%s3217_s1 + $0x620] sm:$0xff]  ;;  %v242_v12 = vld [vmem:[%s3217_s1 + $0x628] sm:$0xff] }
  0x4a   :  { %1816 = vmatprep.subr.bf16.mxu0 %v1815_v38  ;;  %v1867_v38 = vpack.c.bf16 %v236_v31, %v235_v30  ;;  %v1837_v44 = vpack.c.bf16 %v188_v36, %v187_v35  ;;  %v273_v13 = vld [vmem:[%s3217_s1 + $0x720] sm:$0xff]  ;;  %v274_v15 = vld [vmem:[%s3217_s1 + $0x728] sm:$0xff]  ;;  %v259_v16 = vld [vmem:[%s3217_s1 + $0x6b0] sm:$0xff] }
  0x4b   :  { %1846 = vmatpush3.bf16.msra.mxu1 %v1845_v37  ;;  %v219_v37 = vld [vmem:[%s3217_s1 + $0x570] sm:$0xff]  ;;  %v260_v17 = vld [vmem:[%s3217_s1 + $0x6b8] sm:$0xff]  ;;  %v261_v28 = vld [vmem:[%s3217_s1 + $0x6c0] sm:$0xff] }
  0x4c   :  { %1848 = vmatprep.subr.bf16.mxu1 %v1847_v42  ;;  %v285_v42 = vld [vmem:[%s3217_s1 + $0x780] sm:$0xff]  ;;  %v1869_v45 = vpack.c.bf16 %v220_v39, %v219_v37  ;;  %v291_v18 = vld [vmem:[%s3217_s1 + $0x7b0] sm:$0xff]  ;;  %v292_v19 = vld [vmem:[%s3217_s1 + $0x7b8] sm:$0xff] }
  0x4d   :  { %1818 = vmatpush3.bf16.msra.mxu0 %v1817_v48  ;;  %v238_v48 = vld [vmem:[%s3217_s1 + $0x608] sm:$0xff]  ;;  %v243_v23 = vld [vmem:[%s3217_s1 + $0x630] sm:$0xff]  ;;  %v244_v24 = vld [vmem:[%s3217_s1 + $0x638] sm:$0xff] }
  0x4e   :  { %1820 = vmatprep.subr.bf16.mxu0 %v1819_v50  ;;  %v1903_v50 = vpack.c.bf16 %v286_v43, %v285_v42  ;;  %v1873_v57 = vpack.c.bf16 %v238_v48, %v237_v47  ;;  %v275_v25 = vld [vmem:[%s3217_s1 + $0x730] sm:$0xff]  ;;  %v276_v27 = vld [vmem:[%s3217_s1 + $0x738] sm:$0xff]  ;;  %v262_v29 = vld [vmem:[%s3217_s1 + $0x6c8] sm:$0xff] }
  0x4f   :  { %1850 = vmatpush3.bf16.msra.mxu1 %v1849_v49  ;;  %v269_v49 = vld [vmem:[%s3217_s1 + $0x700] sm:$0xff]  ;;  %v294_v31 = vld [vmem:[%s3217_s1 + $0x7c8] sm:$0xff]  ;;  %v263_v40 = vld [vmem:[%s3217_s1 + $0x6d0] sm:$0xff] }
  0x50   :  { %1852 = vmatprep.subr.bf16.mxu1 %v1851_v54  ;;  %v287_v54 = vld [vmem:[%s3217_s1 + $0x790] sm:$0xff]  ;;  %v1905_v59 = vpack.c.bf16 %v270_v51, %v269_v49  ;;  %v293_v30 = vld [vmem:[%s3217_s1 + $0x7c0] sm:$0xff]  ;;  %v246_v36 = vld [vmem:[%s3217_s1 + $0x648] sm:$0xff] }
  0x51   :  { %1822 = vmatpush3.bf16.msra.mxu0 %v1821_v60  ;;  %v1875_v60 = vpack.c.bf16 %v256_v53, %v255_v52  ;;  %v1907_v0 = vpack.c.bf16 %v288_v55, %v287_v54  ;;  %v245_v35 = vld [vmem:[%s3217_s1 + $0x640] sm:$0xff]  ;;  %v278_v39 = vld [vmem:[%s3217_s1 + $0x748] sm:$0xff]  ;;  %v264_v41 = vld [vmem:[%s3217_s1 + $0x6d8] sm:$0xff] }
  0x52   :  { %1824 = vmatprep.subr.bf16.mxu0 %v1823_v62  ;;  %v240_v62 = vld [vmem:[%s3217_s1 + $0x618] sm:$0xff]  ;;  %v277_v37 = vld [vmem:[%s3217_s1 + $0x740] sm:$0xff]  ;;  %v295_v42 = vld [vmem:[%s3217_s1 + $0x7d0] sm:$0xff] }
  0x53   :  { %1854 = vmatpush3.bf16.msra.mxu1 %v1853_v61  ;;  %v239_v61 = vld [vmem:[%s3217_s1 + $0x610] sm:$0xff]  ;;  %v296_v43 = vld [vmem:[%s3217_s1 + $0x7d8] sm:$0xff]  ;;  %v265_v52 = vld [vmem:[%s3217_s1 + $0x6e0] sm:$0xff] }
  0x54   :  { %1856 = vmatprep.subr.bf16.mxu1 %v1855_v2  ;;  %v257_v2 = vld [vmem:[%s3217_s1 + $0x6a0] sm:$0xff]  ;;  %v1877_v7 = vpack.c.bf16 %v240_v62, %v239_v61  ;;  %v247_v47 = vld [vmem:[%s3217_s1 + $0x650] sm:$0xff]  ;;  %v248_v48 = vld [vmem:[%s3217_s1 + $0x658] sm:$0xff] }
  0x55   :  { %1826 = vmatpush3.bf16.msra.mxu0 %v1825_v8  ;;  %v37_v8 = vld [vmem:[%s3218_s0 + $0x78] sm:$0xff]  ;;  %v279_v49 = vld [vmem:[%s3217_s1 + $0x750] sm:$0xff]  ;;  %v266_v53 = vld [vmem:[%s3217_s1 + $0x6e8] sm:$0xff] }
  0x56   :  { %1828 = vmatprep.subr.bf16.mxu0 %v1827_v10  ;;  %v1879_v10 = vpack.c.bf16 %v258_v3, %v257_v2  ;;  %v280_v51 = vld [vmem:[%s3217_s1 + $0x758] sm:$0xff]  ;;  %v297_v54 = vld [vmem:[%s3217_s1 + $0x7e0] sm:$0xff]  ;;  %v298_v55 = vld [vmem:[%s3217_s1 + $0x7e8] sm:$0xff] }
  0x57   :  { %1858 = vmatpush3.bf16.msra.mxu1 %v1857_v9  ;;  %v1909_v9 = vpack.c.bf16 %v272_v1, %v271_v63  ;;  %v281_v61 = vld [vmem:[%s3217_s1 + $0x760] sm:$0xff]  ;;  %v1927_v62 = vpack.c.bf16 %v298_v55, %v297_v54  ;;  %v282_v63 = vld [vmem:[%s3217_s1 + $0x768] sm:$0xff]  ;;  %v268_v1 = vld [vmem:[%s3217_s1 + $0x6f8] sm:$0xff] }
  0x58   :  { %1860 = vmatprep.subr.bf16.mxu1 %v1859_v14  ;;  %v1911_v14 = vpack.c.bf16 %v290_v5, %v289_v4  ;;  %v299_v2 = vld [vmem:[%s3217_s1 + $0x7f0] sm:$0xff]  ;;  %v300_v3 = vld [vmem:[%s3217_s1 + $0x7f8] sm:$0xff]  ;;  %v1929_v5 = vpack.c.bf16 %v282_v63, %v281_v61  ;;  %vm2033_vm2 = vmpackc.low %vm410_vm0, %vm2040_vm1 }
  0x59   :  { %1830 = vmatpush3.bf16.msra.mxu0 %v1829_v20  ;;  %v1881_v20 = vpack.c.bf16 %v242_v12, %v241_v11  ;;  %v284_v11 = vld [vmem:[%s3217_s1 + $0x778] sm:$0xff]  ;;  %v317_v12 = vld [vmem:[%s3217_s1 + $0x880] sm:$0xff]  ;;  %v355_v54 = vld [vmem:[%s3217_s1 + $0x9b0] sm:$0xff] }
  0x5a   :  { %1832 = vmatprep.subr.bf16.mxu0 %v1831_v22  ;;  %v1883_v22 = vpack.c.bf16 %v260_v17, %v259_v16  ;;  %v356_v55 = vld [vmem:[%s3217_s1 + $0x9b8] sm:$0xff]  ;;  %v339_v61 = vld [vmem:[%s3217_s1 + $0x930] sm:$0xff] }
  0x5b   :  { %1862 = vmatpush3.bf16.msra.mxu1 %v1861_v21  ;;  %v1913_v21 = vpack.c.bf16 %v274_v15, %v273_v13  ;;  %v318_v13 = vld [vmem:[%s3217_s1 + $0x888] sm:$0xff]  ;;  %v340_v63 = vld [vmem:[%s3217_s1 + $0x938] sm:$0xff] }
  0x5c   :  { %1864 = vmatprep.subr.bf16.mxu1 %v1863_v26  ;;  %v1915_v26 = vpack.c.bf16 %v292_v19, %v291_v18  ;;  %v350_v15 = vld [vmem:[%s3217_s1 + $0x988] sm:$0xff]  ;;  %v1935_v18 = vpack.c.bf16 %v318_v13, %v317_v12  ;;  %v301_v19 = vld [vmem:[%s3217_s1 + $0x800] sm:$0xff]  ;;  %v327_v12 = vld [vmem:[%s3217_s1 + $0x8d0] sm:$0xff] }
  0x5d   :  { %1834 = vmatpush3.bf16.msra.mxu0 %v1833_v32  ;;  %v1885_v32 = vpack.c.bf16 %v244_v24, %v243_v23  ;;  %v334_v23 = vld [vmem:[%s3217_s1 + $0x908] sm:$0xff]  ;;  %v319_v24 = vld [vmem:[%s3217_s1 + $0x890] sm:$0xff]  ;;  %v328_v13 = vld [vmem:[%s3217_s1 + $0x8d8] sm:$0xff] }
  0x5e   :  { %1836 = vmatprep.subr.bf16.mxu0 %v1835_v34  ;;  %v1887_v34 = vpack.c.bf16 %v262_v29, %v261_v28  ;;  %v34_v28 = vld [vmem:[%s3218_s0 + $0x60] sm:$0xff] }
  0x5f   :  { %1866 = vmatpush3.bf16.msra.mxu1 %v1865_v33  ;;  %v1917_v33 = vpack.c.bf16 %v276_v27, %v275_v25  ;;  %v320_v25 = vld [vmem:[%s3217_s1 + $0x898] sm:$0xff] }
  0x60   :  { %1868 = vmatprep.subr.bf16.mxu1 %v1867_v38  ;;  %v1919_v38 = vpack.c.bf16 %v294_v31, %v293_v30  ;;  %v352_v27 = vld [vmem:[%s3217_s1 + $0x998] sm:$0xff]  ;;  %v36_v30 = vld [vmem:[%s3218_s0 + $0x70] sm:$0xff] }
  0x61   :  { %1838 = vmatpush3.bf16.msra.mxu0 %v1837_v44  ;;  %v1889_v44 = vpack.c.bf16 %v246_v36, %v245_v35  ;;  %v335_v35 = vld [vmem:[%s3217_s1 + $0x910] sm:$0xff] }
  0x62   :  { %1872 = vmatprep.subr.bf16.mxu0 %v1871_v46  ;;  %v1891_v46 = vpack.c.bf16 %v264_v41, %v263_v40  ;;  %v353_v40 = vld [vmem:[%s3217_s1 + $0x9a0] sm:$0xff]  ;;  %v354_v41 = vld [vmem:[%s3217_s1 + $0x9a8] sm:$0xff] }
  0x63   :  { %1870 = vmatpush3.bf16.msra.mxu1 %v1869_v45  ;;  %v1921_v45 = vpack.c.bf16 %v278_v39, %v277_v37  ;;  %v336_v37 = vld [vmem:[%s3217_s1 + $0x918] sm:$0xff]  ;;  %v322_v39 = vld [vmem:[%s3217_s1 + $0x8a8] sm:$0xff] }
  0x64   :  { %1904 = vmatprep.subr.bf16.mxu1 %v1903_v50  ;;  %759 = vmatmul.mubr.f32.vlgmr.msra.gmra.mrb[4].mxu0 %v30_v56  ;;  %v1923_v50 = vpack.c.bf16 %v296_v43, %v295_v42  ;;  %v1893_v56 = vpack.c.bf16 %v248_v48, %v247_v47  ;;  %v39_v42 = vld [vmem:[%s3218_s0 + $0x88] sm:$0xff]  ;;  %v305_v47 = vld [vmem:[%s3217_s1 + $0x820] sm:$0xff] }
  0x65   :  { %1874 = vmatpush3.bf16.msra.mxu0 %v1873_v57  ;;  %898 = vmatprep.mubr.f32.mxu0 %v35_v6  ;;  %v1925_v57 = vpack.c.bf16 %v280_v51, %v279_v49  ;;  %v306_v48 = vld [vmem:[%s3217_s1 + $0x828] sm:$0xff]  ;;  %v337_v49 = vld [vmem:[%s3217_s1 + $0x920] sm:$0xff] }
  0x66   :  { %829 = vmatmul.mubr.f32.vlgmr.msra.gmra.mrb[4].mxu1 %v32_v58  ;;  %1876 = vmatprep.subr.bf16.mxu0 %v1875_v60  ;;  %v1895_v58 = vpack.c.bf16 %v266_v53, %v265_v52  ;;  %v250_v60 = vld [vmem:[%s3217_s1 + $0x668] sm:$0xff]  ;;  %v323_v52 = vld [vmem:[%s3217_s1 + $0x8b0] sm:$0xff]  ;;  %v324_v53 = vld [vmem:[%s3217_s1 + $0x8b8] sm:$0xff] }
  0x67   :  { %1906 = vmatpush3.bf16.msra.mxu1 %v1905_v59  ;;  %968 = vmatprep.mubr.f32.mxu1 %v37_v8  ;;  %v249_v59 = vld [vmem:[%s3217_s1 + $0x660] sm:$0xff]  ;;  %v252_v8 = vld [vmem:[%s3217_s1 + $0x678] sm:$0xff]  ;;  %v338_v51 = vld [vmem:[%s3217_s1 + $0x928] sm:$0xff] }
  0x68   :  { %1908 = vmatprep.subr.bf16.mxu1 %v1907_v0  ;;  %v267_v0 = vld [vmem:[%s3217_s1 + $0x6f0] sm:$0xff]  ;;  %v1897_v4 = vpack.c.bf16 %v250_v60, %v249_v59  ;;  %v308_v60 = vld [vmem:[%s3217_s1 + $0x838] sm:$0xff] }
  0x69   :  { %1878 = vmatpush3.bf16.msra.mxu0 %v1877_v7  ;;  %v1899_v6 = vpack.c.bf16 %v268_v1, %v267_v0  ;;  %v251_v7 = vld [vmem:[%s3217_s1 + $0x670] sm:$0xff]  ;;  %v325_v0 = vld [vmem:[%s3217_s1 + $0x8c0] sm:$0xff]  ;;  %v326_v1 = vld [vmem:[%s3217_s1 + $0x8c8] sm:$0xff] }
  0x6a   :  { %1880 = vmatprep.subr.bf16.mxu0 %v1879_v10  ;;  %v1931_v10 = vpack.c.bf16 %v300_v3, %v299_v2  ;;  %v1901_v16 = vpack.c.bf16 %v252_v8, %v251_v7  ;;  %v307_v59 = vld [vmem:[%s3217_s1 + $0x830] sm:$0xff]  ;;  %v357_v2 = vld [vmem:[%s3217_s1 + $0x9c0] sm:$0xff]  ;;  %v358_v3 = vld [vmem:[%s3217_s1 + $0x9c8] sm:$0xff] }
  0x6b   :  { %1910 = vmatpush3.bf16.msra.mxu1 %v1909_v9  ;;  %v283_v9 = vld [vmem:[%s3217_s1 + $0x770] sm:$0xff]  ;;  %v309_v7 = vld [vmem:[%s3217_s1 + $0x840] sm:$0xff]  ;;  %v310_v8 = vld [vmem:[%s3217_s1 + $0x848] sm:$0xff] }
  0x6c   :  { %1912 = vmatprep.subr.bf16.mxu1 %v1911_v14  ;;  %v349_v14 = vld [vmem:[%s3217_s1 + $0x980] sm:$0xff]  ;;  %v1933_v17 = vpack.c.bf16 %v284_v11, %v283_v9  ;;  %v342_v11 = vld [vmem:[%s3217_s1 + $0x948] sm:$0xff] }
  0x6d   :  { %1882 = vmatpush3.bf16.msra.mxu0 %v1881_v20  ;;  %v302_v20 = vld [vmem:[%s3217_s1 + $0x808] sm:$0xff]  ;;  %v341_v9 = vld [vmem:[%s3217_s1 + $0x940] sm:$0xff] }
  0x6e   :  { %1884 = vmatprep.subr.bf16.mxu0 %v1883_v22  ;;  %v1967_v22 = vpack.c.bf16 %v350_v15, %v349_v14  ;;  %v1937_v29 = vpack.c.bf16 %v302_v20, %v301_v19  ;;  %v359_v14 = vld [vmem:[%s3217_s1 + $0x9d0] sm:$0xff]  ;;  %v360_v15 = vld [vmem:[%s3217_s1 + $0x9d8] sm:$0xff] }
  0x6f   :  { %1914 = vmatpush3.bf16.msra.mxu1 %v1913_v21  ;;  %v333_v21 = vld [vmem:[%s3217_s1 + $0x900] sm:$0xff]  ;;  %v311_v19 = vld [vmem:[%s3217_s1 + $0x850] sm:$0xff]  ;;  %v312_v20 = vld [vmem:[%s3217_s1 + $0x858] sm:$0xff] }
  0x70   :  { %1916 = vmatprep.subr.bf16.mxu1 %v1915_v26  ;;  %v351_v26 = vld [vmem:[%s3217_s1 + $0x990] sm:$0xff]  ;;  %v1969_v31 = vpack.c.bf16 %v334_v23, %v333_v21  ;;  %v344_v23 = vld [vmem:[%s3217_s1 + $0x958] sm:$0xff] }
  0x71   :  { %1886 = vmatpush3.bf16.msra.mxu0 %v1885_v32  ;;  %v1939_v32 = vpack.c.bf16 %v320_v25, %v319_v24  ;;  %v1971_v36 = vpack.c.bf16 %v352_v27, %v351_v26  ;;  %v343_v21 = vld [vmem:[%s3217_s1 + $0x950] sm:$0xff]  ;;  %v329_v24 = vld [vmem:[%s3217_s1 + $0x8e0] sm:$0xff]  ;;  %v330_v25 = vld [vmem:[%s3217_s1 + $0x8e8] sm:$0xff] }
  0x72   :  { %1888 = vmatprep.subr.bf16.mxu0 %v1887_v34  ;;  %v304_v34 = vld [vmem:[%s3217_s1 + $0x818] sm:$0xff]  ;;  %v361_v26 = vld [vmem:[%s3217_s1 + $0x9e0] sm:$0xff]  ;;  %v362_v27 = vld [vmem:[%s3217_s1 + $0x9e8] sm:$0xff] }
  0x73   :  { %1918 = vmatpush3.bf16.msra.mxu1 %v1917_v33  ;;  %v303_v33 = vld [vmem:[%s3217_s1 + $0x810] sm:$0xff] }
  0x74   :  { %1920 = vmatprep.subr.bf16.mxu1 %v1919_v38  ;;  %v321_v38 = vld [vmem:[%s3217_s1 + $0x8a0] sm:$0xff]  ;;  %v1941_v43 = vpack.c.bf16 %v304_v34, %v303_v33  ;;  %v1991_v34 = vpack.c.bf16 %v362_v27, %v361_v26 }
  0x75   :  { %1890 = vmatpush3.bf16.msra.mxu0 %v1889_v44  ;;  %v41_v44 = vld [vmem:[%s3218_s0 + $0x98] sm:$0xff]  ;;  %v345_v33 = vld [vmem:[%s3217_s1 + $0x960] sm:$0xff] }
  0x76   :  { %1892 = vmatprep.subr.bf16.mxu0 %v1891_v46  ;;  %v1943_v46 = vpack.c.bf16 %v322_v39, %v321_v38  ;;  %v363_v38 = vld [vmem:[%s3217_s1 + $0x9f0] sm:$0xff]  ;;  %v364_v39 = vld [vmem:[%s3217_s1 + $0x9f8] sm:$0xff] }
  0x77   :  { %1922 = vmatpush3.bf16.msra.mxu1 %v1921_v45  ;;  %v1973_v45 = vpack.c.bf16 %v336_v37, %v335_v35  ;;  %v346_v35 = vld [vmem:[%s3217_s1 + $0x968] sm:$0xff]  ;;  %v332_v37 = vld [vmem:[%s3217_s1 + $0x8f8] sm:$0xff] }
  0x78   :  { %1924 = vmatprep.subr.bf16.mxu1 %v1923_v50  ;;  %v1975_v50 = vpack.c.bf16 %v354_v41, %v353_v40  ;;  %v1993_v41 = vpack.c.bf16 %v346_v35, %v345_v33  ;;  %v378_v35 = vld [vmem:[%s3217_s1 + $0xa68] sm:$0xff] }
  0x79   :  { %1894 = vmatpush3.bf16.msra.mxu0 %v1893_v56  ;;  %v1945_v56 = vpack.c.bf16 %v306_v48, %v305_v47  ;;  %v348_v47 = vld [vmem:[%s3217_s1 + $0x978] sm:$0xff]  ;;  %v381_v48 = vld [vmem:[%s3217_s1 + $0xa80] sm:$0xff] }
  0x7a   :  { %1896 = vmatprep.subr.bf16.mxu0 %v1895_v58  ;;  %v1947_v58 = vpack.c.bf16 %v324_v53, %v323_v52  ;;  %v365_v53 = vld [vmem:[%s3217_s1 + $0xa00] sm:$0xff] }
  0x7b   :  { %1926 = vmatpush3.bf16.msra.mxu1 %v1925_v57  ;;  %v1977_v57 = vpack.c.bf16 %v338_v51, %v337_v49  ;;  %v382_v49 = vld [vmem:[%s3217_s1 + $0xa88] sm:$0xff] }
  0x7c   :  { %1928 = vmatprep.subr.bf16.mxu1 %v1927_v62  ;;  %v1979_v62 = vpack.c.bf16 %v356_v55, %v355_v54  ;;  %v1999_v52 = vpack.c.bf16 %v382_v49, %v381_v48  ;;  %v366_v54 = vld [vmem:[%s3217_s1 + $0xa08] sm:$0xff]  ;;  %v383_v55 = vld [vmem:[%s3217_s1 + $0xa90] sm:$0xff] }
  0x7d   :  { %1898 = vmatpush3.bf16.msra.mxu0 %v1897_v4  ;;  %v1949_v4 = vpack.c.bf16 %v308_v60, %v307_v59  ;;  %v38_v59 = vld [vmem:[%s3218_s0 + $0x80] sm:$0xff]  ;;  %v2001_v60 = vpack.c.bf16 %v366_v54, %v365_v53 }
  0x7e   :  { %1900 = vmatprep.subr.bf16.mxu0 %v1899_v6  ;;  %v1951_v6 = vpack.c.bf16 %v326_v1, %v325_v0  ;;  %v368_v0 = vld [vmem:[%s3217_s1 + $0xa18] sm:$0xff]  ;;  %v385_v1 = vld [vmem:[%s3217_s1 + $0xaa0] sm:$0xff] }
  0x7f   :  { %1930 = vmatpush3.bf16.msra.mxu1 %v1929_v5  ;;  %v1981_v5 = vpack.c.bf16 %v340_v63, %v339_v61  ;;  %v40_v61 = vld [vmem:[%s3218_s0 + $0x90] sm:$0xff] }
  0x80   :  { %1932 = vmatprep.subr.bf16.mxu1 %v1931_v10  ;;  %v1983_v10 = vpack.c.bf16 %v358_v3, %v357_v2  ;;  %v367_v63 = vld [vmem:[%s3217_s1 + $0xa10] sm:$0xff]  ;;  %v386_v2 = vld [vmem:[%s3217_s1 + $0xaa8] sm:$0xff] }
  0x81   :  { %1902 = vmatpush3.bf16.msra.mxu0 %v1901_v16  ;;  %v1953_v16 = vpack.c.bf16 %v310_v8, %v309_v7  ;;  %v43_v3 = vld [vmem:[%s3218_s0 + $0xa8] sm:$0xff]  ;;  %v2007_v7 = vpack.c.bf16 %v386_v2, %v385_v1  ;;  %v369_v8 = vld [vmem:[%s3217_s1 + $0xa20] sm:$0xff] }
  0x82   :  { %1936 = vmatprep.subr.bf16.mxu0 %v1935_v18  ;;  %v1955_v18 = vpack.c.bf16 %v328_v13, %v327_v12  ;;  %v2042_v12 = vmov 0.0   ;;  %v44_v13 = vld [vmem:[%s3218_s0 + $0xb0] sm:$0xff] }
  0x83   :  { %1934 = vmatpush3.bf16.msra.mxu1 %v1933_v17  ;;  %v1985_v17 = vpack.c.bf16 %v342_v11, %v341_v9  ;;  %v370_v9 = vld [vmem:[%s3217_s1 + $0xa28] sm:$0xff]  ;;  %v388_v11 = vld [vmem:[%s3217_s1 + $0xab8] sm:$0xff] }
  0x84   :  { %1968 = vmatprep.subr.bf16.mxu1 %v1967_v22  ;;  %899 = vmatmul.mubr.f32.vlgmr.msra.gmra.mrb[6].mxu0 %v34_v28  ;;  %v1987_v22 = vpack.c.bf16 %v360_v15, %v359_v14  ;;  %v1957_v28 = vpack.c.bf16 %v312_v20, %v311_v19  ;;  %v2009_v14 = vpack.c.bf16 %v370_v9, %v369_v8  ;;  %v390_v19 = vld [vmem:[%s3217_s1 + $0xac8] sm:$0xff] }
  0x85   :  { %1938 = vmatpush3.bf16.msra.mxu0 %v1937_v29  ;;  %1038 = vmatprep.mubr.f32.mxu0 %v39_v42  ;;  %v1989_v29 = vpack.c.bf16 %v344_v23, %v343_v21  ;;  %v374_v23 = vld [vmem:[%s3217_s1 + $0xa48] sm:$0xff] }
  0x86   :  { %969 = vmatmul.mubr.f32.vlgmr.msra.gmra.mrb[6].mxu1 %v36_v30  ;;  %1940 = vmatprep.subr.bf16.mxu0 %v1939_v32  ;;  %v1959_v30 = vpack.c.bf16 %v330_v25, %v329_v24  ;;  %v314_v32 = vld [vmem:[%s3217_s1 + $0x868] sm:$0xff]  ;;  %v391_v24 = vld [vmem:[%s3217_s1 + $0xad0] sm:$0xff]  ;;  %v392_v25 = vld [vmem:[%s3217_s1 + $0xad8] sm:$0xff] }
  0x87   :  { %1970 = vmatpush3.bf16.msra.mxu1 %v1969_v31  ;;  %1108 = vmatprep.mubr.f32.mxu1 %v41_v44  ;;  %v313_v31 = vld [vmem:[%s3217_s1 + $0x860] sm:$0xff]  ;;  %v316_v44 = vld [vmem:[%s3217_s1 + $0x878] sm:$0xff]  ;;  %v2019_v27 = vpack.c.bf16 %v392_v25, %v391_v24 }
  0x88   :  { %1972 = vmatprep.subr.bf16.mxu1 %v1971_v36  ;;  %v331_v36 = vld [vmem:[%s3217_s1 + $0x8f0] sm:$0xff]  ;;  %v1961_v40 = vpack.c.bf16 %v314_v32, %v313_v31  ;;  %v394_v31 = vld [vmem:[%s3217_s1 + $0xae8] sm:$0xff] }
  0x89   :  { %1942 = vmatpush3.bf16.msra.mxu0 %v1941_v43  ;;  %v1963_v42 = vpack.c.bf16 %v332_v37, %v331_v36  ;;  %v315_v43 = vld [vmem:[%s3217_s1 + $0x870] sm:$0xff]  ;;  %v396_v37 = vld [vmem:[%s3217_s1 + $0xaf8] sm:$0xff] }
  0x8a   :  { %1944 = vmatprep.subr.bf16.mxu0 %v1943_v46  ;;  %v1995_v46 = vpack.c.bf16 %v364_v39, %v363_v38  ;;  %v395_v36 = vld [vmem:[%s3217_s1 + $0xaf0] sm:$0xff] }
  0x8b   :  { %1974 = vmatpush3.bf16.msra.mxu1 %v1973_v45  ;;  %v347_v45 = vld [vmem:[%s3217_s1 + $0x970] sm:$0xff]  ;;  %v2027_v39 = vpack.c.bf16 %v396_v37, %v395_v36 }
  0x8c   :  { %1976 = vmatprep.subr.bf16.mxu1 %v1975_v50  ;;  %v1965_v50 = vpack.c.bf16 %v316_v44, %v315_v43  ;;  %v1997_v51 = vpack.c.bf16 %v348_v47, %v347_v45  ;;  %v42_v43 = vld [vmem:[%s3218_s0 + $0xa0] sm:$0xff] }
  0x8d   :  { %1946 = vmatpush3.bf16.msra.mxu0 %v1945_v56  ;;  %v384_v56 = vld [vmem:[%s3217_s1 + $0xa98] sm:$0xff]  ;;  %v1279_v45 = vld [vmem:[%s3219_s2] ss:$0 sm:$0xff] }
  0x8e   :  { %1948 = vmatprep.subr.bf16.mxu0 %v1947_v58  ;;  %v398_v58 = vld [vmem:[%s3217_s1 + $0xb08] sm:$0xf] }
  0x8f   :  { %1978 = vmatpush3.bf16.msra.mxu1 %v1977_v57  ;;  %v397_v57 = vld [vmem:[%s3217_s1 + $0xb00] sm:$0xff] }
  0x90   :  { %1980 = vmatprep.subr.bf16.mxu1 %v1979_v62  ;;  %v2003_v62 = vpack.c.bf16 %v384_v56, %v383_v55 }
  0x91   :  { %1950 = vmatpush3.bf16.msra.mxu0 %v1949_v4  ;;  %v2039_v4 = vmov 0.0|0.0  }
  0x92   :  { %1952 = vmatprep.subr.bf16.mxu0 %v1951_v6  ;;  %v2005_v6 = vpack.c.bf16 %v368_v0, %v367_v63 }
  0x93   :  { %1982 = vmatpush3.bf16.msra.mxu1 %v1981_v5  ;;  %v2032_v5 = vpack.c.bf16 %v398_v58, %v397_v57 }
  0x94   :  { %1984 = vmatprep.subr.bf16.mxu1 %v1983_v10  ;;  %v387_v10 = vld [vmem:[%s3217_s1 + $0xab0] sm:$0xff] }
  0x95   :  { %1954 = vmatpush3.bf16.msra.mxu0 %v1953_v16  ;;  %v2011_v15 = vpack.c.bf16 %v388_v11, %v387_v10  ;;  %v371_v16 = vld [vmem:[%s3217_s1 + $0xa30] sm:$0xff] }
  0x96   :  { %1956 = vmatprep.subr.bf16.mxu0 %v1955_v18  ;;  %v389_v18 = vld [vmem:[%s3217_s1 + $0xac0] sm:$0xff] }
  0x97   :  { %1986 = vmatpush3.bf16.msra.mxu1 %v1985_v17  ;;  %v372_v17 = vld [vmem:[%s3217_s1 + $0xa38] sm:$0xff]  ;;  %v2015_v21 = vpack.c.bf16 %v390_v19, %v389_v18 }
  0x98   :  { %1988 = vmatprep.subr.bf16.mxu1 %v1987_v22  ;;  %v2013_v20 = vpack.c.bf16 %v372_v17, %v371_v16  ;;  %v373_v22 = vld [vmem:[%s3217_s1 + $0xa40] sm:$0xff] }
  0x99   :  { %1958 = vmatpush3.bf16.msra.mxu0 %v1957_v28  ;;  %v2017_v26 = vpack.c.bf16 %v374_v23, %v373_v22  ;;  %v375_v28 = vld [vmem:[%s3217_s1 + $0xa50] sm:$0xff] }
  0x9a   :  { %1960 = vmatprep.subr.bf16.mxu0 %v1959_v30  ;;  %v393_v30 = vld [vmem:[%s3217_s1 + $0xae0] sm:$0xff] }
  0x9b   :  { %1990 = vmatpush3.bf16.msra.mxu1 %v1989_v29  ;;  %v376_v29 = vld [vmem:[%s3217_s1 + $0xa58] sm:$0xff]  ;;  %v2023_v33 = vpack.c.bf16 %v394_v31, %v393_v30 }
  0x9c   :  { %1992 = vmatprep.subr.bf16.mxu1 %v1991_v34  ;;  %v2021_v32 = vpack.c.bf16 %v376_v29, %v375_v28  ;;  %v377_v34 = vld [vmem:[%s3217_s1 + $0xa60] sm:$0xff] }
  0x9d   :  { %1962 = vmatpush3.bf16.msra.mxu0 %v1961_v40  ;;  %v2025_v38 = vpack.c.bf16 %v378_v35, %v377_v34  ;;  %v379_v40 = vld [vmem:[%s3217_s1 + $0xa70] sm:$0xff]  ;;  %v1282_v29 = vld [vmem:[%s3221_s3] ss:$0 sm:$0xff] }
  0x9e   :  { %1964 = vmatprep.subr.bf16.mxu0 %v1963_v42 }
  0x9f   :  { %1994 = vmatpush3.bf16.msra.mxu1 %v1993_v41  ;;  %v380_v41 = vld [vmem:[%s3217_s1 + $0xa78] sm:$0xff] }
  0xa0   :  { %1996 = vmatprep.subr.bf16.mxu1 %v1995_v46  ;;  %v2029_v42 = vpack.c.bf16 %v380_v41, %v379_v40 }
  0xa1   :  { %1966 = vmatpush3.bf16.msra.mxu0 %v1965_v50 }
  0xa2   :  { %2000 = vmatprep.subr.bf16.mxu0 %v1999_v52 }
  0xa3   :  { %1998 = vmatpush3.bf16.msra.mxu1 %v1997_v51 }
  0xa4   :  { %2031 = vmatprep.subr.bf16.mxu1 %v2039_v4  ;;  %1039 = vmatmul.mubr.f32.vlgmr.msra.gmra.mrb[8].mxu0 %v38_v59 }
  0xa5   :  { %2002 = vmatpush3.bf16.msra.mxu0 %v2001_v60  ;;  %1178 = vmatprep.mubr.f32.mxu0 %v43_v3 }
  0xa6   :  { %1109 = vmatmul.mubr.f32.vlgmr.msra.gmra.mrb[8].mxu1 %v40_v61  ;;  %2004 = vmatprep.subr.bf16.mxu0 %v2003_v62  ;;  %v10_v61 = vstv %s3220_s4 }
  0xa7   :  { %2034 = vmatpush3.bf16.msk.msra.mxu1 %vm2033_vm2, %v2032_v5  ;;  %1676 = vmatprep.mubr.msk.f32.mxu1 %vm2041_vm3, %v2042_v12  ;;  %11 = vst [vmem:[#allocation2] sm:$0x1] %v10_v61 }
  0xa9   :  { %2006 = vmatpush3.bf16.msra.mxu0 %v2005_v6 }
  0xaa   :  { %2008 = vmatprep.subr.bf16.mxu0 %v2007_v7  ;;  %1677 = vmatmul.mubr.msk.f32.vlgmr.msra.gmra.mrb[10].mxu1 %vm406_vm4, %v44_v13 }
  0xad   :  { %2010 = vmatpush3.bf16.msra.mxu0 %v2009_v14 }
  0xae   :  { %2012 = vmatprep.subr.bf16.mxu0 %v2011_v15 }
  0xb1   :  { %2014 = vmatpush3.bf16.msra.mxu0 %v2013_v20 }
  0xb2   :  { %2016 = vmatprep.subr.bf16.mxu0 %v2015_v21 }
  0xb5   :  { %2018 = vmatpush3.bf16.msra.mxu0 %v2017_v26 }
  0xb6   :  { %2020 = vmatprep.subr.bf16.mxu0 %v2019_v27 }
  0xb9   :  { %2022 = vmatpush3.bf16.msra.mxu0 %v2021_v32  ;;  %v1283_v32 = vld [vmem:[#allocation2] ss:$0 sm:$0xff] }
  0xba   :  { %2024 = vmatprep.subr.bf16.mxu0 %v2023_v33 }
  0xbd   :  { %2026 = vmatpush3.bf16.msra.mxu0 %v2025_v38 }
  0xbe   :  { %2028 = vmatprep.subr.bf16.mxu0 %v2027_v39 }
  0xc1   :  { %2030 = vmatpush3.bf16.msra.mxu0 %v2029_v42 }
  0xc4   :  { %1179 = vmatmul.mubr.f32.vlgmr.msra.gmra.mrb[10].mxu0 %v42_v43 }
  0xf7   :  { %v1316_v44 = vpop.f32.mrb[0].mxu0 }
  0xf8   :  { %v1317_v46 = vpop.f32.mrb[1].mxu0 }
  0xf9   :  { %v1351_v47 = vpop.f32.mrb[0].mxu1  ;;  %v1318_v48 = vadd.f32 %v1317_v46, %v1316_v44 }
  0xfa   :  { %v1352_v49 = vpop.f32.mrb[1].mxu1 }
  0xfb   :  { %v1353_v50 = vadd.f32 %v1352_v49, %v1351_v47  ;;  %v481_v51 = vadd.f32 %v1318_v48, %v1279_v45 }
  0xfd   :  { %v551_v52 = vadd.f32 %v1353_v50, %v481_v51 }
 0x117   :  { %v1386_v53 = vpop.f32.mrb[2].mxu0 }
 0x118   :  { %v1387_v54 = vpop.f32.mrb[3].mxu0 }
 0x119   :  { %v1421_v55 = vpop.f32.mrb[2].mxu1  ;;  %v1388_v56 = vadd.f32 %v1387_v54, %v1386_v53 }
 0x11a   :  { %v1422_v57 = vpop.f32.mrb[3].mxu1 }
 0x11b   :  { %v1423_v58 = vadd.f32 %v1422_v57, %v1421_v55  ;;  %v621_v59 = vadd.f32 %v1388_v56, %v551_v52 }
 0x11d   :  { %v691_v60 = vadd.f32 %v1423_v58, %v621_v59 }
 0x137   :  { %v1456_v62 = vpop.f32.mrb[4].mxu0 }
 0x138   :  { %v1457_v63 = vpop.f32.mrb[5].mxu0 }
 0x139   :  { %v1491_v0 = vpop.f32.mrb[4].mxu1  ;;  %v1458_v1 = vadd.f32 %v1457_v63, %v1456_v62 }
 0x13a   :  { %v1492_v2 = vpop.f32.mrb[5].mxu1 }
 0x13b   :  { %v1493_v3 = vadd.f32 %v1492_v2, %v1491_v0  ;;  %v761_v4 = vadd.f32 %v1458_v1, %v691_v60 }
 0x13d   :  { %v831_v5 = vadd.f32 %v1493_v3, %v761_v4 }
 0x157   :  { %v1526_v6 = vpop.f32.mrb[6].mxu0 }
 0x158   :  { %v1527_v7 = vpop.f32.mrb[7].mxu0 }
 0x159   :  { %v1561_v8 = vpop.f32.mrb[6].mxu1  ;;  %v1528_v9 = vadd.f32 %v1527_v7, %v1526_v6 }
 0x15a   :  { %v1562_v10 = vpop.f32.mrb[7].mxu1 }
 0x15b   :  { %v1563_v11 = vadd.f32 %v1562_v10, %v1561_v8  ;;  %v901_v12 = vadd.f32 %v1528_v9, %v831_v5 }
 0x15d   :  { %v971_v13 = vadd.f32 %v1563_v11, %v901_v12 }
 0x177   :  { %v1596_v14 = vpop.f32.mrb[8].mxu0 }
 0x178   :  { %v1597_v15 = vpop.f32.mrb[9].mxu0 }
 0x179   :  { %v1631_v16 = vpop.f32.mrb[8].mxu1  ;;  %v1598_v17 = vadd.f32 %v1597_v15, %v1596_v14 }
 0x17a   :  { %v1632_v18 = vpop.f32.mrb[9].mxu1 }
 0x17b   :  { %v1633_v19 = vadd.f32 %v1632_v18, %v1631_v16  ;;  %v1041_v20 = vadd.f32 %v1598_v17, %v971_v13 }
 0x17d   :  { %v1111_v21 = vadd.f32 %v1633_v19, %v1041_v20  ;;  %v1250_v22 = vpop.f32.mrb[10].mxu1 }
 0x17e   :  { %v1678_v23 = vpop.f32.mrb[11].mxu1 }
 0x197   :  { %v1666_v24 = vpop.f32.mrb[10].mxu0 }
 0x198   :  { %v1667_v25 = vpop.f32.mrb[11].mxu0 }
 0x199   :  { %v1668_v26 = vadd.f32 %v1667_v25, %v1666_v24 }
 0x19b   :  { %v1181_v27 = vadd.f32 %v1668_v26, %v1111_v21 }
 0x19d   :  { %v1251_v28 = vadd.f32 %v1250_v22, %v1181_v27 }
 0x19f   :  { %v1254_v30 = vmax.f32 %v1251_v28, 0.0 }
 0x1a1   :  { %v1262_v31 = vmul.f32 %v1282_v29, %v1254_v30 }
 0x1a3   :  { %1263 = vadd.xlane.f32.xlu0 %v1262_v31 }
 0x230   :  { %v1264_v33 = vpop.xlane.xlu0 %1263 }
 0x231   :  { %v1272_v34 = vadd.f32 %v1283_v32, %v1264_v33 }
 0x233   :  { %1274 = vst.msk [vmem:[%s3222_s5] sm:$0xff] %vm1273_vm5, %v1272_v34 }

// kernel: net_forward.2
= control target key start
LH: loop header
LB: loop body
LE: loop exit
PB: predicated region body
PF: predicated region fallthrough
CT: control target
= control target key end

     0   :  { %s5503_s18 = smov 0   ;;  %s5505_s19 = smov 0   ;;  %s8321_s0 = inlined_call_operand.vmem [shape: f32[2,896,35], index: 0, kind: input, shape index: {}]   ;;  %s8322_s1 = inlined_call_operand.vmem [shape: f32[35,14], index: 1, kind: input, shape index: {}]   ;;  %s8323_s2 = inlined_call_operand.vmem [shape: f32[1,14], index: 2, kind: input, shape index: {}]   ;;  %s8324_s3 = inlined_call_operand.vmem [shape: f32[28,70], index: 3, kind: input, shape index: {}]   ;;  %s8325_s4 = inlined_call_operand.vmem [shape: f32[28,1], index: 4, kind: input, shape index: {}]   ;;  %s8326_s5 = inlined_call_operand.vmem [shape: f32[8,28,101], index: 5, kind: output, shape index: {}]  }
   0x1   :  { %s5507_s20 = smov 0  }
   0x2 LB: > { %s3998_s21 = sadd.s32 4294967295, %s5466_s20   ;;  %s5520_s22 = sadd.s32 1, %s5466_s20   ;;  %s5466_s20 = sphi %s5507_s20, %s8582_s20   ;;  %s5462_s19 = sphi %s5505_s19, %s8581_s19   ;;  %s5458_s18 = sphi %s5503_s18, %s8580_s18  }
   0x3   : > { %s19_s23 = ssub.s32 %s5466_s20, %s5520_s22  ;;  %s22_s24 = sadd.s32 1, %s5462_s19 }
   0x4   : > { %p20_p0 = scmp.eq.s32.totalorder %s19_s23, 0  ;;  %p29_p1 = scmp.ne.s32.totalorder %s5462_s19, %s5458_s18 }
   0x5   : > { %p30_p2 = scmp.eq.s32.totalorder %s5466_s20, 0  ;;  %p4001_p4 = scmp.ge.s32.totalorder %s5466_s20, 2 }
   0x6   : > { %s5529_s25 = scalar_select %p20_p0, %s5462_s19, %s22_s24  }
   0x7   : > { %p31_p3 = por %p30_p2, %p29_p1  ;;  %177 = sbr.rel (%p4001_p4) target bundleno = 75 (0x4b), region = 32 }
   0xe   : > { %180 = sbr.rel (!%p31_p3) target bundleno = 75 (0x4b), region = 36  ;;  %s182_s26 = sand.u32 (%p31_p3), 1, %s5462_s19  }
   0xf   : > { %s4260_s27 = smul.u32 (%p31_p3), 448, %s5466_s20 }
  0x10   : > { %s4928_s28 = smul.u32 (%p31_p3), 896, %s182_s26 }
  0x11   : > { %s5537_s6 = scalar_lea.vmem (%p31_p3), %s8321_s0, %s4260_s27 }
  0x12   : > { %v437_v0 = vld [vmem:[%s5537_s6] sm:$0xff] (%p31_p3)  ;;  %v439_v1 = vld [vmem:[%s5537_s6 + $0x8] sm:$0xff] (%p31_p3)  ;;  %v441_v2 = vld [vmem:[%s5537_s6 + $0x10] sm:$0xff] (%p31_p3)  ;;  %s5542_s7 = scalar_lea.vmem (%p31_p3), [#allocation2], %s4928_s28 }
  0x13   : > { %438 = vst [vmem:[%s5542_s7] sm:$0xff] (%p31_p3), %v437_v0  ;;  %440 = vst [vmem:[%s5542_s7 + $0x8] sm:$0xff] (%p31_p3), %v439_v1  ;;  %v443_v3 = vld [vmem:[%s5537_s6 + $0x18] sm:$0xff] (%p31_p3)  ;;  %v445_v4 = vld [vmem:[%s5537_s6 + $0x20] sm:$0xff] (%p31_p3) }
  0x14   : > { %442 = vst [vmem:[%s5542_s7 + $0x10] sm:$0xff] (%p31_p3), %v441_v2  ;;  %v447_v5 = vld [vmem:[%s5537_s6 + $0x28] sm:$0xff] (%p31_p3)  ;;  %444 = vst [vmem:[%s5542_s7 + $0x18] sm:$0xff] (%p31_p3), %v443_v3  ;;  %v449_v6 = vld [vmem:[%s5537_s6 + $0x30] sm:$0xff] (%p31_p3) }
  0x15   : > { %446 = vst [vmem:[%s5542_s7 + $0x20] sm:$0xff] %v445_v4  ;;  %448 = vst [vmem:[%s5542_s7 + $0x28] sm:$0xff] %v447_v5  ;;  %v451_v7 = vld [vmem:[%s5537_s6 + $0x38] sm:$0xff]  ;;  %v453_v8 = vld [vmem:[%s5537_s6 + $0x40] sm:$0xff] }
  0x16   : > { %450 = vst [vmem:[%s5542_s7 + $0x30] sm:$0xff] %v449_v6  ;;  %452 = vst [vmem:[%s5542_s7 + $0x38] sm:$0xff] %v451_v7  ;;  %v455_v9 = vld [vmem:[%s5537_s6 + $0x48] sm:$0xff]  ;;  %v457_v10 = vld [vmem:[%s5537_s6 + $0x50] sm:$0xff] }
  0x17   : > { %454 = vst [vmem:[%s5542_s7 + $0x40] sm:$0xff] %v453_v8  ;;  %v459_v11 = vld [vmem:[%s5537_s6 + $0x58] sm:$0xff]  ;;  %456 = vst [vmem:[%s5542_s7 + $0x48] sm:$0xff] %v455_v9  ;;  %v461_v12 = vld [vmem:[%s5537_s6 + $0x60] sm:$0xff] }
  0x18   : > { %458 = vst [vmem:[%s5542_s7 + $0x50] sm:$0xff] %v457_v10  ;;  %460 = vst [vmem:[%s5542_s7 + $0x58] sm:$0xff] %v459_v11  ;;  %v463_v13 = vld [vmem:[%s5537_s6 + $0x68] sm:$0xff]  ;;  %v465_v14 = vld [vmem:[%s5537_s6 + $0x70] sm:$0xff] }
  0x19   : > { %462 = vst [vmem:[%s5542_s7 + $0x60] sm:$0xff] %v461_v12  ;;  %464 = vst [vmem:[%s5542_s7 + $0x68] sm:$0xff] %v463_v13  ;;  %v467_v15 = vld [vmem:[%s5537_s6 + $0x78] sm:$0xff]  ;;  %v469_v16 = vld [vmem:[%s5537_s6 + $0x80] sm:$0xff] }
  0x1a   : > { %466 = vst [vmem:[%s5542_s7 + $0x70] sm:$0xff] %v465_v14  ;;  %v471_v17 = vld [vmem:[%s5537_s6 + $0x88] sm:$0xff]  ;;  %468 = vst [vmem:[%s5542_s7 + $0x78] sm:$0xff] %v467_v15  ;;  %v473_v18 = vld [vmem:[%s5537_s6 + $0x90] sm:$0xff] }
  0x1b   : > { %470 = vst [vmem:[%s5542_s7 + $0x80] sm:$0xff] %v469_v16  ;;  %472 = vst [vmem:[%s5542_s7 + $0x88] sm:$0xff] %v471_v17  ;;  %v475_v19 = vld [vmem:[%s5537_s6 + $0x98] sm:$0xff]  ;;  %v477_v20 = vld [vmem:[%s5537_s6 + $0xa0] sm:$0xff] }
  0x1c   : > { %474 = vst [vmem:[%s5542_s7 + $0x90] sm:$0xff] %v473_v18  ;;  %476 = vst [vmem:[%s5542_s7 + $0x98] sm:$0xff] %v475_v19  ;;  %v479_v21 = vld [vmem:[%s5537_s6 + $0xa8] sm:$0xff]  ;;  %v481_v22 = vld [vmem:[%s5537_s6 + $0xb0] sm:$0xff] }
  0x1d   : > { %478 = vst [vmem:[%s5542_s7 + $0xa0] sm:$0xff] %v477_v20  ;;  %v483_v23 = vld [vmem:[%s5537_s6 + $0xb8] sm:$0xff]  ;;  %480 = vst [vmem:[%s5542_s7 + $0xa8] sm:$0xff] %v479_v21  ;;  %v485_v24 = vld [vmem:[%s5537_s6 + $0xc0] sm:$0xff] }
  0x1e   : > { %482 = vst [vmem:[%s5542_s7 + $0xb0] sm:$0xff] %v481_v22  ;;  %484 = vst [vmem:[%s5542_s7 + $0xb8] sm:$0xff] %v483_v23  ;;  %v487_v25 = vld [vmem:[%s5537_s6 + $0xc8] sm:$0xff]  ;;  %v489_v26 = vld [vmem:[%s5537_s6 + $0xd0] sm:$0xff] }
  0x1f   : > { %486 = vst [vmem:[%s5542_s7 + $0xc0] sm:$0xff] %v485_v24  ;;  %488 = vst [vmem:[%s5542_s7 + $0xc8] sm:$0xff] %v487_v25  ;;  %v491_v27 = vld [vmem:[%s5537_s6 + $0xd8] sm:$0xff]  ;;  %v493_v28 = vld [vmem:[%s5537_s6 + $0xe0] sm:$0xff] }
  0x20   : > { %490 = vst [vmem:[%s5542_s7 + $0xd0] sm:$0xff] %v489_v26  ;;  %v495_v29 = vld [vmem:[%s5537_s6 + $0xe8] sm:$0xff]  ;;  %492 = vst [vmem:[%s5542_s7 + $0xd8] sm:$0xff] %v491_v27  ;;  %v497_v30 = vld [vmem:[%s5537_s6 + $0xf0] sm:$0xff] }
  0x21   : > { %494 = vst [vmem:[%s5542_s7 + $0xe0] sm:$0xff] %v493_v28  ;;  %496 = vst [vmem:[%s5542_s7 + $0xe8] sm:$0xff] %v495_v29  ;;  %v499_v31 = vld [vmem:[%s5537_s6 + $0xf8] sm:$0xff]  ;;  %v501_v32 = vld [vmem:[%s5537_s6 + $0x100] sm:$0xff] }
  0x22   : > { %498 = vst [vmem:[%s5542_s7 + $0xf0] sm:$0xff] %v497_v30  ;;  %500 = vst [vmem:[%s5542_s7 + $0xf8] sm:$0xff] %v499_v31  ;;  %v503_v33 = vld [vmem:[%s5537_s6 + $0x108] sm:$0xff]  ;;  %v505_v34 = vld [vmem:[%s5537_s6 + $0x110] sm:$0xff] }
  0x23   : > { %502 = vst [vmem:[%s5542_s7 + $0x100] sm:$0xff] %v501_v32  ;;  %v507_v35 = vld [vmem:[%s5537_s6 + $0x118] sm:$0xff]  ;;  %504 = vst [vmem:[%s5542_s7 + $0x108] sm:$0xff] %v503_v33  ;;  %v509_v36 = vld [vmem:[%s5537_s6 + $0x120] sm:$0xff] }
  0x24   : > { %506 = vst [vmem:[%s5542_s7 + $0x110] sm:$0xff] %v505_v34  ;;  %508 = vst [vmem:[%s5542_s7 + $0x118] sm:$0xff] %v507_v35  ;;  %v511_v37 = vld [vmem:[%s5537_s6 + $0x128] sm:$0xff]  ;;  %v513_v38 = vld [vmem:[%s5537_s6 + $0x130] sm:$0xff] }
  0x25   : > { %510 = vst [vmem:[%s5542_s7 + $0x120] sm:$0xff] %v509_v36  ;;  %512 = vst [vmem:[%s5542_s7 + $0x128] sm:$0xff] %v511_v37  ;;  %v515_v39 = vld [vmem:[%s5537_s6 + $0x138] sm:$0xff]  ;;  %v517_v40 = vld [vmem:[%s5537_s6 + $0x140] sm:$0xff] }
  0x26   : > { %514 = vst [vmem:[%s5542_s7 + $0x130] sm:$0xff] %v513_v38  ;;  %v519_v41 = vld [vmem:[%s5537_s6 + $0x148] sm:$0xff]  ;;  %516 = vst [vmem:[%s5542_s7 + $0x138] sm:$0xff] %v515_v39  ;;  %v521_v42 = vld [vmem:[%s5537_s6 + $0x150] sm:$0xff] }
  0x27   : > { %518 = vst [vmem:[%s5542_s7 + $0x140] sm:$0xff] %v517_v40  ;;  %520 = vst [vmem:[%s5542_s7 + $0x148] sm:$0xff] %v519_v41  ;;  %v523_v43 = vld [vmem:[%s5537_s6 + $0x158] sm:$0xff]  ;;  %v525_v44 = vld [vmem:[%s5537_s6 + $0x160] sm:$0xff] }
  0x28   : > { %522 = vst [vmem:[%s5542_s7 + $0x150] sm:$0xff] %v521_v42  ;;  %524 = vst [vmem:[%s5542_s7 + $0x158] sm:$0xff] %v523_v43  ;;  %v527_v45 = vld [vmem:[%s5537_s6 + $0x168] sm:$0xff]  ;;  %v529_v46 = vld [vmem:[%s5537_s6 + $0x170] sm:$0xff] }
  0x29   : > { %526 = vst [vmem:[%s5542_s7 + $0x160] sm:$0xff] %v525_v44  ;;  %v531_v47 = vld [vmem:[%s5537_s6 + $0x178] sm:$0xff]  ;;  %528 = vst [vmem:[%s5542_s7 + $0x168] sm:$0xff] %v527_v45  ;;  %v533_v48 = vld [vmem:[%s5537_s6 + $0x180] sm:$0xff] }
  0x2a   : > { %530 = vst [vmem:[%s5542_s7 + $0x170] sm:$0xff] %v529_v46  ;;  %532 = vst [vmem:[%s5542_s7 + $0x178] sm:$0xff] %v531_v47  ;;  %v535_v49 = vld [vmem:[%s5537_s6 + $0x188] sm:$0xff]  ;;  %v537_v50 = vld [vmem:[%s5537_s6 + $0x190] sm:$0xff] }
  0x2b   : > { %534 = vst [vmem:[%s5542_s7 + $0x180] sm:$0xff] %v533_v48  ;;  %536 = vst [vmem:[%s5542_s7 + $0x188] sm:$0xff] %v535_v49  ;;  %v539_v51 = vld [vmem:[%s5537_s6 + $0x198] sm:$0xff]  ;;  %v541_v52 = vld [vmem:[%s5537_s6 + $0x1a0] sm:$0xff] }
  0x2c   : > { %538 = vst [vmem:[%s5542_s7 + $0x190] sm:$0xff] %v537_v50  ;;  %v543_v53 = vld [vmem:[%s5537_s6 + $0x1a8] sm:$0xff]  ;;  %540 = vst [vmem:[%s5542_s7 + $0x198] sm:$0xff] %v539_v51  ;;  %v545_v54 = vld [vmem:[%s5537_s6 + $0x1b0] sm:$0xff] }
  0x2d   : > { %542 = vst [vmem:[%s5542_s7 + $0x1a0] sm:$0xff] %v541_v52  ;;  %544 = vst [vmem:[%s5542_s7 + $0x1a8] sm:$0xff] %v543_v53  ;;  %v547_v55 = vld [vmem:[%s5537_s6 + $0x1b8] sm:$0xff]  ;;  %v549_v56 = vld [vmem:[%s5537_s6 + $0x380] sm:$0xff] }
  0x2e   : > { %546 = vst [vmem:[%s5542_s7 + $0x1b0] sm:$0xff] %v545_v54  ;;  %548 = vst [vmem:[%s5542_s7 + $0x1b8] sm:$0xff] %v547_v55  ;;  %v551_v57 = vld [vmem:[%s5537_s6 + $0x388] sm:$0xff]  ;;  %v553_v58 = vld [vmem:[%s5537_s6 + $0x390] sm:$0xff] }
  0x2f   : > { %550 = vst [vmem:[%s5542_s7 + $0x1c0] sm:$0xff] %v549_v56  ;;  %v555_v59 = vld [vmem:[%s5537_s6 + $0x398] sm:$0xff]  ;;  %552 = vst [vmem:[%s5542_s7 + $0x1c8] sm:$0xff] %v551_v57  ;;  %v557_v60 = vld [vmem:[%s5537_s6 + $0x3a0] sm:$0xff] }
  0x30   : > { %554 = vst [vmem:[%s5542_s7 + $0x1d0] sm:$0xff] %v553_v58  ;;  %556 = vst [vmem:[%s5542_s7 + $0x1d8] sm:$0xff] %v555_v59  ;;  %v559_v61 = vld [vmem:[%s5537_s6 + $0x3a8] sm:$0xff]  ;;  %v561_v62 = vld [vmem:[%s5537_s6 + $0x3b0] sm:$0xff] }
  0x31   : > { %558 = vst [vmem:[%s5542_s7 + $0x1e0] sm:$0xff] %v557_v60  ;;  %560 = vst [vmem:[%s5542_s7 + $0x1e8] sm:$0xff] %v559_v61  ;;  %v563_v63 = vld [vmem:[%s5537_s6 + $0x3b8] sm:$0xff]  ;;  %v565_v0 = vld [vmem:[%s5537_s6 + $0x3c0] sm:$0xff] }
  0x32   : > { %562 = vst [vmem:[%s5542_s7 + $0x1f0] sm:$0xff] %v561_v62  ;;  %v567_v1 = vld [vmem:[%s5537_s6 + $0x3c8] sm:$0xff]  ;;  %564 = vst [vmem:[%s5542_s7 + $0x1f8] sm:$0xff] %v563_v63  ;;  %v569_v2 = vld [vmem:[%s5537_s6 + $0x3d0] sm:$0xff] }
  0x33   : > { %566 = vst [vmem:[%s5542_s7 + $0x200] sm:$0xff] %v565_v0  ;;  %568 = vst [vmem:[%s5542_s7 + $0x208] sm:$0xff] %v567_v1  ;;  %v571_v3 = vld [vmem:[%s5537_s6 + $0x3d8] sm:$0xff]  ;;  %v573_v4 = vld [vmem:[%s5537_s6 + $0x3e0] sm:$0xff] }
  0x34   : > { %570 = vst [vmem:[%s5542_s7 + $0x210] sm:$0xff] %v569_v2  ;;  %572 = vst [vmem:[%s5542_s7 + $0x218] sm:$0xff] %v571_v3  ;;  %v575_v5 = vld [vmem:[%s5537_s6 + $0x3e8] sm:$0xff]  ;;  %v577_v6 = vld [vmem:[%s5537_s6 + $0x3f0] sm:$0xff] }
  0x35   : > { %574 = vst [vmem:[%s5542_s7 + $0x220] sm:$0xff] %v573_v4  ;;  %v579_v7 = vld [vmem:[%s5537_s6 + $0x3f8] sm:$0xff]  ;;  %576 = vst [vmem:[%s5542_s7 + $0x228] sm:$0xff] %v575_v5  ;;  %v581_v8 = vld [vmem:[%s5537_s6 + $0x400] sm:$0xff] }
  0x36   : > { %578 = vst [vmem:[%s5542_s7 + $0x230] sm:$0xff] %v577_v6  ;;  %580 = vst [vmem:[%s5542_s7 + $0x238] sm:$0xff] %v579_v7  ;;  %v583_v9 = vld [vmem:[%s5537_s6 + $0x408] sm:$0xff]  ;;  %v585_v10 = vld [vmem:[%s5537_s6 + $0x410] sm:$0xff] }
  0x37   : > { %582 = vst [vmem:[%s5542_s7 + $0x240] sm:$0xff] %v581_v8  ;;  %584 = vst [vmem:[%s5542_s7 + $0x248] sm:$0xff] %v583_v9  ;;  %v587_v11 = vld [vmem:[%s5537_s6 + $0x418] sm:$0xff]  ;;  %v589_v12 = vld [vmem:[%s5537_s6 + $0x420] sm:$0xff] }
  0x38   : > { %586 = vst [vmem:[%s5542_s7 + $0x250] sm:$0xff] %v585_v10  ;;  %v591_v13 = vld [vmem:[%s5537_s6 + $0x428] sm:$0xff]  ;;  %588 = vst [vmem:[%s5542_s7 + $0x258] sm:$0xff] %v587_v11  ;;  %v593_v14 = vld [vmem:[%s5537_s6 + $0x430] sm:$0xff] }
  0x39   : > { %590 = vst [vmem:[%s5542_s7 + $0x260] sm:$0xff] %v589_v12  ;;  %592 = vst [vmem:[%s5542_s7 + $0x268] sm:$0xff] %v591_v13  ;;  %v595_v15 = vld [vmem:[%s5537_s6 + $0x438] sm:$0xff]  ;;  %v597_v16 = vld [vmem:[%s5537_s6 + $0x440] sm:$0xff] }
  0x3a   : > { %594 = vst [vmem:[%s5542_s7 + $0x270] sm:$0xff] %v593_v14  ;;  %596 = vst [vmem:[%s5542_s7 + $0x278] sm:$0xff] %v595_v15  ;;  %v599_v17 = vld [vmem:[%s5537_s6 + $0x448] sm:$0xff]  ;;  %v601_v18 = vld [vmem:[%s5537_s6 + $0x450] sm:$0xff] }
  0x3b   : > { %598 = vst [vmem:[%s5542_s7 + $0x280] sm:$0xff] %v597_v16  ;;  %v603_v19 = vld [vmem:[%s5537_s6 + $0x458] sm:$0xff]  ;;  %600 = vst [vmem:[%s5542_s7 + $0x288] sm:$0xff] %v599_v17  ;;  %v605_v20 = vld [vmem:[%s5537_s6 + $0x460] sm:$0xff] }
  0x3c   : > { %602 = vst [vmem:[%s5542_s7 + $0x290] sm:$0xff] %v601_v18  ;;  %604 = vst [vmem:[%s5542_s7 + $0x298] sm:$0xff] %v603_v19  ;;  %v607_v21 = vld [vmem:[%s5537_s6 + $0x468] sm:$0xff]  ;;  %v609_v22 = vld [vmem:[%s5537_s6 + $0x470] sm:$0xff] }
  0x3d   : > { %606 = vst [vmem:[%s5542_s7 + $0x2a0] sm:$0xff] %v605_v20  ;;  %608 = vst [vmem:[%s5542_s7 + $0x2a8] sm:$0xff] %v607_v21  ;;  %v611_v23 = vld [vmem:[%s5537_s6 + $0x478] sm:$0xff]  ;;  %v613_v24 = vld [vmem:[%s5537_s6 + $0x480] sm:$0xff] }
  0x3e   : > { %610 = vst [vmem:[%s5542_s7 + $0x2b0] sm:$0xff] %v609_v22  ;;  %v615_v25 = vld [vmem:[%s5537_s6 + $0x488] sm:$0xff]  ;;  %612 = vst [vmem:[%s5542_s7 + $0x2b8] sm:$0xff] %v611_v23  ;;  %v617_v26 = vld [vmem:[%s5537_s6 + $0x490] sm:$0xff] }
  0x3f   : > { %614 = vst [vmem:[%s5542_s7 + $0x2c0] sm:$0xff] %v613_v24  ;;  %616 = vst [vmem:[%s5542_s7 + $0x2c8] sm:$0xff] %v615_v25  ;;  %v619_v27 = vld [vmem:[%s5537_s6 + $0x498] sm:$0xff]  ;;  %v621_v28 = vld [vmem:[%s5537_s6 + $0x4a0] sm:$0xff] }
  0x40   : > { %618 = vst [vmem:[%s5542_s7 + $0x2d0] sm:$0xff] %v617_v26  ;;  %620 = vst [vmem:[%s5542_s7 + $0x2d8] sm:$0xff] %v619_v27  ;;  %v623_v29 = vld [vmem:[%s5537_s6 + $0x4a8] sm:$0xff]  ;;  %v625_v30 = vld [vmem:[%s5537_s6 + $0x4b0] sm:$0xff] }
  0x41   : > { %622 = vst [vmem:[%s5542_s7 + $0x2e0] sm:$0xff] %v621_v28  ;;  %v627_v31 = vld [vmem:[%s5537_s6 + $0x4b8] sm:$0xff]  ;;  %624 = vst [vmem:[%s5542_s7 + $0x2e8] sm:$0xff] %v623_v29  ;;  %v629_v32 = vld [vmem:[%s5537_s6 + $0x4c0] sm:$0xff] }
  0x42   : > { %626 = vst [vmem:[%s5542_s7 + $0x2f0] sm:$0xff] %v625_v30  ;;  %628 = vst [vmem:[%s5542_s7 + $0x2f8] sm:$0xff] %v627_v31  ;;  %v631_v33 = vld [vmem:[%s5537_s6 + $0x4c8] sm:$0xff]  ;;  %v633_v34 = vld [vmem:[%s5537_s6 + $0x4d0] sm:$0xff] }
  0x43   : > { %630 = vst [vmem:[%s5542_s7 + $0x300] sm:$0xff] %v629_v32  ;;  %632 = vst [vmem:[%s5542_s7 + $0x308] sm:$0xff] %v631_v33  ;;  %v635_v35 = vld [vmem:[%s5537_s6 + $0x4d8] sm:$0xff]  ;;  %v637_v36 = vld [vmem:[%s5537_s6 + $0x4e0] sm:$0xff] }
  0x44   : > { %634 = vst [vmem:[%s5542_s7 + $0x310] sm:$0xff] %v633_v34  ;;  %v639_v37 = vld [vmem:[%s5537_s6 + $0x4e8] sm:$0xff]  ;;  %636 = vst [vmem:[%s5542_s7 + $0x318] sm:$0xff] %v635_v35  ;;  %v641_v38 = vld [vmem:[%s5537_s6 + $0x4f0] sm:$0xff] }
  0x45   : > { %638 = vst [vmem:[%s5542_s7 + $0x320] sm:$0xff] %v637_v36  ;;  %640 = vst [vmem:[%s5542_s7 + $0x328] sm:$0xff] %v639_v37  ;;  %v643_v39 = vld [vmem:[%s5537_s6 + $0x4f8] sm:$0xff]  ;;  %v645_v40 = vld [vmem:[%s5537_s6 + $0x500] sm:$0xff] }
  0x46   : > { %642 = vst [vmem:[%s5542_s7 + $0x330] sm:$0xff] %v641_v38  ;;  %644 = vst [vmem:[%s5542_s7 + $0x338] sm:$0xff] %v643_v39  ;;  %v647_v41 = vld [vmem:[%s5537_s6 + $0x508] sm:$0xff]  ;;  %v649_v42 = vld [vmem:[%s5537_s6 + $0x510] sm:$0xff] }
  0x47   : > { %646 = vst [vmem:[%s5542_s7 + $0x340] sm:$0xff] %v645_v40  ;;  %v651_v43 = vld [vmem:[%s5537_s6 + $0x518] sm:$0xff]  ;;  %648 = vst [vmem:[%s5542_s7 + $0x348] sm:$0xff] %v647_v41  ;;  %v653_v44 = vld [vmem:[%s5537_s6 + $0x520] sm:$0xff] }
  0x48   : > { %650 = vst [vmem:[%s5542_s7 + $0x350] sm:$0xff] %v649_v42  ;;  %652 = vst [vmem:[%s5542_s7 + $0x358] sm:$0xff] %v651_v43  ;;  %v655_v45 = vld [vmem:[%s5537_s6 + $0x528] sm:$0xff]  ;;  %v657_v46 = vld [vmem:[%s5537_s6 + $0x530] sm:$0xff] }
  0x49   : > { %654 = vst [vmem:[%s5542_s7 + $0x360] sm:$0xff] %v653_v44  ;;  %656 = vst [vmem:[%s5542_s7 + $0x368] sm:$0xff] %v655_v45  ;;  %v659_v47 = vld [vmem:[%s5537_s6 + $0x538] sm:$0xff] }
  0x4a   : > { %658 = vst [vmem:[%s5542_s7 + $0x370] sm:$0xff] %v657_v46  ;;  %660 = vst [vmem:[%s5542_s7 + $0x378] sm:$0xff] %v659_v47 }
  0x4b PF: > { %p4003_p5 = scmp.ge.s32.totalorder %s5466_s20, 1  ;;  %p665_p6 = scmp.lt.s32.totalorder %s5466_s20, 3 }
  0x4d   : > { %p666_p7 = pnand %p4003_p5, %p665_p6 }
  0x4f   : > { %669 = sbr.rel (%p666_p7) target bundleno = 902 (0x386), region = 74 }
  0x56   : > { %v708_v48 = vld [vmem:[%s8322_s1] sm:$0xff]  ;;  %v709_v49 = vld [vmem:[%s8322_s1 + $0x8] sm:$0xff]  ;;  %v710_v50 = vld [vmem:[%s8322_s1 + $0x10] sm:$0xff]  ;;  %s672_s14 = sand.u32 1, %s5458_s18   ;;  %v5468_v54 = vmov 0   ;;  %vm798_vm0 = vcmask 285696  }
  0x57   : > { %v4768_v51 = vpack.c.bf16 %v709_v49, %v708_v48  ;;  %v711_v52 = vld [vmem:[%s8322_s1 + $0x18] sm:$0xff]  ;;  %s4929_s17 = smul.u32 896, %s672_s14  ;;  %4960 = vset.pattern.permute.xlu1 %v5468_v54  ;;  %4959 = vset.pattern.permute.xlu0 %v5468_v54  ;;  %v720_v55 = vld [vmem:[%s8325_s4 + $0x10] sm:$0xff]  ;;  %v718_v58 = vld [vmem:[%s8325_s4] sm:$0xff]  ;;  %vm967_vm1 = vcmask 1042432   ;;  %vm2116_vm2 = vcmask 1046528  }
  0x58   : > { %v4772_v53 = vpack.c.bf16 %v711_v52, %v710_v50  ;;  %v712_v59 = vld [vmem:[%s8322_s1 + $0x20] sm:$0x7]  ;;  %734 = vperm.xlu1 %4960, %v720_v55   ;;  %724 = vperm.xlu0 %4959, %v718_v58   ;;  %v721_v60 = vld [vmem:[%s8325_s4 + $0x18] sm:$0xf]  ;;  %v719_v61 = vld [vmem:[%s8325_s4 + $0x8] sm:$0xff]  ;;  %vm2381_vm3 = vcmask 1045504  }
  0x59   : > { %4769 = vmatprep.subr.bf16.mxu0 %v4768_v51  ;;  %4777 = vmatprep.subr.bf16.mxu1 %v4768_v51  ;;  %s5783_s18 = scalar_lea.vmem [#allocation2], %s4929_s17  ;;  %vm2646_vm4 = vcmask 1044480   ;;  %vm2911_vm5 = vcmask 1043456   ;;  %s5469_s11 = smov 14   ;;  %vm3388_vm6 = vcmask 572416   ;;  %vm3176_vm7 = vcmask 113664  }
  0x5a   : > { %4771 = vmatpush3.bf16.msra.mxu0 %v4768_v51  ;;  %4779 = vmatpush3.bf16.msra.mxu1 %v4768_v51  ;;  %v742_v56 = vld [vmem:[%s5783_s18] sm:$0xff]  ;;  %v743_v62 = vld [vmem:[%s5783_s18 + $0x8] sm:$0xff]  ;;  %v744_v0 = vld [vmem:[%s5783_s18 + $0x10] sm:$0xff]  ;;  %s5470_s12 = smov 28   ;;  %s5471_s13 = smov 42   ;;  %vm3229_vm8 = vcmask 228352  }
  0x5b   : > { %v4064_v57 = vld [vmem:[%s5783_s18 + $0x1c0] sm:$0xff]  ;;  %4773 = vmatprep.subr.bf16.mxu0 %v4772_v53  ;;  %4781 = vmatprep.subr.bf16.mxu1 %v4772_v53  ;;  %v4065_v63 = vld [vmem:[%s5783_s18 + $0x1c8] sm:$0xff]  ;;  %v4066_v1 = vld [vmem:[%s5783_s18 + $0x1d0] sm:$0xff]  ;;  %s5472_s14 = smov 56   ;;  %vm3282_vm9 = vcmask 343040   ;;  %vm3335_vm10 = vcmask 457728  }
  0x5c   : > { %4462 = vmatprep.mubr.msk.f32.mxu0 %vm798_vm0, %v742_v56  ;;  %4556 = vmatprep.mubr.msk.f32.mxu1 %vm798_vm0, %v4064_v57  ;;  %v745_v2 = vld [vmem:[%s5783_s18 + $0x18] sm:$0xff]  ;;  %v746_v4 = vld [vmem:[%s5783_s18 + $0x20] sm:$0xff]  ;;  %v747_v6 = vld [vmem:[%s5783_s18 + $0x28] sm:$0xff]  ;;  %s4004_s9 = sshll.u32 %s3998_s21, 2  ;;  %vm3529_vm12 = vcmask 826368   ;;  %vm3533_vm13 = vcmask 822272  }
  0x5d   : > { %739 = vperm.xlu1 %4960, %v721_v60   ;;  %729 = vperm.xlu0 %4959, %v719_v61   ;;  %v4067_v3 = vld [vmem:[%s5783_s18 + $0x1d8] sm:$0xff]  ;;  %v4068_v5 = vld [vmem:[%s5783_s18 + $0x1e0] sm:$0xff]  ;;  %v4069_v7 = vld [vmem:[%s5783_s18 + $0x1e8] sm:$0xff]  ;;  %p702_p8 = scmp.lt.s32.totalorder %s4004_s9, 7 }
  0x5e   : > { %4775 = vmatpush3.bf16.msra.mxu0 %v4772_v53  ;;  %4783 = vmatpush3.bf16.msra.mxu1 %v4772_v53  ;;  %v748_v8 = vld [vmem:[%s5783_s18 + $0x30] sm:$0xff]  ;;  %v749_v10 = vld [vmem:[%s5783_s18 + $0x38] sm:$0xff]  ;;  %v750_v12 = vld [vmem:[%s5783_s18 + $0x40] sm:$0xff] }
  0x5f   : > { %4460 = vmatprep.subr.msk.mxu0 %vm967_vm1, %v712_v59  ;;  %4554 = vmatprep.subr.msk.mxu1 %vm967_vm1, %v712_v59  ;;  %v4070_v9 = vld [vmem:[%s5783_s18 + $0x1f0] sm:$0xff]  ;;  %v4071_v11 = vld [vmem:[%s5783_s18 + $0x1f8] sm:$0xff]  ;;  %v4072_v13 = vld [vmem:[%s5783_s18 + $0x200] sm:$0xff]  ;;  %s8584_s9 = smov (!%p702_p8, %s4004_s9), 7 }
  0x60   : > { %v751_v14 = vld [vmem:[%s5783_s18 + $0x48] sm:$0xff]  ;;  %v752_v16 = vld [vmem:[%s5783_s18 + $0x50] sm:$0xff]  ;;  %v753_v18 = vld [vmem:[%s5783_s18 + $0x58] sm:$0xff]  ;;  %s4261_s10 = sshll.u32 %s8584_s9, 5 }
  0x61   : > { %v4073_v15 = vld [vmem:[%s5783_s18 + $0x208] sm:$0xff]  ;;  %v4074_v17 = vld [vmem:[%s5783_s18 + $0x210] sm:$0xff]  ;;  %v4075_v19 = vld [vmem:[%s5783_s18 + $0x218] sm:$0xff] }
  0x62   : > { %4461 = vmatpush3.msk.msra.mxu0 %vm967_vm1, %v712_v59  ;;  %4555 = vmatpush3.msk.msra.mxu1 %vm967_vm1, %v712_v59  ;;  %v754_v20 = vld [vmem:[%s5783_s18 + $0x60] sm:$0xff]  ;;  %v755_v22 = vld [vmem:[%s5783_s18 + $0x68] sm:$0xff]  ;;  %v756_v24 = vld [vmem:[%s5783_s18 + $0x70] sm:$0xff] }
  0x63   : > { %4463 = vmatmul.mubr.msk.f32.vlgmr.msra.gmra.mrb[0].mxu0 %vm798_vm0, %v743_v62  ;;  %4557 = vmatmul.mubr.msk.f32.vlgmr.msra.gmra.mrb[0].mxu1 %vm798_vm0, %v4065_v63  ;;  %v4076_v21 = vld [vmem:[%s5783_s18 + $0x220] sm:$0xff]  ;;  %v4077_v23 = vld [vmem:[%s5783_s18 + $0x228] sm:$0xff]  ;;  %v4078_v25 = vld [vmem:[%s5783_s18 + $0x230] sm:$0xff] }
  0x64   : > { %4465 = vmatprep.mubr.msk.f32.mxu0 %vm798_vm0, %v744_v0  ;;  %4559 = vmatprep.mubr.msk.f32.mxu1 %vm798_vm0, %v4066_v1  ;;  %v757_v26 = vld [vmem:[%s5783_s18 + $0x78] sm:$0xff]  ;;  %v758_v28 = vld [vmem:[%s5783_s18 + $0x80] sm:$0xff]  ;;  %v759_v30 = vld [vmem:[%s5783_s18 + $0x88] sm:$0xff] }
  0x65   : > { %v4079_v27 = vld [vmem:[%s5783_s18 + $0x238] sm:$0xff]  ;;  %v4080_v29 = vld [vmem:[%s5783_s18 + $0x240] sm:$0xff]  ;;  %v4081_v31 = vld [vmem:[%s5783_s18 + $0x248] sm:$0xff] }
  0x66   : > { %v760_v32 = vld [vmem:[%s5783_s18 + $0x90] sm:$0xff]  ;;  %v761_v34 = vld [vmem:[%s5783_s18 + $0x98] sm:$0xff]  ;;  %v762_v36 = vld [vmem:[%s5783_s18 + $0xa0] sm:$0xff] }
  0x67   : > { %4466 = vmatmul.mubr.msk.f32.gmra.mrb[2].mxu0 %vm798_vm0, %v745_v2  ;;  %4560 = vmatmul.mubr.msk.f32.gmra.mrb[2].mxu1 %vm798_vm0, %v4067_v3  ;;  %v4082_v33 = vld [vmem:[%s5783_s18 + $0x250] sm:$0xff]  ;;  %v4083_v35 = vld [vmem:[%s5783_s18 + $0x258] sm:$0xff]  ;;  %v4084_v37 = vld [vmem:[%s5783_s18 + $0x260] sm:$0xff] }
  0x68   : > { %4468 = vmatprep.mubr.msk.f32.mxu0 %vm798_vm0, %v746_v4  ;;  %4562 = vmatprep.mubr.msk.f32.mxu1 %vm798_vm0, %v4068_v5  ;;  %v763_v38 = vld [vmem:[%s5783_s18 + $0xa8] sm:$0xff]  ;;  %v764_v40 = vld [vmem:[%s5783_s18 + $0xb0] sm:$0xff]  ;;  %v765_v42 = vld [vmem:[%s5783_s18 + $0xb8] sm:$0xff] }
  0x69   : > { %v4085_v39 = vld [vmem:[%s5783_s18 + $0x268] sm:$0xff]  ;;  %v4086_v41 = vld [vmem:[%s5783_s18 + $0x270] sm:$0xff]  ;;  %v4087_v43 = vld [vmem:[%s5783_s18 + $0x278] sm:$0xff] }
  0x6a   : > { %v766_v44 = vld [vmem:[%s5783_s18 + $0xc0] sm:$0xff]  ;;  %v767_v46 = vld [vmem:[%s5783_s18 + $0xc8] sm:$0xff]  ;;  %v768_v48 = vld [vmem:[%s5783_s18 + $0xd0] sm:$0xff] }
  0x6b   : > { %4469 = vmatmul.mubr.msk.f32.gmra.mrb[4].mxu0 %vm798_vm0, %v747_v6  ;;  %4563 = vmatmul.mubr.msk.f32.gmra.mrb[4].mxu1 %vm798_vm0, %v4069_v7  ;;  %v4088_v45 = vld [vmem:[%s5783_s18 + $0x280] sm:$0xff]  ;;  %v4089_v47 = vld [vmem:[%s5783_s18 + $0x288] sm:$0xff]  ;;  %v4090_v49 = vld [vmem:[%s5783_s18 + $0x290] sm:$0xff] }
  0x6c   : > { %4471 = vmatprep.mubr.msk.f32.mxu0 %vm798_vm0, %v748_v8  ;;  %4565 = vmatprep.mubr.msk.f32.mxu1 %vm798_vm0, %v4070_v9  ;;  %v769_v50 = vld [vmem:[%s5783_s18 + $0xd8] sm:$0xff]  ;;  %v770_v52 = vld [vmem:[%s5783_s18 + $0xe0] sm:$0xff]  ;;  %v771_v54 = vld [vmem:[%s5783_s18 + $0xe8] sm:$0xff] }
  0x6d   : > { %v4091_v51 = vld [vmem:[%s5783_s18 + $0x298] sm:$0xff]  ;;  %v4092_v53 = vld [vmem:[%s5783_s18 + $0x2a0] sm:$0xff]  ;;  %v4093_v55 = vld [vmem:[%s5783_s18 + $0x2a8] sm:$0xff] }
  0x6e   : > { %v772_v56 = vld [vmem:[%s5783_s18 + $0xf0] sm:$0xff]  ;;  %v773_v58 = vld [vmem:[%s5783_s18 + $0xf8] sm:$0xff]  ;;  %v774_v60 = vld [vmem:[%s5783_s18 + $0x100] sm:$0xff] }
  0x6f   : > { %4472 = vmatmul.mubr.msk.f32.gmra.mrb[6].mxu0 %vm798_vm0, %v749_v10  ;;  %4566 = vmatmul.mubr.msk.f32.gmra.mrb[6].mxu1 %vm798_vm0, %v4071_v11  ;;  %v4094_v57 = vld [vmem:[%s5783_s18 + $0x2b0] sm:$0xff]  ;;  %v4095_v59 = vld [vmem:[%s5783_s18 + $0x2b8] sm:$0xff]  ;;  %v4096_v61 = vld [vmem:[%s5783_s18 + $0x2c0] sm:$0xff] }
  0x70   : > { %4474 = vmatprep.mubr.msk.f32.mxu0 %vm798_vm0, %v750_v12  ;;  %4568 = vmatprep.mubr.msk.f32.mxu1 %vm798_vm0, %v4072_v13  ;;  %v775_v62 = vld [vmem:[%s5783_s18 + $0x108] sm:$0xff]  ;;  %v776_v0 = vld [vmem:[%s5783_s18 + $0x110] sm:$0xff]  ;;  %v777_v2 = vld [vmem:[%s5783_s18 + $0x118] sm:$0xff] }
  0x71   : > { %v4097_v63 = vld [vmem:[%s5783_s18 + $0x2c8] sm:$0xff]  ;;  %v4098_v1 = vld [vmem:[%s5783_s18 + $0x2d0] sm:$0xff]  ;;  %v4099_v3 = vld [vmem:[%s5783_s18 + $0x2d8] sm:$0xff] }
  0x72   : > { %v778_v4 = vld [vmem:[%s5783_s18 + $0x120] sm:$0xff]  ;;  %v779_v6 = vld [vmem:[%s5783_s18 + $0x128] sm:$0xff]  ;;  %v780_v8 = vld [vmem:[%s5783_s18 + $0x130] sm:$0xff] }
  0x73   : > { %4475 = vmatmul.mubr.msk.f32.gmra.mrb[8].mxu0 %vm798_vm0, %v751_v14  ;;  %4569 = vmatmul.mubr.msk.f32.gmra.mrb[8].mxu1 %vm798_vm0, %v4073_v15  ;;  %v4100_v5 = vld [vmem:[%s5783_s18 + $0x2e0] sm:$0xff]  ;;  %v4101_v7 = vld [vmem:[%s5783_s18 + $0x2e8] sm:$0xff]  ;;  %v4102_v9 = vld [vmem:[%s5783_s18 + $0x2f0] sm:$0xff] }
  0x74   : > { %4477 = vmatprep.mubr.msk.f32.mxu0 %vm798_vm0, %v752_v16  ;;  %4571 = vmatprep.mubr.msk.f32.mxu1 %vm798_vm0, %v4074_v17  ;;  %v781_v10 = vld [vmem:[%s5783_s18 + $0x138] sm:$0xff]  ;;  %v782_v12 = vld [vmem:[%s5783_s18 + $0x140] sm:$0xff]  ;;  %v783_v14 = vld [vmem:[%s5783_s18 + $0x148] sm:$0xff] }
  0x75   : > { %v4103_v11 = vld [vmem:[%s5783_s18 + $0x2f8] sm:$0xff]  ;;  %v4104_v13 = vld [vmem:[%s5783_s18 + $0x300] sm:$0xff]  ;;  %v4105_v15 = vld [vmem:[%s5783_s18 + $0x308] sm:$0xff] }
  0x76   : > { %v784_v16 = vld [vmem:[%s5783_s18 + $0x150] sm:$0xff]  ;;  %vm7345_vm11 = vmpackc.low %vm3388_vm6, %vm3388_vm6 }
  0x77   : > { %4478 = vmatmul.mubr.msk.f32.gmra.mrb[10].mxu0 %vm798_vm0, %v753_v18  ;;  %4572 = vmatmul.mubr.msk.f32.gmra.mrb[10].mxu1 %vm798_vm0, %v4075_v19  ;;  %v4106_v17 = vld [vmem:[%s5783_s18 + $0x310] sm:$0xff]  ;;  %v785_v18 = vld [vmem:[%s5783_s18 + $0x158] sm:$0xff] }
  0x78   : > { %4480 = vmatprep.mubr.msk.f32.mxu0 %vm798_vm0, %v754_v20  ;;  %4574 = vmatprep.mubr.msk.f32.mxu1 %vm798_vm0, %v4076_v21  ;;  %v4107_v19 = vld [vmem:[%s5783_s18 + $0x318] sm:$0xff]  ;;  %v786_v20 = vld [vmem:[%s5783_s18 + $0x160] sm:$0xff] }
  0x79   : > { %v4108_v21 = vld [vmem:[%s5783_s18 + $0x320] sm:$0xff] }
  0x7b   : > { %4481 = vmatmul.mubr.msk.f32.gmra.mrb[12].mxu0 %vm798_vm0, %v755_v22  ;;  %4575 = vmatmul.mubr.msk.f32.gmra.mrb[12].mxu1 %vm798_vm0, %v4077_v23  ;;  %v787_v22 = vld [vmem:[%s5783_s18 + $0x168] sm:$0xff] }
  0x7c   : > { %4483 = vmatprep.mubr.msk.f32.mxu0 %vm798_vm0, %v756_v24  ;;  %4577 = vmatprep.mubr.msk.f32.mxu1 %vm798_vm0, %v4078_v25  ;;  %v4109_v23 = vld [vmem:[%s5783_s18 + $0x328] sm:$0xff]  ;;  %v788_v24 = vld [vmem:[%s5783_s18 + $0x170] sm:$0xff] }
  0x7d   : > { %v4110_v25 = vld [vmem:[%s5783_s18 + $0x330] sm:$0xff] }
  0x7f   : > { %4484 = vmatmul.mubr.msk.f32.gmra.mrb[14].mxu0 %vm798_vm0, %v757_v26  ;;  %4578 = vmatmul.mubr.msk.f32.gmra.mrb[14].mxu1 %vm798_vm0, %v4079_v27  ;;  %v789_v26 = vld [vmem:[%s5783_s18 + $0x178] sm:$0xff] }
  0x80   : > { %4486 = vmatprep.mubr.msk.f32.mxu0 %vm798_vm0, %v758_v28  ;;  %4580 = vmatprep.mubr.msk.f32.mxu1 %vm798_vm0, %v4080_v29  ;;  %v4111_v27 = vld [vmem:[%s5783_s18 + $0x338] sm:$0xff]  ;;  %v790_v28 = vld [vmem:[%s5783_s18 + $0x180] sm:$0xff] }
  0x81   : > { %v4112_v29 = vld [vmem:[%s5783_s18 + $0x340] sm:$0xff] }
  0x83   : > { %4487 = vmatmul.mubr.msk.f32.gmra.mrb[16].mxu0 %vm798_vm0, %v759_v30  ;;  %4581 = vmatmul.mubr.msk.f32.gmra.mrb[16].mxu1 %vm798_vm0, %v4081_v31  ;;  %v791_v30 = vld [vmem:[%s5783_s18 + $0x188] sm:$0xff] }
  0x84   : > { %4489 = vmatprep.mubr.msk.f32.mxu0 %vm798_vm0, %v760_v32  ;;  %4583 = vmatprep.mubr.msk.f32.mxu1 %vm798_vm0, %v4082_v33  ;;  %v4113_v31 = vld [vmem:[%s5783_s18 + $0x348] sm:$0xff]  ;;  %v792_v32 = vld [vmem:[%s5783_s18 + $0x190] sm:$0xff] }
  0x85   : > { %v4114_v33 = vld [vmem:[%s5783_s18 + $0x350] sm:$0xff] }
  0x87   : > { %4490 = vmatmul.mubr.msk.f32.gmra.mrb[18].mxu0 %vm798_vm0, %v761_v34  ;;  %4584 = vmatmul.mubr.msk.f32.gmra.mrb[18].mxu1 %vm798_vm0, %v4083_v35  ;;  %v793_v34 = vld [vmem:[%s5783_s18 + $0x198] sm:$0xff] }
  0x88   : > { %4492 = vmatprep.mubr.msk.f32.mxu0 %vm798_vm0, %v762_v36  ;;  %4586 = vmatprep.mubr.msk.f32.mxu1 %vm798_vm0, %v4084_v37  ;;  %v4115_v35 = vld [vmem:[%s5783_s18 + $0x358] sm:$0xff]  ;;  %v794_v36 = vld [vmem:[%s5783_s18 + $0x1a0] sm:$0xff] }
  0x89   : > { %v4116_v37 = vld [vmem:[%s5783_s18 + $0x360] sm:$0xff] }
  0x8b   : > { %4493 = vmatmul.mubr.msk.f32.gmra.mrb[20].mxu0 %vm798_vm0, %v763_v38  ;;  %4587 = vmatmul.mubr.msk.f32.gmra.mrb[20].mxu1 %vm798_vm0, %v4085_v39  ;;  %v795_v38 = vld [vmem:[%s5783_s18 + $0x1a8] sm:$0xff] }
  0x8c   : > { %4495 = vmatprep.mubr.msk.f32.mxu0 %vm798_vm0, %v764_v40  ;;  %4589 = vmatprep.mubr.msk.f32.mxu1 %vm798_vm0, %v4086_v41  ;;  %v4117_v39 = vld [vmem:[%s5783_s18 + $0x368] sm:$0xff]  ;;  %v796_v40 = vld [vmem:[%s5783_s18 + $0x1b0] sm:$0xff] }
  0x8d   : > { %v4118_v41 = vld [vmem:[%s5783_s18 + $0x370] sm:$0xff] }
  0x8f   : > { %4496 = vmatmul.mubr.msk.f32.gmra.mrb[22].mxu0 %vm798_vm0, %v765_v42  ;;  %4590 = vmatmul.mubr.msk.f32.gmra.mrb[22].mxu1 %vm798_vm0, %v4087_v43  ;;  %v797_v42 = vld [vmem:[%s5783_s18 + $0x1b8] sm:$0xff] }
  0x90   : > { %4498 = vmatprep.mubr.msk.f32.mxu0 %vm798_vm0, %v766_v44  ;;  %4592 = vmatprep.mubr.msk.f32.mxu1 %vm798_vm0, %v4088_v45  ;;  %v4119_v43 = vld [vmem:[%s5783_s18 + $0x378] sm:$0xff]  ;;  %v6028_v45 = vld [vmem:[%s8323_s2] ss:$0 sm:$0xff] }
  0x93   : > { %4499 = vmatmul.mubr.msk.f32.gmra.mrb[24].mxu0 %vm798_vm0, %v767_v46  ;;  %4593 = vmatmul.mubr.msk.f32.gmra.mrb[24].mxu1 %vm798_vm0, %v4089_v47 }
  0x94   : > { %4501 = vmatprep.mubr.msk.f32.mxu0 %vm798_vm0, %v768_v48  ;;  %4595 = vmatprep.mubr.msk.f32.mxu1 %vm798_vm0, %v4090_v49 }
  0x97   : > { %4502 = vmatmul.mubr.msk.f32.gmra.mrb[26].mxu0 %vm798_vm0, %v769_v50  ;;  %4596 = vmatmul.mubr.msk.f32.gmra.mrb[26].mxu1 %vm798_vm0, %v4091_v51 }
  0x98   : > { %4504 = vmatprep.mubr.msk.f32.mxu0 %vm798_vm0, %v770_v52  ;;  %4598 = vmatprep.mubr.msk.f32.mxu1 %vm798_vm0, %v4092_v53 }
  0x9b   : > { %4505 = vmatmul.mubr.msk.f32.gmra.mrb[28].mxu0 %vm798_vm0, %v771_v54  ;;  %4599 = vmatmul.mubr.msk.f32.gmra.mrb[28].mxu1 %vm798_vm0, %v4093_v55 }
  0x9c   : > { %4507 = vmatprep.mubr.msk.f32.mxu0 %vm798_vm0, %v772_v56  ;;  %4601 = vmatprep.mubr.msk.f32.mxu1 %vm798_vm0, %v4094_v57 }
  0x9f   : > { %4508 = vmatmul.mubr.msk.f32.gmra.mrb[30].mxu0 %vm798_vm0, %v773_v58  ;;  %4602 = vmatmul.mubr.msk.f32.gmra.mrb[30].mxu1 %vm798_vm0, %v4095_v59 }
  0xa0   : > { %4510 = vmatprep.mubr.msk.f32.mxu0 %vm798_vm0, %v774_v60  ;;  %4604 = vmatprep.mubr.msk.f32.mxu1 %vm798_vm0, %v4096_v61 }
  0xa3   : > { %4511 = vmatmul.mubr.msk.f32.gmra.mrb[32].mxu0 %vm798_vm0, %v775_v62  ;;  %4605 = vmatmul.mubr.msk.f32.gmra.mrb[32].mxu1 %vm798_vm0, %v4097_v63 }
  0xa4   : > { %4513 = vmatprep.mubr.msk.f32.mxu0 %vm798_vm0, %v776_v0  ;;  %4607 = vmatprep.mubr.msk.f32.mxu1 %vm798_vm0, %v4098_v1 }
  0xa7   : > { %4514 = vmatmul.mubr.msk.f32.gmra.mrb[34].mxu0 %vm798_vm0, %v777_v2  ;;  %4608 = vmatmul.mubr.msk.f32.gmra.mrb[34].mxu1 %vm798_vm0, %v4099_v3 }
  0xa8   : > { %4516 = vmatprep.mubr.msk.f32.mxu0 %vm798_vm0, %v778_v4  ;;  %4610 = vmatprep.mubr.msk.f32.mxu1 %vm798_vm0, %v4100_v5 }
  0xab   : > { %4517 = vmatmul.mubr.msk.f32.gmra.mrb[36].mxu0 %vm798_vm0, %v779_v6  ;;  %4611 = vmatmul.mubr.msk.f32.gmra.mrb[36].mxu1 %vm798_vm0, %v4101_v7 }
  0xac   : > { %4519 = vmatprep.mubr.msk.f32.mxu0 %vm798_vm0, %v780_v8  ;;  %4613 = vmatprep.mubr.msk.f32.mxu1 %vm798_vm0, %v4102_v9 }
  0xaf   : > { %4520 = vmatmul.mubr.msk.f32.gmra.mrb[38].mxu0 %vm798_vm0, %v781_v10  ;;  %4614 = vmatmul.mubr.msk.f32.gmra.mrb[38].mxu1 %vm798_vm0, %v4103_v11 }
  0xb0   : > { %4522 = vmatprep.mubr.msk.f32.mxu0 %vm798_vm0, %v782_v12  ;;  %4616 = vmatprep.mubr.msk.f32.mxu1 %vm798_vm0, %v4104_v13 }
  0xb3   : > { %4523 = vmatmul.mubr.msk.f32.gmra.mrb[40].mxu0 %vm798_vm0, %v783_v14  ;;  %4617 = vmatmul.mubr.msk.f32.gmra.mrb[40].mxu1 %vm798_vm0, %v4105_v15 }
  0xb4   : > { %4525 = vmatprep.mubr.msk.f32.mxu0 %vm798_vm0, %v784_v16  ;;  %4619 = vmatprep.mubr.msk.f32.mxu1 %vm798_vm0, %v4106_v17 }
  0xb7   : > { %4526 = vmatmul.mubr.msk.f32.gmra.mrb[42].mxu0 %vm798_vm0, %v785_v18  ;;  %4620 = vmatmul.mubr.msk.f32.gmra.mrb[42].mxu1 %vm798_vm0, %v4107_v19 }
  0xb8   : > { %4528 = vmatprep.mubr.msk.f32.mxu0 %vm798_vm0, %v786_v20  ;;  %4622 = vmatprep.mubr.msk.f32.mxu1 %vm798_vm0, %v4108_v21 }
  0xbb   : > { %4529 = vmatmul.mubr.msk.f32.gmra.mrb[44].mxu0 %vm798_vm0, %v787_v22  ;;  %4623 = vmatmul.mubr.msk.f32.gmra.mrb[44].mxu1 %vm798_vm0, %v4109_v23 }
  0xbc   : > { %4531 = vmatprep.mubr.msk.f32.mxu0 %vm798_vm0, %v788_v24  ;;  %4625 = vmatprep.mubr.msk.f32.mxu1 %vm798_vm0, %v4110_v25 }
  0xbf   : > { %4532 = vmatmul.mubr.msk.f32.gmra.mrb[46].mxu0 %vm798_vm0, %v789_v26  ;;  %4626 = vmatmul.mubr.msk.f32.gmra.mrb[46].mxu1 %vm798_vm0, %v4111_v27 }
  0xc0   : > { %4534 = vmatprep.mubr.msk.f32.mxu0 %vm798_vm0, %v790_v28  ;;  %4628 = vmatprep.mubr.msk.f32.mxu1 %vm798_vm0, %v4112_v29 }
  0xc3   : > { %4535 = vmatmul.mubr.msk.f32.gmra.mrb[48].mxu0 %vm798_vm0, %v791_v30  ;;  %4629 = vmatmul.mubr.msk.f32.gmra.mrb[48].mxu1 %vm798_vm0, %v4113_v31 }
  0xc4   : > { %4537 = vmatprep.mubr.msk.f32.mxu0 %vm798_vm0, %v792_v32  ;;  %4631 = vmatprep.mubr.msk.f32.mxu1 %vm798_vm0, %v4114_v33 }
  0xc7   : > { %4538 = vmatmul.mubr.msk.f32.gmra.mrb[50].mxu0 %vm798_vm0, %v793_v34  ;;  %4632 = vmatmul.mubr.msk.f32.gmra.mrb[50].mxu1 %vm798_vm0, %v4115_v35 }
  0xc8   : > { %4540 = vmatprep.mubr.msk.f32.mxu0 %vm798_vm0, %v794_v36  ;;  %4634 = vmatprep.mubr.msk.f32.mxu1 %vm798_vm0, %v4116_v37 }
  0xcb   : > { %4541 = vmatmul.mubr.msk.f32.gmra.mrb[52].mxu0 %vm798_vm0, %v795_v38  ;;  %4635 = vmatmul.mubr.msk.f32.gmra.mrb[52].mxu1 %vm798_vm0, %v4117_v39 }
  0xcc   : > { %4543 = vmatprep.mubr.msk.f32.mxu0 %vm798_vm0, %v796_v40  ;;  %4637 = vmatprep.mubr.msk.f32.mxu1 %vm798_vm0, %v4118_v41 }
  0xcf   : > { %4544 = vmatmul.mubr.msk.f32.gmra.mrb[54].mxu0 %vm798_vm0, %v797_v42  ;;  %4638 = vmatmul.mubr.msk.f32.gmra.mrb[54].mxu1 %vm798_vm0, %v4119_v43 }
 0x136   : > { %v4464_v44 = vpop.f32.mrb[0].mxu0  ;;  %v4558_v46 = vpop.f32.mrb[0].mxu1 }
 0x137   : > { %v1887_v47 = vmax.f32 %v4464_v44, %v4558_v46  ;;  %v1037_v48 = vpop.f32.mrb[1].mxu0  ;;  %v1607_v49 = vpop.f32.mrb[1].mxu1 }
 0x138   : > { %v1886_v50 = vmax.f32 %v1037_v48, %v1607_v49 }
 0x139   : > { %v1949_v51 = vadd.f32 %v6028_v45, %v1887_v47 }
 0x13a   : > { %v1948_v52 = vadd.f32 %v6028_v45, %v1886_v50  ;;  %v4467_v53 = vpop.f32.mrb[2].mxu0  ;;  %v4561_v54 = vpop.f32.mrb[2].mxu1 }
 0x13b   : > { %v6032_v55 = vmax.f32 %v1949_v51, 0.0  ;;  %v1889_v56 = vmax.f32 %v4467_v53, %v4561_v54  ;;  %v1047_v57 = vpop.f32.mrb[3].mxu0  ;;  %v1617_v58 = vpop.f32.mrb[3].mxu1 }
 0x13c   : > { %v6034_v59 = vmax.f32 %v1948_v52, 0.0  ;;  %v1888_v60 = vmax.f32 %v1047_v57, %v1617_v58 }
 0x13d   : > { %8378 = vst [vmem:[#allocation3_spill] sm:$0xff] %v6032_v55  ;;  %v1951_v61 = vadd.f32 %v6028_v45, %v1889_v56  ;;  %v2118_v5 = vrot.slane %v6032_v55, 1  ;;  %v2383_v9 = vrot.slane %v6032_v55, 2  ;;  %v2648_v26 = vrot.slane %v6032_v55, 3 }
 0x13e   : > { %8379 = vst [vmem:[#allocation4_spill] sm:$0xff] %v6034_v59  ;;  %v1950_v62 = vadd.f32 %v6028_v45, %v1888_v60  ;;  %v4470_v63 = vpop.f32.mrb[4].mxu0  ;;  %v4564_v0 = vpop.f32.mrb[4].mxu1  ;;  %v2117_v4 = vrot.slane %v6034_v59, 1  ;;  %v2382_v14 = vrot.slane %v6034_v59, 2  ;;  %v2647_v25 = vrot.slane %v6034_v59, 3 }
 0x13f   : > { %v1891_v1 = vmax.f32 %v4470_v63, %v4564_v0  ;;  %v1057_v2 = vpop.f32.mrb[5].mxu0  ;;  %v1627_v3 = vpop.f32.mrb[5].mxu1  ;;  %v6040_v6 = vmax.f32 %v1951_v61, 0.0  ;;  %v2912_v61 = vrot.slane %v6034_v59, 4 }
 0x140   : > { %v6042_v7 = vmax.f32 %v1950_v62, 0.0  ;;  %v1890_v8 = vmax.f32 %v1057_v2, %v1627_v3  ;;  %v2119_v19 = vsel %vm2116_vm2, %v2117_v4, %v2118_v5  ;;  %v2384_v31 = vsel %vm2381_vm3, %v2382_v14, %v2383_v9 }
 0x141   : > { %8380 = vst [vmem:[#allocation5_spill] sm:$0xff] %v6040_v6  ;;  %v2122_v23 = vrot.slane %v6040_v6, 1  ;;  %v1953_v34 = vadd.f32 %v6028_v45, %v1891_v1  ;;  %v2387_v38 = vrot.slane %v6040_v6, 2  ;;  %v2649_v60 = vsel %vm2646_vm4, %v2647_v25, %v2648_v26 }
 0x142   : > { %8381 = vst [vmem:[#allocation6_spill] sm:$0xff] %v6042_v7  ;;  %v1952_v10 = vadd.f32 %v6028_v45, %v1890_v8  ;;  %v4473_v11 = vpop.f32.mrb[6].mxu0  ;;  %v4567_v12 = vpop.f32.mrb[6].mxu1  ;;  %v2120_v13 = vrot.slane %v6042_v7, 1  ;;  %v2385_v15 = vrot.slane %v6042_v7, 2  ;;  %v2650_v27 = vrot.slane %v6042_v7, 3 }
 0x143   : > { %v1893_v16 = vmax.f32 %v4473_v11, %v4567_v12  ;;  %v1067_v17 = vpop.f32.mrb[7].mxu0  ;;  %v1637_v18 = vpop.f32.mrb[7].mxu1  ;;  %v2915_v43 = vrot.slane %v6042_v7, 4  ;;  %v2913_v62 = vrot.slane %v6032_v55, 4  ;;  %v6090_v63 = vmax.f32 %v1953_v34, 0.0 }
 0x144   : > { %v6050_v20 = vmax.f32 %v1952_v10, 0.0  ;;  %v1892_v21 = vmax.f32 %v1067_v17, %v1637_v18  ;;  %v2121_v22 = vsel %vm2116_vm2, %v2118_v5, %v2120_v13  ;;  %v2386_v32 = vsel %vm2381_vm3, %v2383_v9, %v2385_v15 }
 0x145   : > { %v4961_v24 = vpack.i.bf16 %v2121_v22, %v2119_v19  ;;  %v2123_v41 = vsel %vm2116_vm2, %v2120_v13, %v2122_v23  ;;  %v1955_v44 = vadd.f32 %v6028_v45, %v1893_v16  ;;  %v4966_v46 = vpack.i.bf16 %v2386_v32, %v2384_v31  ;;  %8384 = vst [vmem:[#allocation9_spill] sm:$0xff] %v6090_v63 }
 0x146   : > { %8382 = vst [vmem:[#allocation7_spill] sm:$0xff] %v6050_v20  ;;  %v1954_v28 = vadd.f32 %v6028_v45, %v1892_v21  ;;  %v6058_v29 = vpop.f32.mrb[8].mxu0  ;;  %v6060_v30 = vpop.f32.mrb[8].mxu1  ;;  %v2124_v33 = vrot.slane %v6050_v20, 1  ;;  %v2389_v39 = vrot.slane %v6050_v20, 2  ;;  %v2651_v48 = vsel %vm2646_vm4, %v2648_v26, %v2650_v27 }
 0x147   : > { %4962 = vrot.lane.b32.xlu0 %v4961_v24, %s5469_s11  ;;  %v1895_v35 = vmax.f32 %v6058_v29, %v6060_v30  ;;  %v1077_v36 = vpop.f32.mrb[9].mxu0  ;;  %v1647_v37 = vpop.f32.mrb[9].mxu1  ;;  %v2654_v54 = vrot.slane %v6050_v20, 3  ;;  %v2388_v1 = vsel %vm2381_vm3, %v2385_v15, %v2387_v38  ;;  %v2652_v2 = vrot.slane %v6040_v6, 3 }
 0x148   : > { %v1894_v40 = vmax.f32 %v1077_v36, %v1647_v37  ;;  %v2125_v42 = vsel %vm2116_vm2, %v2122_v23, %v2124_v33  ;;  %v6078_v49 = vmax.f32 %v1954_v28, 0.0  ;;  %v2390_v53 = vsel %vm2381_vm3, %v2387_v38, %v2389_v39 }
 0x149   : > { %v4981_v47 = vpack.i.bf16 %v2125_v42, %v2123_v41  ;;  %v6094_v3 = vmax.f32 %v1955_v44, 0.0  ;;  %v4971_v4 = vpack.i.bf16 %v2651_v48, %v2649_v60  ;;  %v4986_v5 = vpack.i.bf16 %v2390_v53, %v2388_v1 }
 0x14a   : > { %8383 = vst [vmem:[#allocation8_spill] sm:$0xff] %v6078_v49  ;;  %v1956_v50 = vadd.f32 %v6028_v45, %v1894_v40  ;;  %v4479_v51 = vpop.f32.mrb[10].mxu0  ;;  %v4573_v52 = vpop.f32.mrb[10].mxu1  ;;  %v2916_v8 = vsel %vm2911_vm5, %v2913_v62, %v2915_v43  ;;  %v2655_v10 = vsel %vm2646_vm4, %v2652_v2, %v2654_v54  ;;  %v2919_v11 = vrot.slane %v6050_v20, 4 }
 0x14b   : > { %4967 = vrot.lane.b32.xlu0 %v4966_v46, %s5470_s12  ;;  %4982 = vrot.lane.b32.xlu1 %v4981_v47, %s5469_s11  ;;  %v1897_v56 = vmax.f32 %v4479_v51, %v4573_v52  ;;  %v1087_v57 = vpop.f32.mrb[11].mxu0  ;;  %v1657_v58 = vpop.f32.mrb[11].mxu1  ;;  %8385 = vst [vmem:[#allocation10_spill] sm:$0xff] %v6094_v3  ;;  %v2128_v12 = vrot.slane %v6078_v49, 1  ;;  %v2914_v15 = vsel %vm2911_vm5, %v2912_v61, %v2913_v62  ;;  %v2917_v21 = vrot.slane %v6040_v6, 4 }
 0x14c   : > { %v1896_v0 = vmax.f32 %v1087_v57, %v1657_v58  ;;  %v6099_v9 = vmax.f32 %v1956_v50, 0.0  ;;  %v2653_v19 = vsel %vm2646_vm4, %v2650_v27, %v2652_v2  ;;  %v2126_v22 = vrot.slane %v6090_v63, 1 }
 0x14d   : > { %v4976_v24 = vpack.i.bf16 %v2916_v8, %v2914_v15  ;;  %v4991_v25 = vpack.i.bf16 %v2655_v10, %v2653_v19  ;;  %v2393_v26 = vrot.slane %v6078_v49, 2  ;;  %v2920_v28 = vsel %vm2911_vm5, %v2917_v21, %v2919_v11 }
 0x14e   : > { %8386 = vst [vmem:[#allocation11_spill] sm:$0xff] %v6099_v9  ;;  %v6106_v13 = vpop.f32.mrb[12].mxu0  ;;  %v6108_v14 = vpop.f32.mrb[12].mxu1  ;;  %v2129_v29 = vsel %vm2116_vm2, %v2126_v22, %v2128_v12  ;;  %v2130_v30 = vrot.slane %v6094_v3, 1  ;;  %v2132_v31 = vrot.slane %v6099_v9, 1  ;;  %v1957_v34 = vadd.f32 %v6028_v45, %v1895_v35 }
 0x14f   : > { %4972 = vrot.lane.b32.xlu0 %v4971_v4, %s5471_s13  ;;  %4987 = vrot.lane.b32.xlu1 %v4986_v5, %s5470_s12  ;;  %v1899_v16 = vmax.f32 %v6106_v13, %v6108_v14  ;;  %v1097_v17 = vpop.f32.mrb[13].mxu0  ;;  %v1667_v18 = vpop.f32.mrb[13].mxu1  ;;  %v1959_v36 = vadd.f32 %v6028_v45, %v1897_v56  ;;  %v2391_v37 = vrot.slane %v6090_v63, 2  ;;  %v1958_v41 = vadd.f32 %v6028_v45, %v1896_v0 }
 0x150   : > { %v1898_v23 = vmax.f32 %v1097_v17, %v1667_v18  ;;  %v2918_v42 = vsel %vm2911_vm5, %v2915_v43, %v2917_v21  ;;  %v2127_v35 = vsel %vm2116_vm2, %v2124_v33, %v2126_v22  ;;  %v2658_v44 = vrot.slane %v6078_v49, 3 }
 0x151   : > { %v4996_v46 = vpack.i.bf16 %v2920_v28, %v2918_v42  ;;  %v5001_v47 = vpack.i.bf16 %v2129_v29, %v2127_v35  ;;  %v2394_v48 = vsel %vm2381_vm3, %v2391_v37, %v2393_v26  ;;  %v2656_v50 = vrot.slane %v6090_v63, 3 }
 0x152   : > { %v6125_v27 = vpop.f32.mrb[14].mxu0  ;;  %v6127_v32 = vpop.f32.mrb[14].mxu1  ;;  %v2131_v51 = vsel %vm2116_vm2, %v2128_v12, %v2130_v30  ;;  %v2133_v52 = vsel %vm2116_vm2, %v2130_v30, %v2132_v31  ;;  %v2395_v43 = vrot.slane %v6094_v3, 2  ;;  %v2397_v53 = vrot.slane %v6099_v9, 2 }
 0x153   : > { %4977 = vrot.lane.b32.xlu0 %v4976_v24, %s5472_s14  ;;  %4992 = vrot.lane.b32.xlu1 %v4991_v25, %s5471_s13  ;;  %v6134_v38 = vpop.f32.mrb[15].mxu1  ;;  %v6136_v40 = vpop.f32.mrb[15].mxu0  ;;  %v6158_v57 = vmax.f32 %v1957_v34, 0.0  ;;  %v1960_v58 = vadd.f32 %v6028_v45, %v1898_v23  ;;  %v2923_v60 = vrot.slane %v6078_v49, 4  ;;  %v2392_v0 = vsel %vm2381_vm3, %v2389_v39, %v2391_v37 }
 0x154   : > { %v2659_v1 = vsel %vm2646_vm4, %v2656_v50, %v2658_v44  ;;  %v2660_v2 = vrot.slane %v6094_v3, 3  ;;  %v2662_v4 = vrot.slane %v6099_v9, 3  ;;  %v6174_v5 = vmax.f32 %v1958_v41, 0.0 }
 0x155   : > { %8387 = vst [vmem:[#allocation12_spill] sm:$0xff] %v6158_v57  ;;  %v5006_v8 = vpack.i.bf16 %v2394_v48, %v2392_v0  ;;  %v5021_v10 = vpack.i.bf16 %v2133_v52, %v2131_v51  ;;  %v2921_v12 = vrot.slane %v6090_v63, 4  ;;  %v6177_v15 = vmax.f32 %v1959_v36, 0.0 }
 0x156   : > { %v6154_v56 = vpop.f32.mrb[16].mxu0  ;;  %v6156_v33 = vpop.f32.mrb[16].mxu1  ;;  %8388 = vst [vmem:[#allocation13_spill] sm:$0xff] %v6174_v5  ;;  %v2657_v17 = vsel %vm2646_vm4, %v2654_v54, %v2656_v50  ;;  %v2396_v39 = vsel %vm2381_vm3, %v2393_v26, %v2395_v43  ;;  %v2398_v18 = vsel %vm2381_vm3, %v2395_v43, %v2397_v53  ;;  %v6190_v22 = vmax.f32 %v1960_v58, 0.0 }
 0x157   : > { %4997 = vrot.lane.b32.xlu1 %v4996_v46, %s5472_s14  ;;  %5002 = vrot.lane.b32.xlu0 %v5001_v47, %s5469_s11  ;;  %v6164_v61 = vpop.f32.mrb[17].mxu0  ;;  %v6166_v62 = vpop.f32.mrb[17].mxu1  ;;  %8389 = vst [vmem:[#allocation14_spill] sm:$0xff] %v6177_v15  ;;  %v5011_v23 = vpack.i.bf16 %v2659_v1, %v2657_v17  ;;  %v2924_v24 = vsel %vm2911_vm5, %v2921_v12, %v2923_v60  ;;  %v2925_v54 = vrot.slane %v6094_v3, 4  ;;  %v2927_v30 = vrot.slane %v6099_v9, 4 }
 0x158   : > { %8390 = vst [vmem:[#allocation15_spill] sm:$0xff] %v6190_v22  ;;  %v2661_v28 = vsel %vm2646_vm4, %v2658_v44, %v2660_v2  ;;  %v2663_v29 = vsel %vm2646_vm4, %v2660_v2, %v2662_v4  ;;  %v1901_v34 = vmax.f32 %v6125_v27, %v6127_v32  ;;  %v5026_v36 = vpack.i.bf16 %v2398_v18, %v2396_v39 }
 0x159   : > { %v2922_v37 = vsel %vm2911_vm5, %v2919_v11, %v2921_v12  ;;  %v2134_v41 = vrot.slane %v6158_v57, 1  ;;  %v2136_v42 = vrot.slane %v6174_v5, 1  ;;  %v1961_v35 = vadd.f32 %v6028_v45, %v1899_v16 }
 0x15a   : > { %v6186_v19 = vpop.f32.mrb[18].mxu0  ;;  %v6188_v21 = vpop.f32.mrb[18].mxu1  ;;  %v5016_v44 = vpack.i.bf16 %v2924_v24, %v2922_v37  ;;  %v2399_v46 = vrot.slane %v6158_v57, 2  ;;  %v2401_v47 = vrot.slane %v6174_v5, 2  ;;  %v5031_v11 = vpack.i.bf16 %v2663_v29, %v2661_v28 }
 0x15b   : > { %5007 = vrot.lane.b32.xlu0 %v5006_v8, %s5470_s12  ;;  %5022 = vrot.lane.b32.xlu1 %v5021_v10, %s5469_s11  ;;  %v6196_v25 = vpop.f32.mrb[19].mxu1  ;;  %v6198_v26 = vpop.f32.mrb[19].mxu0  ;;  %v2926_v48 = vsel %vm2911_vm5, %v2923_v60, %v2925_v54  ;;  %v2138_v13 = vrot.slane %v6177_v15, 1  ;;  %v2140_v14 = vrot.slane %v6190_v22, 1  ;;  %v2928_v51 = vsel %vm2911_vm5, %v2925_v54, %v2927_v30 }
 0x15c   : > { %v1900_v52 = vmax.f32 %v6136_v40, %v6134_v38  ;;  %v1903_v43 = vmax.f32 %v6154_v56, %v6156_v33  ;;  %v1902_v58 = vmax.f32 %v6164_v61, %v6166_v62  ;;  %v2135_v60 = vsel %vm2116_vm2, %v2132_v31, %v2134_v41 }
 0x15d   : > { %v2137_v0 = vsel %vm2116_vm2, %v2134_v41, %v2136_v42  ;;  %v2664_v1 = vrot.slane %v6158_v57, 3  ;;  %v1905_v2 = vmax.f32 %v6186_v19, %v6188_v21  ;;  %v2400_v38 = vsel %vm2381_vm3, %v2397_v53, %v2399_v46 }
 0x15e   : > { %v6218_v27 = vpop.f32.mrb[20].mxu1  ;;  %v6220_v32 = vpop.f32.mrb[20].mxu0  ;;  %v2402_v40 = vsel %vm2381_vm3, %v2399_v46, %v2401_v47  ;;  %v2666_v56 = vrot.slane %v6174_v5, 3  ;;  %v2139_v31 = vsel %vm2116_vm2, %v2136_v42, %v2138_v13  ;;  %v2141_v62 = vsel %vm2116_vm2, %v2138_v13, %v2140_v14 }
 0x15f   : > { %5012 = vrot.lane.b32.xlu0 %v5011_v23, %s5471_s13  ;;  %5027 = vrot.lane.b32.xlu1 %v5026_v36, %s5470_s12  ;;  %v6227_v16 = vpop.f32.mrb[21].mxu0  ;;  %v6229_v50 = vpop.f32.mrb[21].mxu1  ;;  %v1963_v53 = vadd.f32 %v6028_v45, %v1901_v34  ;;  %v2403_v8 = vrot.slane %v6177_v15, 2  ;;  %v6268_v17 = vmax.f32 %v1961_v35, 0.0  ;;  %v5036_v39 = vpack.i.bf16 %v2928_v51, %v2926_v48 }
 0x160   : > { %v5041_v18 = vpack.i.bf16 %v2137_v0, %v2135_v60  ;;  %v2405_v19 = vrot.slane %v6190_v22, 2  ;;  %v5046_v21 = vpack.i.bf16 %v2402_v40, %v2400_v38  ;;  %v2665_v23 = vsel %vm2646_vm4, %v2662_v4, %v2664_v1 }
 0x161   : > { %v1962_v24 = vadd.f32 %v6028_v45, %v1900_v52  ;;  %v1965_v54 = vadd.f32 %v6028_v45, %v1903_v43  ;;  %v5061_v28 = vpack.i.bf16 %v2141_v62, %v2139_v31  ;;  %v2667_v29 = vsel %vm2646_vm4, %v2664_v1, %v2666_v56 }
 0x162   : > { %v6252_v33 = vpop.f32.mrb[22].mxu0  ;;  %v6254_v61 = vpop.f32.mrb[22].mxu1  ;;  %v2929_v34 = vrot.slane %v6158_v57, 4  ;;  %v1904_v36 = vmax.f32 %v6198_v26, %v6196_v25  ;;  %v6286_v4 = vmax.f32 %v1963_v53, 0.0  ;;  %v2404_v42 = vsel %vm2381_vm3, %v2401_v47, %v2403_v8 }
 0x163   : > { %5017 = vrot.lane.b32.xlu0 %v5016_v44, %s5472_s14  ;;  %5032 = vrot.lane.b32.xlu1 %v5031_v11, %s5471_s13  ;;  %v6264_v10 = vpop.f32.mrb[23].mxu1  ;;  %v6266_v12 = vpop.f32.mrb[23].mxu0  ;;  %v1964_v35 = vadd.f32 %v6028_v45, %v1902_v58  ;;  %v2931_v44 = vrot.slane %v6174_v5, 4  ;;  %v2406_v25 = vsel %vm2381_vm3, %v2403_v8, %v2405_v19  ;;  %v2668_v26 = vrot.slane %v6177_v15, 3 }
 0x164   : > { %8391 = vst [vmem:[#allocation16_spill] sm:$0xff] %v6286_v4  ;;  %v2670_v48 = vrot.slane %v6190_v22, 3  ;;  %v1966_v13 = vadd.f32 %v6028_v45, %v1904_v36  ;;  %v5051_v51 = vpack.i.bf16 %v2667_v29, %v2665_v23  ;;  %v6301_v47 = vmax.f32 %v1962_v24, 0.0 }
 0x165   : > { %v6303_v52 = vmax.f32 %v1965_v54, 0.0  ;;  %v1967_v43 = vadd.f32 %v6028_v45, %v1905_v2  ;;  %v2930_v58 = vsel %vm2911_vm5, %v2927_v30, %v2929_v34  ;;  %v2933_v0 = vrot.slane %v6177_v15, 4 }
 0x166   : > { %v6280_v37 = vpop.f32.mrb[24].mxu1  ;;  %v6282_v41 = vpop.f32.mrb[24].mxu0  ;;  %8392 = vst [vmem:[#allocation17_spill] sm:$0xff] %v6301_v47  ;;  %v6309_v60 = vmax.f32 %v1966_v13, 0.0  ;;  %v2935_v1 = vrot.slane %v6190_v22, 4  ;;  %v6319_v31 = vmax.f32 %v1964_v35, 0.0  ;;  %v2932_v2 = vsel %vm2911_vm5, %v2929_v34, %v2931_v44 }
 0x167   : > { %5037 = vrot.lane.b32.xlu1 %v5036_v39, %s5472_s14  ;;  %5042 = vrot.lane.b32.xlu0 %v5041_v18, %s5469_s11  ;;  %v6291_v46 = vpop.f32.mrb[25].mxu0  ;;  %v6293_v11 = vpop.f32.mrb[25].mxu1  ;;  %8393 = vst [vmem:[#allocation18_spill] sm:$0xff] %v6303_v52  ;;  %v1907_v30 = vmax.f32 %v6220_v32, %v6218_v27  ;;  %v1906_v62 = vmax.f32 %v6227_v16, %v6229_v50  ;;  %v2407_v54 = vrot.slane %v6268_v17, 2  ;;  %v2672_v27 = vrot.slane %v6268_v17, 3 }
 0x168   : > { %8394 = vst [vmem:[#allocation19_spill] sm:$0xff] %v6309_v60  ;;  %8395 = vst [vmem:[#allocation20_spill] sm:$0xff] %v6319_v31  ;;  %v2669_v39 = vsel %vm2646_vm4, %v2666_v56, %v2668_v26  ;;  %v2671_v18 = vsel %vm2646_vm4, %v2668_v26, %v2670_v48  ;;  %v1909_v23 = vmax.f32 %v6252_v33, %v6254_v61  ;;  %v2149_v32 = vrot.slane %v6303_v52, 1 }
 0x169   : > { %v5066_v24 = vpack.i.bf16 %v2406_v25, %v2404_v42  ;;  %v6338_v16 = vmax.f32 %v1967_v43, 0.0  ;;  %v2934_v50 = vsel %vm2911_vm5, %v2931_v44, %v2933_v0  ;;  %v2936_v56 = vsel %vm2911_vm5, %v2933_v0, %v2935_v1 }
 0x16a   : > { %v6313_v38 = vpop.f32.mrb[26].mxu0  ;;  %v6315_v40 = vpop.f32.mrb[26].mxu1  ;;  %v5056_v33 = vpack.i.bf16 %v2932_v2, %v2930_v58  ;;  %v5071_v61 = vpack.i.bf16 %v2671_v18, %v2669_v39  ;;  %v2937_v36 = vrot.slane %v6268_v17, 4  ;;  %v2147_v42 = vrot.slane %v6319_v31, 1 }
 0x16b   : > { %5047 = vrot.lane.b32.xlu0 %v5046_v21, %s5470_s12  ;;  %5062 = vrot.lane.b32.xlu1 %v5061_v28, %s5469_s11  ;;  %v6326_v53 = vpop.f32.mrb[27].mxu1  ;;  %v6328_v8 = vpop.f32.mrb[27].mxu0  ;;  %v2142_v21 = vrot.slane %v6268_v17, 1  ;;  %8396 = vst [vmem:[#allocation21_spill] sm:$0xff] %v6338_v16  ;;  %v8327_v28 = vrot.slane %v6309_v60, 1  ;;  %v2144_v26 = vrot.slane %v6301_v47, 1  ;;  %v5076_v43 = vpack.i.bf16 %v2936_v56, %v2934_v50 }
 0x16c   : > { %v2145_v13 = vrot.slane %v6286_v4, 1  ;;  %v2408_v17 = vsel %vm2381_vm3, %v2405_v19, %v2407_v54  ;;  %v2673_v58 = vsel %vm2646_vm4, %v2670_v48, %v2672_v27  ;;  %v6367_v0 = vsel %vm2116_vm2, %v2147_v42, %v2149_v32 }
 0x16d   : > { %v2143_v25 = vsel %vm2116_vm2, %v2140_v14, %v2142_v21  ;;  %v6372_v14 = vsel %vm2116_vm2, %v2149_v32, %v8327_v28  ;;  %v1969_v2 = vadd.f32 %v6028_v45, %v1907_v30  ;;  %v1968_v39 = vadd.f32 %v6028_v45, %v1906_v62 }
 0x16e   : > { %v6343_v29 = vpop.f32.mrb[28].mxu1  ;;  %v6345_v34 = vpop.f32.mrb[28].mxu0  ;;  %v6384_v19 = vsel %vm2911_vm5, %v2935_v1, %v2937_v36  ;;  %v2409_v21 = vrot.slane %v6301_v47, 2  ;;  %v2410_v30 = vrot.slane %v6286_v4, 2  ;;  %v1971_v54 = vadd.f32 %v6028_v45, %v1909_v23 }
 0x16f   : > { %5052 = vrot.lane.b32.xlu0 %v5051_v51, %s5471_s13  ;;  %5067 = vrot.lane.b32.xlu1 %v5066_v24, %s5470_s12  ;;  %v6351_v35 = vpop.f32.mrb[29].mxu0  ;;  %v6353_v44 = vpop.f32.mrb[29].mxu1  ;;  %v1908_v51 = vmax.f32 %v6266_v12, %v6264_v10  ;;  %v2414_v10 = vrot.slane %v6303_v52, 2  ;;  %v6395_v27 = vsel %vm2116_vm2, %v2144_v26, %v2145_v13  ;;  %v2412_v32 = vrot.slane %v6319_v31, 2 }
 0x170   : > { %v5101_v50 = vpack.i.bf16 %v6372_v14, %v6367_v0  ;;  %v6402_v56 = vsel %vm2116_vm2, %v2145_v13, %v2147_v42  ;;  %v6406_v36 = vmax.f32 %v1969_v2, 0.0  ;;  %v6408_v23 = vmax.f32 %v1968_v39, 0.0 }
 0x171   : > { %v1970_v1 = vadd.f32 %v6028_v45, %v1908_v51  ;;  %v6411_v26 = vsel %vm2381_vm3, %v2412_v32, %v2414_v10  ;;  %v2677_v28 = vrot.slane %v6319_v31, 3  ;;  %v8399_v42 = vrot.slane %v6309_v60, 2 }
 0x172   : > { %v6377_v12 = vpop.f32.mrb[30].mxu0  ;;  %v6379_v18 = vpop.f32.mrb[30].mxu1  ;;  %8397 = vst [vmem:[#allocation22_spill] sm:$0xff] %v6406_v36  ;;  %8398 = vst [vmem:[#allocation23_spill] sm:$0xff] %v6408_v23  ;;  %v6426_v0 = vsel %vm2381_vm3, %v2409_v21, %v2410_v30  ;;  %v2674_v14 = vrot.slane %v6301_v47, 3  ;;  %v2675_v2 = vrot.slane %v6286_v4, 3  ;;  %v1915_v59 = vmax.f32 %v6345_v34, %v6343_v29 }
 0x173   : > { %5057 = vrot.lane.b32.xlu0 %v5056_v33, %s5472_s14  ;;  %5072 = vrot.lane.b32.xlu1 %v5071_v61, %s5471_s13  ;;  %v6389_v62 = vpop.f32.mrb[31].mxu0  ;;  %v6391_v24 = vpop.f32.mrb[31].mxu1  ;;  %v2679_v33 = vrot.slane %v6303_v52, 3  ;;  %v6423_v13 = vsel %vm2381_vm3, %v2414_v10, %v8399_v42  ;;  %v6434_v22 = vmax.f32 %v1970_v1, 0.0  ;;  %v8401_v42 = vrot.slane %v6309_v60, 3 }
 0x174   : > { %v2942_v15 = vrot.slane %v6319_v31, 4  ;;  %v2939_v1 = vrot.slane %v6301_v47, 4  ;;  %v2940_v9 = vrot.slane %v6286_v4, 4  ;;  %v2418_v47 = vrot.slane %v6338_v16, 2 }
 0x175   : > { %8400 = vst [vmem:[#allocation24_spill] sm:$0xff] %v6434_v22  ;;  %v6442_v21 = vsel %vm2646_vm4, %v2677_v28, %v2679_v33  ;;  %v6447_v5 = vsel %vm2646_vm4, %v2679_v33, %v8401_v42  ;;  %v6464_v33 = vmax.f32 %v1971_v54, 0.0  ;;  %v5081_v42 = vpack.i.bf16 %v6402_v56, %v6395_v27 }
 0x176   : > { %v6414_v51 = vpop.f32.mrb[32].mxu0  ;;  %v6416_v48 = vpop.f32.mrb[32].mxu1  ;;  %v8403_v27 = vrot.slane %v6309_v60, 4  ;;  %v2687_v4 = vrot.slane %v6406_v36, 3  ;;  %v2952_v6 = vrot.slane %v6406_v36, 4  ;;  %v8412_v55 = vrot.slane %v6434_v22, 3 }
 0x177   : > { %2249 = vrot.lane.b32.xlu0 %v2143_v25, %s5469_s11  ;;  %5077 = vrot.lane.b32.xlu1 %v5076_v43, %s5472_s14  ;;  %v6430_v39 = vpop.f32.mrb[33].mxu0  ;;  %v6432_v61 = vpop.f32.mrb[33].mxu1  ;;  %v6437_v25 = vsel %vm2381_vm3, %v2410_v30, %v2412_v32  ;;  %v2944_v43 = vrot.slane %v6303_v52, 4  ;;  %v1911_v30 = vmax.f32 %v6282_v41, %v6280_v37  ;;  %v1910_v32 = vmax.f32 %v6291_v46, %v6293_v11 }
 0x178   : > { %8402 = vst [vmem:[#allocation25_spill] sm:$0xff] %v6464_v33  ;;  %v6469_v37 = vsel %vm2646_vm4, %v2674_v14, %v2675_v2  ;;  %v6472_v41 = vsel %vm2646_vm4, %v2675_v2, %v2677_v28  ;;  %v5111_v28 = vpack.i.bf16 %v6447_v5, %v6442_v21  ;;  %v2155_v14 = vrot.slane %v6408_v23, 1 }
 0x179   : > { %v6483_v54 = vsel %vm2911_vm5, %v2942_v15, %v2944_v43  ;;  %v6488_v56 = vsel %vm2911_vm5, %v2944_v43, %v8403_v27  ;;  %v2157_v2 = vrot.slane %v6406_v36, 1  ;;  %v2153_v43 = vrot.slane %v6338_v16, 1 }
 0x17a   : > { %v6458_v52 = vpop.f32.mrb[34].mxu0  ;;  %v6460_v57 = vpop.f32.mrb[34].mxu1  ;;  %v8413_v29 = vrot.slane %v6309_v60, 3 }
 0x17b   : > { %2514 = vrot.lane.b32.xlu0 %v2408_v17, %s5470_s12  ;;  %2779 = vrot.lane.b32.xlu1 %v2673_v58, %s5471_s13  ;;  %v6474_v46 = vpop.f32.mrb[35].mxu0  ;;  %v6476_v11 = vpop.f32.mrb[35].mxu1  ;;  %v5106_v17 = vpack.i.bf16 %v6423_v13, %v6411_v26  ;;  %v5086_v58 = vpack.i.bf16 %v6437_v25, %v6426_v0  ;;  %v6498_v0 = vsel %vm2911_vm5, %v2939_v1, %v2940_v9  ;;  %v2422_v1 = vrot.slane %v6406_v36, 2 }
 0x17c   : > { %v6501_v25 = vsel %vm2911_vm5, %v2940_v9, %v2942_v15  ;;  %v1912_v9 = vmax.f32 %v6328_v8, %v6326_v53  ;;  %v1973_v26 = vadd.f32 %v6028_v45, %v1911_v30  ;;  %v6528_v13 = vsel %vm2116_vm2, %v2155_v14, %v2157_v2 }
 0x17d   : > { %v8404_v53 = vrot.slane %v6434_v22, 1  ;;  %v8405_v30 = vrot.slane %v6309_v60, 1  ;;  %v6542_v31 = vsel %vm2116_vm2, %v2153_v43, %v2155_v14 }
 0x17e   : > { %v6504_v27 = vpop.f32.mrb[36].mxu0  ;;  %v6506_v5 = vpop.f32.mrb[36].mxu1  ;;  %v1974_v21 = vadd.f32 %v6028_v45, %v1912_v9  ;;  %v2683_v9 = vrot.slane %v6338_v16, 3  ;;  %v6566_v63 = vmax.f32 %v1973_v26, 0.0  ;;  %v1914_v26 = vmax.f32 %v6351_v35, %v6353_v44 }
 0x17f   : > { %3044 = vrot.lane.b32.xlu1 %v6384_v19, %s5472_s14  ;;  %5102 = vrot.lane.b32.xlu0 %v5101_v50, %s5469_s11  ;;  %v6517_v15 = vpop.f32.mrb[37].mxu0  ;;  %v6519_v10 = vpop.f32.mrb[37].mxu1  ;;  %v1972_v19 = vadd.f32 %v6028_v45, %v1910_v32  ;;  %v2420_v50 = vrot.slane %v6408_v23, 2  ;;  %v6533_v8 = vsel %vm2116_vm2, %v2157_v2, %v8404_v53  ;;  %v6539_v32 = vsel %vm2116_vm2, %v8405_v30, %v2153_v43 }
 0x180   : > { %v8406_v53 = vrot.slane %v6434_v22, 2  ;;  %v2685_v43 = vrot.slane %v6408_v23, 3  ;;  %8408 = vst [vmem:[#allocation27_spill] sm:$0xff] %v6566_v63  ;;  %v6605_v34 = vsel %vm2646_vm4, %v8413_v29, %v2683_v9  ;;  %v2948_v35 = vrot.slane %v6338_v16, 4 }
 0x181   : > { %v6553_v2 = vsel %vm2381_vm3, %v2420_v50, %v2422_v1  ;;  %v2161_v29 = vrot.slane %v6464_v33, 1 }
 0x182   : > { %v6546_v3 = vpop.f32.mrb[38].mxu0  ;;  %v6548_v20 = vpop.f32.mrb[38].mxu1  ;;  %v6558_v14 = vsel %vm2381_vm3, %v2422_v1, %v8406_v53  ;;  %v6576_v1 = vsel %vm2381_vm3, %v2418_v47, %v2420_v50  ;;  %v6579_v53 = vsel %vm2646_vm4, %v2685_v43, %v2687_v4  ;;  %v1917_v50 = vmax.f32 %v6377_v12, %v6379_v18 }
 0x183   : > { %5082 = vrot.lane.b32.xlu1 %v5081_v42, %s5469_s11  ;;  %5107 = vrot.lane.b32.xlu0 %v5106_v17, %s5470_s12  ;;  %v6562_v30 = vpop.f32.mrb[39].mxu0  ;;  %v6564_v49 = vpop.f32.mrb[39].mxu1  ;;  %v6568_v42 = vmax.f32 %v1972_v19, 0.0  ;;  %v8410_v17 = vrot.slane %v6309_v60, 2  ;;  %v6586_v19 = vmax.f32 %v1974_v21, 0.0  ;;  %v5141_v18 = vpack.i.bf16 %v6533_v8, %v6528_v13 }
 0x184   : > { %8407 = vst [vmem:[#allocation26_spill] sm:$0xff] %v6562_v30  ;;  %v5121_v21 = vpack.i.bf16 %v6542_v31, %v6539_v32  ;;  %v8415_v31 = vrot.slane %v6434_v22, 4  ;;  %v2165_v8 = vrot.slane %v6566_v63, 1  ;;  %v8421_v32 = vrot.slane %v6434_v22, 1 }
 0x185   : > { %8409 = vst [vmem:[#allocation28_spill] sm:$0xff] %v6568_v42  ;;  %v6573_v7 = vsel %vm2381_vm3, %v8410_v17, %v2418_v47  ;;  %8411 = vst [vmem:[#allocation29_spill] sm:$0xff] %v6586_v19  ;;  %v6591_v17 = vsel %vm2646_vm4, %v2687_v4, %v8412_v55  ;;  %v6608_v55 = vsel %vm2646_vm4, %v2683_v9, %v2685_v43  ;;  %v2950_v4 = vrot.slane %v6408_v23, 4 }
 0x186   : > { %v6596_v30 = vpop.f32.mrb[40].mxu0  ;;  %v6598_v36 = vpop.f32.mrb[40].mxu1  ;;  %v5146_v43 = vpack.i.bf16 %v6558_v14, %v6553_v2  ;;  %v6640_v13 = vsel %vm2911_vm5, %v2952_v6, %v8415_v31  ;;  %v2695_v23 = vrot.slane %v6566_v63, 3 }
 0x187   : > { %5087 = vrot.lane.b32.xlu1 %v5086_v58, %s5470_s12  ;;  %5112 = vrot.lane.b32.xlu0 %v5111_v28, %s5471_s13  ;;  %v6612_v44 = vpop.f32.mrb[41].mxu1  ;;  %v6614_v12 = vpop.f32.mrb[41].mxu0  ;;  %v8414_v58 = vmax.f32 %v6313_v38, %v6315_v40  ;;  %v6631_v47 = vsel %vm2911_vm5, %v2950_v4, %v2952_v6  ;;  %v1916_v38 = vmax.f32 %v6389_v62, %v6391_v24  ;;  %v8418_v6 = vrot.slane %v6309_v60, 4 }
 0x188   : > { %v8416_v62 = vpack.i.bf16 %v6472_v41, %v6469_v37  ;;  %v8417_v24 = vpack.i.bf16 %v6488_v56, %v6483_v54  ;;  %v6662_v31 = vsel %vm2911_vm5, %v2948_v35, %v2950_v4  ;;  %v2163_v40 = vrot.slane %v6568_v42, 1 }
 0x189   : > { %v1975_v28 = vadd.f32 %v6028_v45, %v8414_v58  ;;  %v6659_v58 = vsel %vm2911_vm5, %v8418_v6, %v2948_v35  ;;  %v2430_v41 = vrot.slane %v6566_v63, 2  ;;  %v1919_v56 = vmax.f32 %v6414_v51, %v6416_v48 }
 0x18a   : > { %v6644_v2 = vpop.f32.mrb[42].mxu0  ;;  %v6646_v14 = vpop.f32.mrb[42].mxu1  ;;  %v1977_v35 = vadd.f32 %v6028_v45, %v1915_v59  ;;  %v1979_v6 = vadd.f32 %v6028_v45, %v1917_v50  ;;  %v6684_v54 = vsel %vm2116_vm2, %v2163_v40, %v2165_v8  ;;  %v8419_v48 = vrot.slane %v6586_v19, 1 }
 0x18b   : > { %5092 = vrot.lane.b32.xlu1 %v8416_v62, %s5471_s13  ;;  %5117 = vrot.lane.b32.xlu0 %v8417_v24, %s5472_s14  ;;  %v6666_v9 = vpop.f32.mrb[43].mxu0  ;;  %v6668_v37 = vpop.f32.mrb[43].mxu1  ;;  %v1918_v62 = vmax.f32 %v6430_v39, %v6432_v61  ;;  %v1976_v24 = vadd.f32 %v6028_v45, %v1914_v26  ;;  %v2428_v61 = vrot.slane %v6568_v42, 2  ;;  %v8420_v26 = vpack.i.bf16 %v6501_v25, %v6498_v0 }
 0x18c   : > { %v6689_v51 = vsel %vm2116_vm2, %v2165_v8, %v8419_v48  ;;  %v6701_v50 = vmax.f32 %v1975_v28, 0.0  ;;  %v6706_v8 = vsel %vm2116_vm2, %v8421_v32, %v2161_v29  ;;  %v6709_v48 = vsel %vm2116_vm2, %v2161_v29, %v2163_v40 }
 0x18d   : > { %v1921_v4 = vmax.f32 %v6458_v52, %v6460_v57  ;;  %v6718_v0 = vsel %vm2381_vm3, %v2428_v61, %v2430_v41  ;;  %v8423_v25 = vrot.slane %v6586_v19, 2  ;;  %v2426_v28 = vrot.slane %v6464_v33, 2 }
 0x18e   : > { %v6692_v39 = vpop.f32.mrb[44].mxu0  ;;  %v6694_v59 = vpop.f32.mrb[44].mxu1  ;;  %v1920_v29 = vmax.f32 %v6474_v46, %v6476_v11  ;;  %v6730_v52 = vmax.f32 %v1977_v35, 0.0  ;;  %v6732_v40 = vmax.f32 %v1976_v24, 0.0  ;;  %v6734_v32 = vmax.f32 %v1979_v6, 0.0 }
 0x18f   : > { %5097 = vrot.lane.b32.xlu1 %v8420_v26, %s5472_s14  ;;  %5142 = vrot.lane.b32.xlu0 %v5141_v18, %s5469_s11  ;;  %v6713_v60 = vpop.f32.mrb[45].mxu1  ;;  %v6715_v16 = vpop.f32.mrb[45].mxu0  ;;  %v6723_v18 = vsel %vm2381_vm3, %v2430_v41, %v8423_v25  ;;  %v1978_v26 = vadd.f32 %v6028_v45, %v1916_v38  ;;  %v2693_v25 = vrot.slane %v6568_v42, 3  ;;  %v1981_v38 = vadd.f32 %v6028_v45, %v1919_v56 }
 0x190   : > { %8422 = vst [vmem:[#allocation30_spill] sm:$0xff] %v6715_v16  ;;  %8424 = vst [vmem:[#allocation31_spill] sm:$0xff] %v6730_v52  ;;  %v1923_v24 = vmax.f32 %v6504_v27, %v6506_v5  ;;  %v1980_v57 = vadd.f32 %v6028_v45, %v1918_v62  ;;  %v2691_v11 = vrot.slane %v6464_v33, 3  ;;  %v2960_v56 = vrot.slane %v6566_v63, 4 }
 0x191   : > { %8425 = vst [vmem:[#allocation32_spill] sm:$0xff] %v6732_v40  ;;  %8426 = vst [vmem:[#allocation33_spill] sm:$0xff] %v6734_v32  ;;  %v6766_v35 = vsel %vm2381_vm3, %v2426_v28, %v2428_v61  ;;  %v2958_v27 = vrot.slane %v6568_v42, 4  ;;  %v1922_v32 = vmax.f32 %v6517_v15, %v6519_v10  ;;  %v2956_v62 = vrot.slane %v6464_v33, 4 }
 0x192   : > { %v6741_v16 = vpop.f32.mrb[46].mxu0  ;;  %v6743_v46 = vpop.f32.mrb[46].mxu1  ;;  %v1927_v63 = vmax.f32 %v6596_v30, %v6598_v36  ;;  %v8431_v5 = vpack.i.bf16 %v6576_v1, %v6573_v7  ;;  %v8432_v10 = vpack.i.bf16 %v6591_v17, %v6579_v53  ;;  %v1983_v15 = vadd.f32 %v6028_v45, %v1921_v4 }
 0x193   : > { %5122 = vrot.lane.b32.xlu1 %v5121_v21, %s5469_s11  ;;  %5147 = vrot.lane.b32.xlu0 %v5146_v43, %s5470_s12  ;;  %v6753_v6 = vpop.f32.mrb[47].mxu1  ;;  %v6755_v41 = vpop.f32.mrb[47].mxu0  ;;  %v8429_v21 = vrot.slane %v6434_v22, 2  ;;  %v1982_v1 = vadd.f32 %v6028_v45, %v1920_v29  ;;  %v8435_v53 = vrot.slane %v6434_v22, 3  ;;  %v1984_v29 = vadd.f32 %v6028_v45, %v1922_v32 }
 0x194   : > { %8427 = vst [vmem:[#allocation34_spill] sm:$0xff] %v6753_v6  ;;  %8428 = vst [vmem:[#allocation35_spill] sm:$0xff] %v6755_v41  ;;  %v8430_v41 = vld [vmem:[#allocation26_spill] sm:$0xff]  ;;  %v8439_v32 = vpack.i.bf16 %v6640_v13, %v6631_v47  ;;  %v1931_v13 = vmax.f32 %v6692_v39, %v6694_v59  ;;  %v6888_v39 = vld [vmem:[%s8323_s2] ss:$0 sm:$0xff] }
 0x195   : > { %v6761_v43 = vsel %vm2381_vm3, %v8429_v21, %v2426_v28  ;;  %v1925_v21 = vmax.f32 %v6546_v3, %v6548_v20  ;;  %v1924_v6 = vmax.f32 %v8430_v41, %v6564_v49  ;;  %v6791_v20 = vmax.f32 %v1978_v26, 0.0 }
 0x196   : > { %v6779_v61 = vpop.f32.mrb[48].mxu1  ;;  %v6781_v28 = vpop.f32.mrb[48].mxu0  ;;  %v6794_v49 = vsel %vm2646_vm4, %v2693_v25, %v2695_v23  ;;  %v8434_v3 = vrot.slane %v6586_v19, 3  ;;  %v6810_v17 = vsel %vm2646_vm4, %v8435_v53, %v2691_v11  ;;  %v6813_v26 = vsel %vm2646_vm4, %v2691_v11, %v2693_v25 }
 0x197   : > { %5127 = vrot.lane.b32.xlu1 %v8431_v5, %s5470_s12  ;;  %5152 = vrot.lane.b32.xlu0 %v8432_v10, %s5471_s13  ;;  %8433 = vst [vmem:[#allocation26_spill] sm:$0xff] %v6791_v20  ;;  %v6802_v30 = vpop.f32.mrb[49].mxu0  ;;  %v6804_v7 = vpop.f32.mrb[49].mxu1  ;;  %v6816_v41 = vsel %vm2911_vm5, %v2958_v27, %v2960_v56  ;;  %v1985_v5 = vadd.f32 %v6028_v45, %v1923_v24  ;;  %v2434_v10 = vrot.slane %v6701_v50, 2  ;;  %v6866_v47 = vmax.f32 %v1982_v1, 0.0 }
 0x198   : > { %v6799_v36 = vsel %vm2646_vm4, %v2695_v23, %v8434_v3  ;;  %v8436_v23 = vrot.slane %v6586_v19, 4  ;;  %v8437_v3 = vrot.slane %v6434_v22, 4  ;;  %v6832_v25 = vsel %vm2911_vm5, %v2956_v62, %v2958_v27 }
 0x199   : > { %v1926_v11 = vmax.f32 %v6614_v12, %v6612_v44  ;;  %v8438_v45 = vpack.i.bf16 %v6608_v55, %v6605_v34  ;;  %v6850_v27 = vmax.f32 %v1981_v38, 0.0  ;;  %v6852_v44 = vmax.f32 %v1980_v57, 0.0 }
 0x19a   : > { %v6821_v4 = vsel %vm2911_vm5, %v2960_v56, %v8436_v23  ;;  %v6829_v53 = vsel %vm2911_vm5, %v8437_v3, %v2956_v62  ;;  %v1929_v56 = vmax.f32 %v6644_v2, %v6646_v14  ;;  %v6838_v23 = vpop.f32.mrb[50].mxu1  ;;  %v6840_v24 = vpop.f32.mrb[50].mxu0  ;;  %v5166_v12 = vpack.i.bf16 %v6766_v35, %v6761_v43  ;;  %v8447_v3 = vld [vmem:[#allocation30_spill] sm:$0xff] }
 0x19b   : > { %5132 = vrot.lane.b32.xlu1 %v8438_v45, %s5471_s13  ;;  %5157 = vrot.lane.b32.xlu0 %v8439_v32, %s5472_s14  ;;  %8440 = vst [vmem:[#allocation36_spill] sm:$0xff] %v6850_v27  ;;  %8441 = vst [vmem:[#allocation37_spill] sm:$0xff] %v6852_v44  ;;  %v1928_v2 = vmax.f32 %v6666_v9, %v6668_v37  ;;  %v6858_v14 = vpop.f32.mrb[51].mxu0  ;;  %v6860_v62 = vpop.f32.mrb[51].mxu1  ;;  %v5191_v34 = vpack.i.bf16 %v6799_v36, %v6794_v49  ;;  %v6864_v55 = vmax.f32 %v1983_v15, 0.0 }
 0x19c   : > { %v6874_v37 = vmax.f32 %v1985_v5, 0.0  ;;  %v6878_v35 = vmax.f32 %v1984_v29, 0.0  ;;  %v8443_v43 = vrot.slane %v6586_v19, 2  ;;  %v6891_v59 = vadd.f32 %v6888_v39, %v1925_v21 }
 0x19d   : > { %v6894_v36 = vadd.f32 %v6888_v39, %v1924_v6  ;;  %v8445_v5 = vpack.i.bf16 %v6662_v31, %v6659_v58  ;;  %v8446_v29 = vpack.i.bf16 %v6689_v51, %v6684_v54  ;;  %v2169_v21 = vrot.slane %v6701_v50, 1 }
 0x19e   : > { %8442 = vst [vmem:[#allocation38_spill] sm:$0xff] %v6874_v37  ;;  %v6883_v49 = vsel %vm2381_vm3, %v8443_v43, %v2434_v10  ;;  %8444 = vst [vmem:[#allocation39_spill] sm:$0xff] %v6891_v59  ;;  %v6896_v15 = vpop.f32.mrb[52].mxu1  ;;  %v6898_v1 = vpop.f32.mrb[52].mxu0  ;;  %v2699_v10 = vrot.slane %v6701_v50, 3  ;;  %v1991_v6 = vadd.f32 %v6888_v39, %v1929_v56  ;;  %v1930_v45 = vmax.f32 %v8447_v3, %v6713_v60 }
 0x19f   : > { %5137 = vrot.lane.b32.xlu1 %v8445_v5, %s5472_s14  ;;  %5182 = vrot.lane.b32.xlu0 %v8446_v29, %s5469_s11  ;;  %v6913_v32 = vpop.f32.mrb[53].mxu0  ;;  %v6915_v43 = vpop.f32.mrb[53].mxu1  ;;  %v6918_v58 = vadd.f32 %v6888_v39, %v1927_v63  ;;  %v2171_v31 = vrot.slane %v6732_v40, 1  ;;  %v2172_v54 = vrot.slane %v6730_v52, 1  ;;  %v2174_v51 = vrot.slane %v6791_v20, 1 }
 0x1a0   : > { %v1990_v5 = vadd.f32 %v6888_v39, %v1928_v2  ;;  %v1993_v56 = vadd.f32 %v6888_v39, %v1931_v13  ;;  %v2964_v29 = vrot.slane %v6701_v50, 4  ;;  %v2966_v60 = vrot.slane %v6732_v40, 4 }
 0x1a1   : > { %8448 = vst [vmem:[#allocation30_spill] sm:$0xff] %v6918_v58  ;;  %v1992_v3 = vadd.f32 %v6888_v39, %v1930_v45  ;;  %v2967_v38 = vrot.slane %v6730_v52, 4  ;;  %v1933_v9 = vmax.f32 %v6741_v16, %v6743_v46  ;;  %v8451_v2 = vpack.i.bf16 %v6709_v48, %v6706_v8 }
 0x1a2   : > { %v6932_v57 = vpop.f32.mrb[54].mxu1  ;;  %v6934_v22 = vpop.f32.mrb[54].mxu0  ;;  %v8452_v50 = vpack.i.bf16 %v6723_v18, %v6718_v0  ;;  %v8453_v13 = vrot.slane %v6586_v19, 1  ;;  %v8454_v16 = vrot.slane %v6586_v19, 3  ;;  %v6955_v63 = vadd.f32 %v6888_v39, %v1926_v11 }
 0x1a3   : > { %8449 = vst [vmem:[#allocation40_spill] sm:$0xff] %v6932_v57  ;;  %8450 = vst [vmem:[#allocation41_spill] sm:$0xff] %v6934_v22  ;;  %5162 = vrot.lane.b32.xlu1 %v8451_v2, %s5469_s11  ;;  %v6957_v8 = vmax.f32 %v1991_v6, 0.0  ;;  %v6959_v48 = vpop.f32.mrb[55].mxu0  ;;  %v6961_v2 = vpop.f32.mrb[55].mxu1  ;;  %v6964_v0 = vsel %vm2116_vm2, %v2171_v31, %v2172_v54  ;;  %v6967_v18 = vsel %vm2116_vm2, %v2172_v54, %v2174_v51  ;;  %v6973_v11 = vmax.f32 %v1993_v56, 0.0 }
 0x1a4   : > { %5187 = vrot.lane.b32.xlu0 %v8452_v50, %s5470_s12  ;;  %v6947_v45 = vsel %vm2116_vm2, %v8453_v13, %v2169_v21  ;;  %v6952_v46 = vsel %vm2646_vm4, %v8454_v16, %v2699_v10  ;;  %8455 = vst [vmem:[#allocation42_spill] sm:$0xff] %v6955_v63  ;;  %8456 = vst [vmem:[#allocation43_spill] sm:$0xff] %v6959_v48  ;;  %v2436_v21 = vrot.slane %v6732_v40, 2  ;;  %v2437_v10 = vrot.slane %v6730_v52, 2  ;;  %v8463_v56 = vld [vmem:[#allocation35_spill] sm:$0xff]  ;;  %v8508_v57 = vld [vmem:[#allocation6_spill] sm:$0xff] }
 0x1a5   : > { %8457 = vst [vmem:[#allocation44_spill] sm:$0xff] %v6961_v2  ;;  %v6971_v50 = vmax.f32 %v1990_v5, 0.0  ;;  %8458 = vst [vmem:[#allocation45_spill] sm:$0xff] %v6973_v11  ;;  %v8459_v6 = vrot.slane %v6586_v19, 4  ;;  %v2439_v16 = vrot.slane %v6791_v20, 2  ;;  %v6981_v31 = vmax.f32 %v1992_v3, 0.0 }
 0x1a6   : > { %v6984_v54 = vsel %vm2911_vm5, %v2966_v60, %v2967_v38  ;;  %v8461_v33 = vrot.slane %v6791_v20, 4  ;;  %v8462_v5 = vld [vmem:[#allocation34_spill] sm:$0xff]  ;;  %v2701_v3 = vrot.slane %v6732_v40, 3  ;;  %v2702_v60 = vrot.slane %v6730_v52, 3 }
 0x1a7   : > { %v6978_v13 = vsel %vm2911_vm5, %v8459_v6, %v2964_v29  ;;  %8460 = vst [vmem:[#allocation46_spill] sm:$0xff] %v6981_v31  ;;  %v1932_v63 = vmax.f32 %v8463_v56, %v8462_v5  ;;  %5167 = vrot.lane.b32.xlu1 %v5166_v12, %s5470_s12  ;;  %v2704_v6 = vrot.slane %v6791_v20, 3  ;;  %v7001_v19 = vsel %vm2381_vm3, %v2436_v21, %v2437_v10 }
 0x1a8   : > { %v6989_v42 = vsel %vm2911_vm5, %v2967_v38, %v8461_v33  ;;  %5192 = vrot.lane.b32.xlu0 %v5191_v34, %s5471_s13  ;;  %v1995_v33 = vadd.f32 %v6888_v39, %v1933_v9  ;;  %v8464_v38 = vld [vmem:[#allocation33_spill] sm:$0xff]  ;;  %v7009_v56 = vsel %vm2381_vm3, %v2437_v10, %v2439_v16  ;;  %v2728_v21 = vrot.slane %v6971_v50, 3 }
 0x1a9   : > { %v2176_v5 = vrot.slane %v8464_v38, 1  ;;  %v2441_v29 = vrot.slane %v8464_v38, 2  ;;  %v1994_v52 = vadd.f32 %v6888_v39, %v1932_v63  ;;  %v2729_v9 = vrot.slane %v6957_v8, 3 }
 0x1aa   : > { %v8465_v12 = vpack.i.bf16 %v6813_v26, %v6810_v17  ;;  %v8466_v10 = vpack.i.bf16 %v6821_v4, %v6816_v41  ;;  %v7026_v34 = vsel %vm2646_vm4, %v2701_v3, %v2702_v60  ;;  %v7029_v63 = vsel %vm2646_vm4, %v2702_v60, %v2704_v6 }
 0x1ab   : > { %v2706_v40 = vrot.slane %v8464_v38, 3  ;;  %v8357_v58 = vrot.slane %v6852_v44, 3  ;;  %v7035_v17 = vmax.f32 %v1995_v33, 0.0  ;;  %v7038_v26 = vsel %vm2116_vm2, %v2174_v51, %v2176_v5  ;;  %v7111_v33 = vpop.permute.xlu1 %734 }
 0x1ac   : > { %5172 = vrot.lane.b32.xlu1 %v8465_v12, %s5471_s13  ;;  %5197 = vrot.lane.b32.xlu0 %v8466_v10, %s5472_s14  ;;  %v8467_v41 = vrot.slane %v6852_v44, 1  ;;  %v7046_v3 = vsel %vm2381_vm3, %v2439_v16, %v2441_v29  ;;  %v8468_v60 = vrot.slane %v6852_v44, 2  ;;  %v1934_v51 = vmax.f32 %v6802_v30, %v6804_v7  ;;  %v7060_v10 = vld [vmem:[%s8324_s3] sm:$0xff]  ;;  %v7080_v7 = vpop.permute.xlu0 %724  ;;  %8473 = vst [vmem:[#allocation47_spill] sm:$0xff] %v7111_v33 }
 0x1ad   : > { %8469 = vst [vmem:[#allocation34_spill] sm:$0xff] %v7060_v10  ;;  %v8471_v30 = vpack.i.bf16 %v6832_v25, %v6829_v53  ;;  %8472 = vst [vmem:[#allocation35_spill] sm:$0xff] %v7080_v7  ;;  %v2993_v25 = vrot.slane %v6971_v50, 4  ;;  %4666 = vmatprep.mubr.msk.f32.mxu0 %vm3388_vm6, %v7060_v10  ;;  %4698 = vmatprep.mubr.msk.f32.mxu1 %vm3388_vm6, %v7060_v10  ;;  %v2203_v53 = vrot.slane %v6973_v11, 1  ;;  %v2445_v16 = vrot.slane %v6850_v27, 2 }
 0x1ae   : > { %v7043_v4 = vsel %vm2116_vm2, %v2176_v5, %v8467_v41  ;;  %v7051_v12 = vsel %vm2381_vm3, %v2441_v29, %v8468_v60  ;;  %v7064_v5 = vmax.f32 %v1994_v52, 0.0  ;;  %v7067_v41 = vsel %vm2646_vm4, %v2728_v21, %v2729_v9 }
 0x1af   : > { %v8470_v29 = vrot.slane %v6981_v31, 3  ;;  %v7085_v21 = vsel %vm2646_vm4, %v2704_v6, %v2706_v40  ;;  %v2971_v6 = vrot.slane %v8464_v38, 4  ;;  %v8474_v59 = vrot.slane %v6981_v31, 4 }
 0x1b0   : > { %5177 = vrot.lane.b32.xlu1 %v8471_v30, %s5472_s14  ;;  %2540 = vrot.lane.b32.xlu0 %v6883_v49, %s5470_s12  ;;  %v2994_v49 = vrot.slane %v6957_v8, 4  ;;  %v2468_v30 = vrot.slane %v6973_v11, 2  ;;  %v7131_v7 = vpop.permute.xlu0 %729  ;;  %v8476_v52 = vrot.slane %v6791_v20, 4  ;;  %v8365_v2 = vrot.slane %v7064_v5, 4 }
 0x1b1   : > { %v7072_v60 = vsel %vm2646_vm4, %v2729_v9, %v8470_v29  ;;  %v7090_v9 = vsel %vm2646_vm4, %v2706_v40, %v8357_v58  ;;  %v2180_v58 = vrot.slane %v6850_v27, 1  ;;  %8475 = vst [vmem:[#allocation48_spill] sm:$0xff] %v7131_v7  ;;  %v1996_v40 = vadd.f32 %v6888_v39, %v1934_v51 }
 0x1b2   : > { %v7122_v29 = vsel %vm2911_vm5, %v2993_v25, %v2994_v49  ;;  %v7127_v33 = vsel %vm2911_vm5, %v2994_v49, %v8474_v59  ;;  %v7137_v38 = vsel %vm2911_vm5, %v8476_v52, %v2971_v6  ;;  %v8477_v25 = vrot.slane %v6852_v44, 4 }
 0x1b3   : > { %v8478_v59 = vrot.slane %v6981_v31, 1  ;;  %v8481_v7 = vrot.slane %v6866_v47, 1  ;;  %v8492_v48 = vrot.slane %v6981_v31, 3 }
 0x1b4   : > { %2275 = vrot.lane.b32.xlu1 %v6947_v45, %s5469_s11  ;;  %2805 = vrot.lane.b32.xlu0 %v6952_v46, %s5471_s13  ;;  %v7142_v10 = vsel %vm2911_vm5, %v2971_v6, %v8477_v25  ;;  %v8479_v46 = vrot.slane %v7064_v5, 1  ;;  %v8480_v45 = vrot.slane %v6852_v44, 1  ;;  %v8482_v25 = vrot.slane %v6981_v31, 2 }
 0x1b5   : > { %v7147_v49 = vsel %vm2116_vm2, %v8478_v59, %v2203_v53  ;;  %v7162_v6 = vsel %vm2116_vm2, %v2180_v58, %v8481_v7 }
 0x1b6   : > { %v7152_v51 = vsel %vm2116_vm2, %v2203_v53, %v8479_v46  ;;  %v7157_v52 = vsel %vm2116_vm2, %v8480_v45, %v2180_v58  ;;  %v7167_v59 = vsel %vm2381_vm3, %v8482_v25, %v2468_v30  ;;  %v8483_v53 = vpack.i.bf16 %v6967_v18, %v6964_v0 }
 0x1b7   : > { %v8484_v45 = vrot.slane %v7064_v5, 2  ;;  %v8485_v58 = vrot.slane %v6852_v44, 2  ;;  %v8486_v25 = vrot.slane %v6866_v47, 2  ;;  %v2710_v18 = vrot.slane %v6850_v27, 3 }
 0x1b8   : > { %3070 = vrot.lane.b32.xlu0 %v6978_v13, %s5472_s14  ;;  %5202 = vrot.lane.b32.xlu1 %v8483_v53, %s5469_s11  ;;  %v2733_v13 = vrot.slane %v6973_v11, 3  ;;  %v2998_v0 = vrot.slane %v6973_v11, 4  ;;  %v7206_v53 = vmax.f32 %v1996_v40, 0.0 }
 0x1b9   : > { %v7178_v46 = vsel %vm2381_vm3, %v2468_v30, %v8484_v45  ;;  %v7183_v7 = vsel %vm2381_vm3, %v8485_v58, %v2445_v16  ;;  %v7188_v20 = vsel %vm2381_vm3, %v2445_v16, %v8486_v25  ;;  %v1937_v30 = vmax.f32 %v6840_v24, %v6838_v23  ;;  %v7196_v45 = vpop.permute.xlu1 %739  ;;  %v4963_v58 = vpop.permute.xlu0 %4962 }
 0x1ba   : > { %8487 = vst [vmem:[#allocation49_spill] sm:$0xff] %v7196_v45  ;;  %v8488_v16 = vmax.f32 %v6781_v28, %v6779_v61  ;;  %v7215_v45 = vmax.f32 %v6894_v36, 0.0  ;;  %v8490_v61 = vpack.i.bf16 %v6989_v42, %v6984_v54  ;;  %v8491_v28 = vpack.i.bf16 %v7009_v56, %v7001_v19 }
 0x1bb   : > { %v1936_v36 = vmax.f32 %v6858_v14, %v6860_v62  ;;  %v7234_v42 = vsel %vm2646_vm4, %v8492_v48, %v2733_v13  ;;  %v8493_v54 = vrot.slane %v7064_v5, 3  ;;  %v8494_v56 = vrot.slane %v6852_v44, 3 }
 0x1bc   : > { %v1997_v25 = vadd.f32 %v6888_v39, %v8488_v16  ;;  %8489 = vst [vmem:[#allocation50_spill] sm:$0xff] %v7215_v45  ;;  %5217 = vrot.lane.b32.xlu0 %v8490_v61, %s5472_s14  ;;  %5207 = vrot.lane.b32.xlu1 %v8491_v28, %s5470_s12  ;;  %v8495_v28 = vrot.slane %v6866_v47, 3  ;;  %v4965_v62 = vunpack.i.h.bf16 %v4963_v58  ;;  %v4964_v16 = vunpack.i.l.bf16 %v4963_v58 }
 0x1bd   : > { %v7239_v19 = vsel %vm2646_vm4, %v2733_v13, %v8493_v54  ;;  %v7244_v61 = vsel %vm2646_vm4, %v8494_v56, %v2710_v18  ;;  %v4968_v40 = vpop.permute.xlu0 %4967  ;;  %v4983_v48 = vpop.permute.xlu1 %4982  ;;  %v8496_v24 = vrot.slane %v6981_v31, 4  ;;  %v7259_v54 = vsel %vm2911_vm5, %v2998_v0, %v8365_v2 }
 0x1be   : > { %v7249_v14 = vsel %vm2646_vm4, %v2710_v18, %v8495_v28  ;;  %v2975_v56 = vrot.slane %v6850_v27, 4  ;;  %v2207_v28 = vrot.slane %v7035_v17, 1  ;;  %v8497_v23 = vpack.i.bf16 %v7029_v63, %v7026_v34  ;;  %v8499_v34 = vld [vmem:[#allocation3_spill] sm:$0xff] }
 0x1bf   : > { %v7254_v13 = vsel %vm2911_vm5, %v8496_v24, %v2998_v0  ;;  %v8498_v24 = vpack.i.bf16 %v7043_v4, %v7038_v26  ;;  %v7273_v0 = vmax.f32 %v1997_v25, 0.0  ;;  %v1999_v18 = vadd.f32 %v6888_v39, %v1937_v30 }
 0x1c0   : > { %5212 = vrot.lane.b32.xlu1 %v8497_v23, %s5471_s13  ;;  %v1998_v11 = vadd.f32 %v6888_v39, %v1936_v36  ;;  %v4970_v58 = vunpack.i.h.bf16 %v4968_v40  ;;  %v4969_v27 = vunpack.i.l.bf16 %v4968_v40  ;;  %v4985_v45 = vunpack.i.h.bf16 %v4983_v48  ;;  %v8500_v23 = vld [vmem:[#allocation4_spill] sm:$0xff] }
 0x1c1   : > { %5222 = vrot.lane.b32.xlu0 %v8498_v24, %s5469_s11  ;;  %v4984_v22 = vunpack.i.l.bf16 %v4983_v48  ;;  %v3178_v63 = vsel %vm3176_vm7, %v8499_v34, %v4965_v62  ;;  %v3177_v26 = vsel %vm3176_vm7, %v8500_v23, %v4964_v16  ;;  %v4973_v4 = vpop.permute.xlu0 %4972  ;;  %v4988_v25 = vpop.permute.xlu1 %4987  ;;  %v8501_v36 = vrot.slane %v6852_v44, 4 }
 0x1c2   : > { %v8502_v48 = vrot.slane %v6866_v47, 4  ;;  %v8503_v16 = vrot.slane %v7064_v5, 1  ;;  %v8504_v23 = vrot.slane %v7206_v53, 1  ;;  %v4975_v30 = vunpack.i.h.bf16 %v4973_v4 }
 0x1c3   : > { %v7290_v40 = vsel %vm2911_vm5, %v8501_v36, %v2975_v56  ;;  %v4974_v2 = vunpack.i.l.bf16 %v4973_v4  ;;  %v8505_v36 = vpack.i.bf16 %v7051_v12, %v7046_v3  ;;  %v3230_v44 = vsel %vm3229_vm8, %v3177_v26, %v4969_v27 }
 0x1c4   : > { %v7295_v62 = vsel %vm2911_vm5, %v2975_v56, %v8502_v48  ;;  %v7300_v34 = vsel %vm2116_vm2, %v8503_v16, %v2207_v28  ;;  %v7305_v24 = vsel %vm2116_vm2, %v2207_v28, %v8504_v23  ;;  %v8506_v56 = vpack.i.bf16 %v7072_v60, %v7067_v41  ;;  %v8507_v23 = vld [vmem:[#allocation5_spill] sm:$0xff] }
 0x1c5   : > { %5227 = vrot.lane.b32.xlu0 %v8505_v36, %s5470_s12  ;;  %v7315_v48 = vmax.f32 %v1999_v18, 0.0  ;;  %v7317_v16 = vmax.f32 %v1998_v11, 0.0  ;;  %v3231_v28 = vsel %vm3229_vm8, %v3178_v63, %v4970_v58  ;;  %v3180_v4 = vsel %vm3176_vm7, %v8507_v23, %v4985_v45  ;;  %v4978_v37 = vpop.permute.xlu0 %4977  ;;  %v4993_v31 = vpop.permute.xlu1 %4992 }
 0x1c6   : > { %5332 = vrot.lane.b32.xlu1 %v8506_v56, %s5471_s13  ;;  %v3179_v3 = vsel %vm3176_vm7, %v8508_v57, %v4984_v22  ;;  %v4990_v12 = vunpack.i.h.bf16 %v4988_v25  ;;  %v4989_v36 = vunpack.i.l.bf16 %v4988_v25  ;;  %v5256_v41 = vpack.i.bf16 %v7295_v62, %v7290_v40 }
 0x1c7   : > { %v5361_v11 = vpack.i.bf16 %v7305_v24, %v7300_v34  ;;  %v4980_v60 = vunpack.i.h.bf16 %v4978_v37  ;;  %v4979_v27 = vunpack.i.l.bf16 %v4978_v37  ;;  %v2184_v18 = vrot.slane %v6864_v55, 1 }
 0x1c8   : > { %v8375_v58 = vrot.slane %v6878_v35, 1  ;;  %v3283_v45 = vsel %vm3282_vm9, %v3230_v44, %v4974_v2  ;;  %v3284_v22 = vsel %vm3282_vm9, %v3231_v28, %v4975_v30  ;;  %v4995_v57 = vunpack.i.h.bf16 %v4993_v31 }
 0x1c9   : > { %v4994_v63 = vunpack.i.l.bf16 %v4993_v31  ;;  %v8509_v26 = vpack.i.bf16 %v7090_v9, %v7085_v21  ;;  %v8510_v25 = vpack.i.bf16 %v7127_v33, %v7122_v29  ;;  %v3336_v37 = vsel %vm3335_vm10, %v3283_v45, %v4979_v27  ;;  %v4998_v33 = vpop.permute.xlu1 %4997  ;;  %v5003_v29 = vpop.permute.xlu0 %5002 }
 0x1ca   : > { %v3337_v56 = vsel %vm3335_vm10, %v3284_v22, %v4980_v60  ;;  %v2472_v2 = vrot.slane %v7035_v17, 2  ;;  %v2474_v31 = vrot.slane %v7206_v53, 2  ;;  %v3232_v21 = vsel %vm3229_vm8, %v3179_v3, %v4989_v36 }
 0x1cb   : > { %5232 = vrot.lane.b32.xlu0 %v8509_v26, %s5471_s13  ;;  %5337 = vrot.lane.b32.xlu1 %v8510_v25, %s5472_s14  ;;  %v3233_v9 = vsel %vm3229_vm8, %v3180_v4, %v4990_v12  ;;  %v4784_v30 = vpack.c.bf16 %v3337_v56, %v3336_v37  ;;  %v2449_v28 = vrot.slane %v6864_v55, 2  ;;  %v5000_v23 = vunpack.i.h.bf16 %v4998_v33 }
 0x1cc   : > { %v4999_v60 = vunpack.i.l.bf16 %v4998_v33  ;;  %v8374_v27 = vrot.slane %v6878_v35, 2  ;;  %v2737_v45 = vrot.slane %v7035_v17, 3  ;;  %v3285_v22 = vsel %vm3282_vm9, %v3232_v21, %v4994_v63 }
 0x1cd   : > { %v3286_v26 = vsel %vm3282_vm9, %v3233_v9, %v4995_v57  ;;  %4786 = vmatprep.subr.msk.bf16.mxu0 %vm7345_vm11, %v4784_v30  ;;  %v8513_v4 = vpack.i.bf16 %v7142_v10, %v7137_v38  ;;  %v8376_v3 = vrot.slane %v7206_v53, 3  ;;  %v2714_v12 = vrot.slane %v6864_v55, 3  ;;  %v5008_v10 = vpop.permute.xlu0 %5007  ;;  %v5023_v56 = vpop.permute.xlu1 %5022 }
 0x1ce   : > { %v3338_v36 = vsel %vm3335_vm10, %v3285_v22, %v4999_v60  ;;  %v3339_v25 = vsel %vm3335_vm10, %v3286_v26, %v5000_v23  ;;  %v8514_v57 = vpack.i.bf16 %v7152_v51, %v7147_v49  ;;  %v8515_v63 = vrot.slane %v6866_v47, 1  ;;  %4789 = vmatpush3.bf16.xpose.msk.msra.mxu0 %vm7345_vm11, %v4784_v30 }
 0x1cf   : > { %5237 = vrot.lane.b32.xlu0 %v8513_v4, %s5472_s14  ;;  %v8373_v38 = vrot.slane %v6878_v35, 3  ;;  %v4790_v21 = vpack.c.bf16 %v3339_v25, %v3338_v36  ;;  %v7383_v9 = vsel %vm2116_vm2, %v2184_v18, %v8375_v58  ;;  %v8516_v49 = vrot.slane %v7064_v5, 2  ;;  %v8525_v58 = vld [vmem:[#allocation10_spill] sm:$0xff] }
 0x1d0   : > { %5342 = vrot.lane.b32.xlu1 %v8514_v57, %s5469_s11  ;;  %v7375_v37 = vsel %vm2116_vm2, %v8515_v63, %v2184_v18  ;;  %v7393_v33 = vsel %vm2381_vm3, %v2472_v2, %v2474_v31  ;;  %v5005_v23 = vunpack.i.h.bf16 %v5003_v29  ;;  %v8517_v30 = vrot.slane %v6866_v47, 2 }
 0x1d1   : > { %v7388_v51 = vsel %vm2381_vm3, %v8516_v49, %v2472_v2  ;;  %v7403_v18 = vsel %vm2381_vm3, %v2449_v28, %v8374_v27  ;;  %v8518_v22 = vrot.slane %v7064_v5, 3  ;;  %v5004_v4 = vunpack.i.l.bf16 %v5003_v29  ;;  %4792 = vmatprep.subr.msk.bf16.mxu0 %vm7345_vm11, %v4790_v21 }
 0x1d2   : > { %v7398_v60 = vsel %vm2381_vm3, %v8517_v30, %v2449_v28  ;;  %v8519_v2 = vpack.i.bf16 %v7162_v6, %v7157_v52  ;;  %v7419_v36 = vsel %vm2646_vm4, %v2737_v45, %v8376_v3  ;;  %v8520_v28 = vrot.slane %v6866_v47, 3  ;;  %v5013_v30 = vpop.permute.xlu0 %5012 }
 0x1d3   : > { %v7408_v26 = vsel %vm2646_vm4, %v8518_v22, %v2737_v45  ;;  %v1939_v29 = vmax.f32 %v6898_v1, %v6896_v15  ;;  %v5010_v57 = vunpack.i.h.bf16 %v5008_v10  ;;  %v5009_v63 = vunpack.i.l.bf16 %v5008_v10  ;;  %v5028_v22 = vpop.permute.xlu1 %5027  ;;  %v8522_v10 = vld [vmem:[#allocation9_spill] sm:$0xff] }
 0x1d4   : > { %5242 = vrot.lane.b32.xlu0 %v8519_v2, %s5469_s11  ;;  %v7424_v25 = vsel %vm2646_vm4, %v8520_v28, %v2714_v12  ;;  %v5025_v49 = vunpack.i.h.bf16 %v5023_v56  ;;  %v8521_v52 = vpack.i.bf16 %v7178_v46, %v7167_v59  ;;  %v7435_v6 = vsel %vm2646_vm4, %v2714_v12, %v8373_v38 }
 0x1d5   : > { %v5024_v45 = vunpack.i.l.bf16 %v5023_v56  ;;  %v3002_v2 = vrot.slane %v7035_v17, 4  ;;  %v3004_v15 = vrot.slane %v7206_v53, 4  ;;  %v1938_v1 = vmax.f32 %v6913_v32, %v6915_v43  ;;  %v8523_v56 = vld [vmem:[#allocation7_spill] sm:$0xff] }
 0x1d6   : > { %5347 = vrot.lane.b32.xlu1 %v8521_v52, %s5470_s12  ;;  %v3182_v28 = vsel %vm3176_vm7, %v8522_v10, %v5005_v23  ;;  %v5261_v59 = vpack.i.bf16 %v7383_v9, %v7375_v37  ;;  %v5366_v46 = vpack.i.bf16 %v7393_v33, %v7388_v51  ;;  %v5266_v12 = vpack.i.bf16 %v7403_v18, %v7398_v60  ;;  %v8535_v9 = vld [vmem:[#allocation12_spill] sm:$0xff] }
 0x1d7   : > { %v3181_v52 = vsel %vm3176_vm7, %v8523_v56, %v5004_v4  ;;  %v5015_v38 = vunpack.i.h.bf16 %v5013_v30  ;;  %v5014_v27 = vunpack.i.l.bf16 %v5013_v30  ;;  %v8524_v32 = vpack.i.bf16 %v7188_v20, %v7183_v7  ;;  %v8527_v20 = vld [vmem:[#allocation8_spill] sm:$0xff]  ;;  %4795 = vmatpush3.bf16.xpose.msk.msra.mxu0 %vm7345_vm11, %v4790_v21 }
 0x1d8   : > { %v5371_v43 = vpack.i.bf16 %v7419_v36, %v7408_v26  ;;  %v3234_v23 = vsel %vm3229_vm8, %v3181_v52, %v5009_v63  ;;  %v3235_v10 = vsel %vm3229_vm8, %v3182_v28, %v5010_v57  ;;  %v3184_v3 = vsel %vm3176_vm7, %v8525_v58, %v5025_v49  ;;  %v5018_v63 = vpop.permute.xlu0 %5017  ;;  %v5033_v57 = vpop.permute.xlu1 %5032 }
 0x1d9   : > { %5247 = vrot.lane.b32.xlu0 %v8524_v32, %s5470_s12  ;;  %v8526_v4 = vpack.i.bf16 %v7239_v19, %v7234_v42  ;;  %v5271_v30 = vpack.i.bf16 %v7435_v6, %v7424_v25  ;;  %v3183_v7 = vsel %vm3176_vm7, %v8527_v20, %v5024_v45  ;;  %v5029_v56 = vunpack.i.l.bf16 %v5028_v22 }
 0x1da   : > { %v8528_v28 = vrot.slane %v7064_v5, 4  ;;  %v7479_v42 = vsel %vm2911_vm5, %v3002_v2, %v3004_v15  ;;  %v5030_v19 = vunpack.i.h.bf16 %v5028_v22  ;;  %v5020_v49 = vunpack.i.h.bf16 %v5018_v63 }
 0x1db   : > { %5352 = vrot.lane.b32.xlu1 %v8526_v4, %s5471_s13  ;;  %v5019_v52 = vunpack.i.l.bf16 %v5018_v63  ;;  %v7482_v45 = vadd.f32 %v6888_v39, %v1939_v29  ;;  %v3287_v21 = vsel %vm3282_vm9, %v3234_v23, %v5014_v27  ;;  %v3288_v32 = vsel %vm3282_vm9, %v3235_v10, %v5015_v38 }
 0x1dc   : > { %v7474_v58 = vsel %vm2911_vm5, %v8528_v28, %v3002_v2  ;;  %v5035_v4 = vunpack.i.h.bf16 %v5033_v57  ;;  %v5034_v20 = vunpack.i.l.bf16 %v5033_v57  ;;  %v8529_v28 = vpack.i.bf16 %v7249_v14, %v7244_v61  ;;  %v5038_v63 = vpop.permute.xlu1 %5037  ;;  %v5043_v57 = vpop.permute.xlu0 %5042 }
 0x1dd   : > { %v3340_v2 = vsel %vm3335_vm10, %v3287_v21, %v5019_v52  ;;  %v3341_v22 = vsel %vm3335_vm10, %v3288_v32, %v5020_v49  ;;  %v8530_v29 = vpack.i.bf16 %v7259_v54, %v7254_v13  ;;  %v2198_v27 = vrot.slane %v6971_v50, 1 }
 0x1de   : > { %5252 = vrot.lane.b32.xlu0 %v8529_v28, %s5471_s13  ;;  %v2199_v38 = vrot.slane %v6957_v8, 1  ;;  %v3236_v23 = vsel %vm3229_vm8, %v3183_v7, %v5029_v56  ;;  %v4796_v10 = vpack.c.bf16 %v3341_v22, %v3340_v2  ;;  %v5376_v61 = vpack.i.bf16 %v7479_v42, %v7474_v58  ;;  %v8531_v2 = vld [vmem:[#allocation46_spill] sm:$0xff] }
 0x1df   : > { %5357 = vrot.lane.b32.xlu1 %v8530_v29, %s5472_s14  ;;  %v2211_v14 = vrot.slane %v7273_v0, 1  ;;  %v3237_v49 = vsel %vm3229_vm8, %v3184_v3, %v5030_v19  ;;  %v5040_v52 = vunpack.i.h.bf16 %v5038_v63  ;;  %v5039_v21 = vunpack.i.l.bf16 %v5038_v63 }
 0x1e0   : > { %v2213_v13 = vrot.slane %v7317_v16, 1  ;;  %v3289_v54 = vsel %vm3282_vm9, %v3236_v23, %v5034_v20  ;;  %v3290_v32 = vsel %vm3282_vm9, %v3237_v49, %v5035_v4  ;;  %4798 = vmatprep.subr.msk.bf16.mxu0 %vm7345_vm11, %v4796_v10  ;;  %v2463_v7 = vrot.slane %v6971_v50, 2  ;;  %v5063_v28 = vpop.permute.xlu1 %5062 }
 0x1e1   : > { %v2464_v3 = vrot.slane %v6957_v8, 2  ;;  %v3342_v56 = vsel %vm3335_vm10, %v3289_v54, %v5039_v21  ;;  %v3343_v19 = vsel %vm3335_vm10, %v3290_v32, %v5040_v52  ;;  %v7521_v4 = vadd.f32 %v6888_v39, %v1938_v1  ;;  %4801 = vmatpush3.bf16.xpose.msk.msra.mxu0 %vm7345_vm11, %v4796_v10 }
 0x1e2   : > { %5257 = vrot.lane.b32.xlu0 %v5256_v41, %s5472_s14  ;;  %v7524_v20 = vsel %vm2116_vm2, %v2198_v27, %v2199_v38  ;;  %v4802_v40 = vpack.c.bf16 %v3343_v19, %v3342_v56  ;;  %v5045_v62 = vunpack.i.h.bf16 %v5043_v57  ;;  %v5048_v41 = vpop.permute.xlu0 %5047  ;;  %v8532_v22 = vrot.slane %v8531_v2, 1  ;;  %v8536_v19 = vld [vmem:[#allocation11_spill] sm:$0xff] }
 0x1e3   : > { %5362 = vrot.lane.b32.xlu1 %v5361_v11, %s5469_s11  ;;  %v8533_v24 = vrot.slane %v7206_v53, 1  ;;  %v5044_v11 = vunpack.i.l.bf16 %v5043_v57  ;;  %v7541_v1 = vsel %vm2116_vm2, %v2211_v14, %v2213_v13  ;;  %v2476_v27 = vrot.slane %v7273_v0, 2 }
 0x1e4   : > { %v7531_v29 = vsel %vm2116_vm2, %v2199_v38, %v8532_v22  ;;  %v2478_v23 = vrot.slane %v7317_v16, 2  ;;  %v5049_v10 = vunpack.i.l.bf16 %v5048_v41  ;;  %4804 = vmatprep.subr.msk.bf16.mxu0 %vm7345_vm11, %v4802_v40  ;;  %v7552_v38 = vsel %vm2381_vm3, %v2463_v7, %v2464_v3  ;;  %v5068_v32 = vpop.permute.xlu1 %5067 }
 0x1e5   : > { %v7536_v34 = vsel %vm2116_vm2, %v8533_v24, %v2211_v14  ;;  %v8534_v63 = vrot.slane %v8531_v2, 2  ;;  %v2979_v14 = vrot.slane %v6864_v55, 4  ;;  %v5050_v49 = vunpack.i.h.bf16 %v5048_v41  ;;  %v8538_v24 = vld [vmem:[#allocation14_spill] sm:$0xff] }
 0x1e6   : > { %5262 = vrot.lane.b32.xlu0 %v5261_v59, %s5469_s11  ;;  %v5065_v52 = vunpack.i.h.bf16 %v5063_v28  ;;  %v5064_v21 = vunpack.i.l.bf16 %v5063_v28  ;;  %v2981_v37 = vrot.slane %v6878_v35, 4  ;;  %v3186_v59 = vsel %vm3176_vm7, %v8535_v9, %v5045_v62  ;;  %v5053_v54 = vpop.permute.xlu0 %5052 }
 0x1e7   : > { %v7557_v57 = vsel %vm2381_vm3, %v2464_v3, %v8534_v63  ;;  %5367 = vrot.lane.b32.xlu1 %v5366_v46, %s5470_s12  ;;  %v5276_v7 = vpack.i.bf16 %v7531_v29, %v7524_v20  ;;  %v5381_v3 = vpack.i.bf16 %v7541_v1, %v7536_v34  ;;  %v2741_v56 = vrot.slane %v7273_v0, 3 }
 0x1e8   : > { %v3185_v41 = vsel %vm3176_vm7, %v8536_v19, %v5044_v11  ;;  %v5054_v51 = vunpack.i.l.bf16 %v5053_v54  ;;  %v5281_v33 = vpack.i.bf16 %v7557_v57, %v7552_v38  ;;  %v7579_v46 = vsel %vm2381_vm3, %v2474_v31, %v2476_v27  ;;  %v8539_v11 = vld [vmem:[#allocation13_spill] sm:$0xff] }
 0x1e9   : > { %v3238_v62 = vsel %vm3229_vm8, %v3185_v41, %v5049_v10  ;;  %v5055_v20 = vunpack.i.h.bf16 %v5053_v54  ;;  %v7589_v28 = vsel %vm2381_vm3, %v2476_v27, %v2478_v23  ;;  %v8537_v22 = vrot.slane %v6866_v47, 4  ;;  %4807 = vmatpush3.bf16.xpose.msk.msra.mxu0 %vm7345_vm11, %v4802_v40  ;;  %v5073_v10 = vpop.permute.xlu1 %5072  ;;  %v8542_v40 = vld [vmem:[#allocation40_spill] sm:$0xff] }
 0x1ea   : > { %5267 = vrot.lane.b32.xlu0 %v5266_v12, %s5470_s12  ;;  %v3239_v31 = vsel %vm3229_vm8, %v3186_v59, %v5050_v49  ;;  %v3188_v34 = vsel %vm3176_vm7, %v8538_v24, %v5065_v52  ;;  %v3187_v1 = vsel %vm3176_vm7, %v8539_v11, %v5064_v21  ;;  %v7608_v60 = vsel %vm2911_vm5, %v2979_v14, %v2981_v37  ;;  %v5058_v27 = vpop.permute.xlu0 %5057 }
 0x1eb   : > { %v7594_v29 = vsel %vm2911_vm5, %v8537_v22, %v2979_v14  ;;  %5372 = vrot.lane.b32.xlu1 %v5371_v43, %s5471_s13  ;;  %v5070_v18 = vunpack.i.h.bf16 %v5068_v32  ;;  %v5069_v12 = vunpack.i.l.bf16 %v5068_v32  ;;  %v8540_v63 = vrot.slane %v7206_v53, 3  ;;  %v8541_v14 = vld [vmem:[#allocation38_spill] sm:$0xff]  ;;  %v8543_v32 = vld [vmem:[#allocation41_spill] sm:$0xff] }
 0x1ec   : > { %v2743_v26 = vrot.slane %v7317_v16, 3  ;;  %v3291_v36 = vsel %vm3282_vm9, %v3238_v62, %v5054_v51  ;;  %v5060_v43 = vunpack.i.h.bf16 %v5058_v27  ;;  %v5059_v52 = vunpack.i.l.bf16 %v5058_v27  ;;  %v8544_v62 = vld [vmem:[#allocation50_spill] sm:$0xff] }
 0x1ed   : > { %v7615_v49 = vsel %vm2646_vm4, %v8540_v63, %v2741_v56  ;;  %v2188_v21 = vrot.slane %v8541_v14, 1  ;;  %v3292_v9 = vsel %vm3282_vm9, %v3239_v31, %v5055_v20  ;;  %v5075_v59 = vunpack.i.h.bf16 %v5073_v10 }
 0x1ee   : > { %v5074_v54 = vunpack.i.l.bf16 %v5073_v10  ;;  %5272 = vrot.lane.b32.xlu0 %v5271_v30, %s5471_s13  ;;  %v1941_v19 = vmax.f32 %v8543_v32, %v8542_v40  ;;  %v3344_v41 = vsel %vm3335_vm10, %v3291_v36, %v5059_v52  ;;  %v3345_v51 = vsel %vm3335_vm10, %v3292_v9, %v5060_v43  ;;  %v2250_v6 = vpop.permute.xlu0 %2249  ;;  %v5078_v30 = vpop.permute.xlu1 %5077  ;;  %v8548_v32 = vld [vmem:[#allocation39_spill] sm:$0xff] }
 0x1ef   : > { %5377 = vrot.lane.b32.xlu1 %v5376_v61, %s5472_s14  ;;  %v2190_v20 = vrot.slane %v8544_v62, 1  ;;  %v3006_v22 = vrot.slane %v7273_v0, 4  ;;  %v3240_v31 = vsel %vm3229_vm8, %v3187_v1, %v5069_v12  ;;  %v4808_v25 = vpack.c.bf16 %v3345_v51, %v3344_v41  ;;  %v8549_v41 = vld [vmem:[#allocation30_spill] sm:$0xff] }
 0x1f0   : > { %v2744_v24 = vsel %vm2646_vm4, %v2741_v56, %v2743_v26  ;;  %v3008_v11 = vrot.slane %v7317_v16, 4  ;;  %v3241_v27 = vsel %vm3229_vm8, %v3188_v34, %v5070_v18  ;;  %v5080_v10 = vunpack.i.h.bf16 %v5078_v30  ;;  %v8546_v56 = vld [vmem:[#allocation44_spill] sm:$0xff]  ;;  %v8547_v34 = vld [vmem:[#allocation43_spill] sm:$0xff] }
 0x1f1   : > { %v5079_v58 = vunpack.i.l.bf16 %v5078_v30  ;;  %v8545_v42 = vrot.slane %v6878_v35, 1  ;;  %v3293_v1 = vsel %vm3282_vm9, %v3240_v31, %v5074_v54  ;;  %v3294_v12 = vsel %vm3282_vm9, %v3241_v27, %v5075_v59  ;;  %4810 = vmatprep.subr.msk.bf16.mxu0 %vm7345_vm11, %v4808_v25 }
 0x1f2   : > { %v7649_v63 = vmax.f32 %v7521_v4, 0.0  ;;  %5277 = vrot.lane.b32.xlu0 %v5276_v7, %s5469_s11  ;;  %v1940_v18 = vmax.f32 %v8547_v34, %v8546_v56  ;;  %v3347_v43 = vsel %vm3335_vm10, %v3294_v12, %v5080_v10  ;;  %v2191_v52 = vsel %vm2116_vm2, %v2188_v21, %v2190_v20  ;;  %4813 = vmatpush3.bf16.xpose.msk.msra.mxu0 %vm7345_vm11, %v4808_v25  ;;  %v2515_v7 = vpop.permute.xlu0 %2514  ;;  %v2780_v59 = vpop.permute.xlu1 %2779  ;;  %v8550_v25 = vld [vmem:[#allocation42_spill] sm:$0xff] }
 0x1f3   : > { %v7644_v61 = vsel %vm2116_vm2, %v8545_v42, %v2188_v21  ;;  %v3346_v36 = vsel %vm3335_vm10, %v3293_v1, %v5079_v58  ;;  %5382 = vrot.lane.b32.xlu1 %v5381_v3, %s5469_s11  ;;  %v3007_v4 = vsel %vm2911_vm5, %v3004_v15, %v3006_v22  ;;  %v3009_v54 = vsel %vm2911_vm5, %v3006_v22, %v3008_v11 }
 0x1f4   : > { %v4814_v9 = vpack.c.bf16 %v3347_v43, %v3346_v36  ;;  %v2453_v3 = vrot.slane %v8541_v14, 2  ;;  %v2455_v40 = vrot.slane %v8544_v62, 2  ;;  %v7673_v21 = vmax.f32 %v8548_v32, 0.0 }
 0x1f5   : > { %v7676_v51 = vmax.f32 %v8549_v41, 0.0  ;;  %v5386_v15 = vpack.i.bf16 %v7589_v28, %v7579_v46  ;;  %v2003_v31 = vadd.f32 %v6888_v39, %v1941_v19  ;;  %v7682_v30 = vmax.f32 %v8550_v25, 0.0  ;;  %v8551_v28 = vld [vmem:[#allocation15_spill] sm:$0xff] }
 0x1f6   : > { %v7685_v22 = vmax.f32 %v7482_v45, 0.0  ;;  %4816 = vmatprep.subr.msk.bf16.mxu0 %vm7345_vm11, %v4814_v9  ;;  %5282 = vrot.lane.b32.xlu0 %v5281_v33, %s5470_s12  ;;  %v5286_v27 = vpack.i.bf16 %v7608_v60, %v7594_v29  ;;  %v5391_v46 = vpack.i.bf16 %v2744_v24, %v7615_v49  ;;  %v3189_v19 = vsel %vm3176_vm7, %v8551_v28, %v2250_v6  ;;  %v3045_v1 = vpop.permute.xlu1 %3044  ;;  %v5103_v38 = vpop.permute.xlu0 %5102 }
 0x1f7   : > { %5387 = vrot.lane.b32.xlu1 %v5386_v15, %s5470_s12  ;;  %v5291_v45 = vpack.i.bf16 %v2191_v52, %v7644_v61  ;;  %v5396_v10 = vpack.i.bf16 %v3009_v54, %v3007_v4  ;;  %v2215_v58 = vrot.slane %v7315_v48, 1  ;;  %v3242_v42 = vsel %vm3229_vm8, %v3189_v19, %v2515_v7 }
 0x1f8   : > { %v8552_v57 = vrot.slane %v6878_v35, 2  ;;  %v2456_v29 = vsel %vm2381_vm3, %v2453_v3, %v2455_v40  ;;  %v2217_v60 = vrot.slane %v7649_v63, 1  ;;  %v7709_v49 = vmax.f32 %v2003_v31, 0.0 }
 0x1f9   : > { %v2002_v6 = vadd.f32 %v6888_v39, %v1940_v18  ;;  %v2718_v24 = vrot.slane %v8541_v14, 3  ;;  %v2720_v61 = vrot.slane %v8544_v62, 3  ;;  %v2480_v12 = vrot.slane %v7315_v48, 2 }
 0x1fa   : > { %v2454_v33 = vsel %vm2381_vm3, %v8552_v57, %v2453_v3  ;;  %5287 = vrot.lane.b32.xlu0 %v5286_v27, %s5472_s14  ;;  %v2482_v56 = vrot.slane %v7649_v63, 2  ;;  %v2983_v34 = vrot.slane %v8541_v14, 4  ;;  %v2985_v36 = vrot.slane %v8544_v62, 4  ;;  %4819 = vmatpush3.bf16.xpose.msk.msra.mxu0 %vm7345_vm11, %v4814_v9  ;;  %v5083_v54 = vpop.permute.xlu1 %5082  ;;  %v5108_v3 = vpop.permute.xlu0 %5107 }
 0x1fb   : > { %v3295_v43 = vsel %vm3282_vm9, %v3242_v42, %v2780_v59  ;;  %5392 = vrot.lane.b32.xlu1 %v5391_v46, %s5471_s13  ;;  %v5296_v52 = vpack.i.bf16 %v2456_v29, %v2454_v33  ;;  %v2745_v39 = vrot.slane %v7315_v48, 3  ;;  %v2747_v18 = vrot.slane %v7649_v63, 3 }
 0x1fc   : > { %v3348_v4 = vsel %vm3335_vm10, %v3295_v43, %v3045_v1  ;;  %v5105_v7 = vunpack.i.h.bf16 %v5103_v38  ;;  %v2216_v32 = vsel %vm2116_vm2, %v2213_v13, %v2215_v58  ;;  %v2218_v59 = vsel %vm2116_vm2, %v2215_v58, %v2217_v60  ;;  %v8554_v58 = vld [vmem:[#allocation18_spill] sm:$0xff] }
 0x1fd   : > { %v5104_v41 = vunpack.i.l.bf16 %v5103_v38  ;;  %4664 = vmatprep.subr.msk.mxu0 %vm3388_vm6, %v3348_v4  ;;  %v7733_v15 = vmax.f32 %v2002_v6, 0.0  ;;  %v8553_v31 = vrot.slane %v6878_v35, 3  ;;  %v2721_v9 = vsel %vm2646_vm4, %v2718_v24, %v2720_v61 }
 0x1fe   : > { %5292 = vrot.lane.b32.xlu0 %v5291_v45, %s5469_s11  ;;  %v2481_v13 = vsel %vm2381_vm3, %v2478_v23, %v2480_v12  ;;  %v2483_v27 = vsel %vm2381_vm3, %v2480_v12, %v2482_v56  ;;  %v7751_v46 = vsel %vm2911_vm5, %v2981_v37, %v2983_v34  ;;  %v7756_v28 = vsel %vm2911_vm5, %v2983_v34, %v2985_v36  ;;  %v5088_v1 = vpop.permute.xlu1 %5087  ;;  %v5113_v38 = vpop.permute.xlu0 %5112  ;;  %v8555_v12 = vld [vmem:[#allocation20_spill] sm:$0xff] }
 0x1ff   : > { %v2719_v25 = vsel %vm2646_vm4, %v8553_v31, %v2718_v24  ;;  %v5085_v19 = vunpack.i.h.bf16 %v5083_v54  ;;  %5397 = vrot.lane.b32.xlu1 %v5396_v10, %s5472_s14  ;;  %v7762_v23 = vsel %vm2646_vm4, %v2743_v26, %v2745_v39  ;;  %v7767_v45 = vsel %vm2646_vm4, %v2745_v39, %v2747_v18 }
 0x200   : > { %v2192_v37 = vrot.slane %v7673_v21, 1  ;;  %v3193_v42 = vsel %vm3176_vm7, %v8554_v58, %v5105_v7  ;;  %v5401_v57 = vpack.i.bf16 %v2218_v59, %v2216_v32  ;;  %v5301_v33 = vpack.i.bf16 %v2721_v9, %v2719_v25  ;;  %v8556_v32 = vld [vmem:[#allocation16_spill] sm:$0xff] }
 0x201   : > { %v2194_v10 = vrot.slane %v7682_v30, 1  ;;  %v5084_v29 = vunpack.i.l.bf16 %v5083_v54  ;;  %v5110_v6 = vunpack.i.h.bf16 %v5108_v3  ;;  %v5109_v26 = vunpack.i.l.bf16 %v5108_v3 }
 0x202   : > { %v3010_v24 = vrot.slane %v7315_v48, 4  ;;  %v3192_v34 = vsel %vm3176_vm7, %v8555_v12, %v5104_v41  ;;  %5297 = vrot.lane.b32.xlu0 %v5296_v52, %s5470_s12  ;;  %v5406_v43 = vpack.i.bf16 %v2483_v27, %v2481_v13  ;;  %v5306_v39 = vpack.i.bf16 %v7756_v28, %v7751_v46  ;;  %4665 = vmatpush3.xpose.msk.msra.mxu0 %vm3388_vm6, %v3348_v4  ;;  %v5093_v9 = vpop.permute.xlu1 %5092  ;;  %v5118_v13 = vpop.permute.xlu0 %5117  ;;  %v7794_v27 = vld [vmem:[%s8324_s3 + $0x8] sm:$0xff]  ;;  %v7806_v4 = vld [vmem:[%s8324_s3 + $0x10] sm:$0xff] }
 0x203   : > { %v5411_v7 = vpack.i.bf16 %v7767_v45, %v7762_v23  ;;  %v3191_v59 = vsel %vm3176_vm7, %v8556_v32, %v5085_v19  ;;  %v5089_v54 = vunpack.i.l.bf16 %v5088_v1  ;;  %5402 = vrot.lane.b32.xlu1 %v5401_v57, %s5469_s11  ;;  %v7787_v3 = vsel %vm2116_vm2, %v2190_v20, %v2192_v37  ;;  %v8557_v20 = vld [vmem:[#allocation17_spill] sm:$0xff]  ;;  %v7829_v32 = vld [vmem:[%s8324_s3 + $0x18] sm:$0xf] }
 0x204   : > { %v3012_v52 = vrot.slane %v7649_v63, 4  ;;  %v5090_v41 = vunpack.i.h.bf16 %v5088_v1  ;;  %v5115_v31 = vunpack.i.h.bf16 %v5113_v38  ;;  %v5114_v25 = vunpack.i.l.bf16 %v5113_v38 }
 0x205   : > { %v2195_v46 = vsel %vm2116_vm2, %v2192_v37, %v2194_v10  ;;  %v3190_v28 = vsel %vm3176_vm7, %v8557_v20, %v5084_v29  ;;  %v3245_v19 = vsel %vm3229_vm8, %v3192_v34, %v5109_v26  ;;  %v3246_v23 = vsel %vm3229_vm8, %v3193_v42, %v5110_v6  ;;  %4667 = vmatmul.mubr.msk.f32.vlgmr.msra.gmra.mrb[56].mxu0 %vm3388_vm6, %v7794_v27 }
 0x206   : > { %v3011_v45 = vsel %vm2911_vm5, %v3008_v11, %v3010_v24  ;;  %v5095_v58 = vunpack.i.h.bf16 %v5093_v9  ;;  %v5094_v1 = vunpack.i.l.bf16 %v5093_v9  ;;  %v5119_v38 = vunpack.i.l.bf16 %v5118_v13  ;;  %5302 = vrot.lane.b32.xlu0 %v5301_v33, %s5471_s13  ;;  %v5098_v12 = vpop.permute.xlu1 %5097  ;;  %v5143_v34 = vpop.permute.xlu0 %5142  ;;  %4669 = vmatprep.mubr.msk.f32.mxu0 %vm3388_vm6, %v7806_v4 }
 0x207   : > { %v2457_v37 = vrot.slane %v7673_v21, 2  ;;  %v3243_v57 = vsel %vm3229_vm8, %v3190_v28, %v5089_v54  ;;  %v5120_v29 = vunpack.i.h.bf16 %v5118_v13  ;;  %v5311_v42 = vpack.i.bf16 %v2195_v46, %v7787_v3  ;;  %5407 = vrot.lane.b32.xlu1 %v5406_v43, %s5470_s12 }
 0x208   : > { %v3013_v6 = vsel %vm2911_vm5, %v3010_v24, %v3012_v52  ;;  %v3244_v11 = vsel %vm3229_vm8, %v3191_v59, %v5090_v41  ;;  %v3298_v26 = vsel %vm3282_vm9, %v3245_v19, %v5114_v25  ;;  %v3299_v33 = vsel %vm3282_vm9, %v3246_v23, %v5115_v31 }
 0x209   : > { %v2459_v24 = vrot.slane %v7682_v30, 2  ;;  %v5100_v54 = vunpack.i.h.bf16 %v5098_v12  ;;  %v5099_v59 = vunpack.i.l.bf16 %v5098_v12  ;;  %v2219_v3 = vrot.slane %v7685_v22, 1  ;;  %4670 = vmatmul.mubr.msk.f32.gmra.mrb[58].mxu0 %vm3388_vm6, %v7829_v32 }
 0x20a   : > { %v2221_v41 = vrot.slane %v7733_v15, 1  ;;  %v3296_v43 = vsel %vm3282_vm9, %v3243_v57, %v5094_v1  ;;  %v3297_v31 = vsel %vm3282_vm9, %v3244_v11, %v5095_v58  ;;  %v3351_v25 = vsel %vm3335_vm10, %v3298_v26, %v5119_v38  ;;  %5307 = vrot.lane.b32.xlu0 %v5306_v39, %s5472_s14  ;;  %v5123_v23 = vpop.permute.xlu1 %5122  ;;  %v5148_v58 = vpop.permute.xlu0 %5147  ;;  %v8558_v26 = vld [vmem:[#allocation34_spill] sm:$0xff] }
 0x20b   : > { %v2722_v9 = vrot.slane %v7673_v21, 3  ;;  %v3352_v13 = vsel %vm3335_vm10, %v3299_v33, %v5120_v29  ;;  %v3349_v46 = vsel %vm3335_vm10, %v3296_v43, %v5099_v59  ;;  %v3350_v20 = vsel %vm3335_vm10, %v3297_v31, %v5100_v54  ;;  %5412 = vrot.lane.b32.xlu1 %v5411_v7, %s5471_s13  ;;  %4730 = vmatprep.mubr.msk.f32.mxu0 %vm3388_vm6, %v8558_v26 }
 0x20c   : > { %v2724_v28 = vrot.slane %v7682_v30, 3  ;;  %v4820_v19 = vpack.c.bf16 %v3350_v20, %v3349_v46  ;;  %v2458_v39 = vsel %vm2381_vm3, %v2455_v40, %v2457_v37  ;;  %v2484_v1 = vrot.slane %v7685_v22, 2  ;;  %v8559_v46 = vld [vmem:[#allocation22_spill] sm:$0xff] }
 0x20d   : > { %v8377_v38 = vrot.slane %v7733_v15, 2  ;;  %v5416_v57 = vpack.i.bf16 %v3013_v6, %v3011_v45  ;;  %v2460_v29 = vsel %vm2381_vm3, %v2457_v37, %v2459_v24  ;;  %v2220_v11 = vsel %vm2116_vm2, %v2217_v60, %v2219_v3 }
 0x20e   : > { %v2222_v7 = vsel %vm2116_vm2, %v2219_v3, %v2221_v41  ;;  %v4826_v40 = vpack.c.bf16 %v3352_v13, %v3351_v25  ;;  %v5145_v33 = vunpack.i.h.bf16 %v5143_v34  ;;  %v5144_v12 = vunpack.i.l.bf16 %v5143_v34  ;;  %4822 = vmatprep.subr.msk.bf16.mxu1 %vm7345_vm11, %v4820_v19  ;;  %5312 = vrot.lane.b32.xlu0 %v5311_v42, %s5469_s11  ;;  %v5128_v42 = vpop.permute.xlu1 %5127  ;;  %v5153_v59 = vpop.permute.xlu0 %5152 }
 0x20f   : > { %v2723_v45 = vsel %vm2646_vm4, %v2720_v61, %v2722_v9  ;;  %v5125_v60 = vunpack.i.h.bf16 %v5123_v23  ;;  %v5124_v37 = vunpack.i.l.bf16 %v5123_v23  ;;  %4825 = vmatpush3.bf16.xpose.msk.msra.mxu1 %vm7345_vm11, %v4820_v19  ;;  %v2725_v6 = vsel %vm2646_vm4, %v2722_v9, %v2724_v28  ;;  %5417 = vrot.lane.b32.xlu1 %v5416_v57, %s5472_s14  ;;  %v8560_v19 = vld [vmem:[#allocation23_spill] sm:$0xff]  ;;  %v8561_v57 = vld [vmem:[#allocation21_spill] sm:$0xff] }
 0x210   : > { %v2987_v34 = vrot.slane %v7673_v21, 4  ;;  %v5149_v54 = vunpack.i.l.bf16 %v5148_v58  ;;  %4828 = vmatprep.subr.msk.bf16.mxu1 %vm7345_vm11, %v4826_v40  ;;  %v5316_v61 = vpack.i.bf16 %v2460_v29, %v2458_v39  ;;  %v2485_v3 = vsel %vm2381_vm3, %v2482_v56, %v2484_v1  ;;  %v8562_v29 = vld [vmem:[#allocation19_spill] sm:$0xff] }
 0x211   : > { %v2487_v43 = vsel %vm2381_vm3, %v2484_v1, %v8377_v38  ;;  %v5421_v31 = vpack.i.bf16 %v2222_v7, %v2220_v11  ;;  %v2989_v25 = vrot.slane %v7682_v30, 4  ;;  %v2749_v9 = vrot.slane %v7685_v22, 3 }
 0x212   : > { %v2751_v13 = vrot.slane %v7733_v15, 3  ;;  %v3197_v20 = vsel %vm3176_vm7, %v8559_v46, %v5145_v33  ;;  %v3196_v23 = vsel %vm3176_vm7, %v8560_v19, %v5144_v12  ;;  %v5150_v39 = vunpack.i.h.bf16 %v5148_v58  ;;  %5317 = vrot.lane.b32.xlu0 %v5316_v61, %s5470_s12  ;;  %v5133_v58 = vpop.permute.xlu1 %5132 }
 0x213   : > { %v5321_v56 = vpack.i.bf16 %v2725_v6, %v2723_v45  ;;  %v3195_v1 = vsel %vm3176_vm7, %v8561_v57, %v5125_v60  ;;  %v3194_v11 = vsel %vm3176_vm7, %v8562_v29, %v5124_v37  ;;  %v5426_v7 = vpack.i.bf16 %v2487_v43, %v2485_v3  ;;  %5422 = vrot.lane.b32.xlu1 %v5421_v31, %s5469_s11  ;;  %v5158_v45 = vpop.permute.xlu0 %5157 }
 0x214   : > { %v2988_v26 = vsel %vm2911_vm5, %v2985_v36, %v2987_v34  ;;  %v3249_v33 = vsel %vm3229_vm8, %v3196_v23, %v5149_v54  ;;  %v5130_v46 = vunpack.i.h.bf16 %v5128_v42  ;;  %v5129_v38 = vunpack.i.l.bf16 %v5128_v42 }
 0x215   : > { %v5154_v12 = vunpack.i.l.bf16 %v5153_v59  ;;  %v5155_v6 = vunpack.i.h.bf16 %v5153_v59  ;;  %v2990_v60 = vsel %vm2911_vm5, %v2987_v34, %v2989_v25  ;;  %v2750_v37 = vsel %vm2646_vm4, %v2747_v18, %v2749_v9 }
 0x216   : > { %v2752_v36 = vsel %vm2646_vm4, %v2749_v9, %v2751_v13  ;;  %v5135_v54 = vunpack.i.h.bf16 %v5133_v58  ;;  %v5134_v42 = vunpack.i.l.bf16 %v5133_v58  ;;  %5322 = vrot.lane.b32.xlu0 %v5321_v56, %s5471_s13  ;;  %v3014_v61 = vrot.slane %v7685_v22, 4  ;;  %v5138_v23 = vpop.permute.xlu1 %5137 }
 0x217   : > { %v3016_v59 = vrot.slane %v7733_v15, 4  ;;  %v3250_v3 = vsel %vm3229_vm8, %v3197_v20, %v5150_v39  ;;  %v5160_v43 = vunpack.i.h.bf16 %v5158_v45  ;;  %v5159_v34 = vunpack.i.l.bf16 %v5158_v45  ;;  %4831 = vmatpush3.bf16.xpose.msk.msra.mxu1 %vm7345_vm11, %v4826_v40  ;;  %5427 = vrot.lane.b32.xlu1 %v5426_v7, %s5470_s12  ;;  %v5183_v56 = vpop.permute.xlu0 %5182 }
 0x218   : > { %v2196_v18 = vrot.slane %v7676_v51, 1  ;;  %v3247_v31 = vsel %vm3229_vm8, %v3194_v11, %v5129_v38  ;;  %v3248_v9 = vsel %vm3229_vm8, %v3195_v1, %v5130_v46  ;;  %v3302_v19 = vsel %vm3282_vm9, %v3249_v33, %v5154_v12 }
 0x219   : > { %v5326_v57 = vpack.i.bf16 %v2990_v60, %v2988_v26  ;;  %v3303_v20 = vsel %vm3282_vm9, %v3250_v3, %v5155_v6  ;;  %v5140_v39 = vunpack.i.h.bf16 %v5138_v23  ;;  %v5139_v29 = vunpack.i.l.bf16 %v5138_v23 }
 0x21a   : > { %v5431_v58 = vpack.i.bf16 %v2752_v36, %v2750_v37  ;;  %v3300_v40 = vsel %vm3282_vm9, %v3247_v31, %v5134_v42  ;;  %v3301_v45 = vsel %vm3282_vm9, %v3248_v9, %v5135_v54  ;;  %v3015_v38 = vsel %vm2911_vm5, %v3012_v52, %v3014_v61  ;;  %v5163_v12 = vpop.permute.xlu1 %5162 }
 0x21b   : > { %5327 = vrot.lane.b32.xlu0 %v5326_v57, %s5472_s14  ;;  %v3017_v1 = vsel %vm2911_vm5, %v3014_v61, %v3016_v59  ;;  %v3355_v11 = vsel %vm3335_vm10, %v3302_v19, %v5159_v34  ;;  %v3356_v7 = vsel %vm3335_vm10, %v3303_v20, %v5160_v43  ;;  %v3353_v26 = vsel %vm3335_vm10, %v3300_v40, %v5139_v29  ;;  %v5188_v6 = vpop.permute.xlu0 %5187  ;;  %v8563_v19 = vld [vmem:[#allocation27_spill] sm:$0xff] }
 0x21c   : > { %v3354_v33 = vsel %vm3335_vm10, %v3301_v45, %v5140_v39  ;;  %5432 = vrot.lane.b32.xlu1 %v5431_v58, %s5471_s13  ;;  %v2197_v52 = vsel %vm2116_vm2, %v2194_v10, %v2196_v18  ;;  %v2461_v60 = vrot.slane %v7676_v51, 2  ;;  %v4838_v37 = vpack.c.bf16 %v3356_v7, %v3355_v11  ;;  %v8564_v45 = vld [vmem:[#allocation28_spill] sm:$0xff] }
 0x21d   : > { %v4832_v46 = vpack.c.bf16 %v3354_v33, %v3353_v26  ;;  %v5436_v36 = vpack.i.bf16 %v3017_v1, %v3015_v38  ;;  %v2223_v54 = vrot.slane %v7709_v49, 1  ;;  %v2726_v42 = vrot.slane %v7676_v51, 3 }
 0x21e   : > { %v5185_v61 = vunpack.i.h.bf16 %v5183_v56  ;;  %v5168_v10 = vpop.permute.xlu1 %5167  ;;  %v5184_v43 = vunpack.i.l.bf16 %v5183_v56  ;;  %v2462_v34 = vsel %vm2381_vm3, %v2459_v24, %v2461_v60  ;;  %v2488_v18 = vrot.slane %v7709_v49, 2  ;;  %v8566_v60 = vld [vmem:[#allocation25_spill] sm:$0xff] }
 0x21f   : > { %4834 = vmatprep.subr.msk.bf16.mxu1 %vm7345_vm11, %v4832_v46  ;;  %2301 = vrot.lane.b32.xlu0 %v2197_v52, %s5469_s11  ;;  %v5193_v3 = vpop.permute.xlu0 %5192  ;;  %v2224_v31 = vsel %vm2116_vm2, %v2221_v41, %v2223_v54  ;;  %v2727_v9 = vsel %vm2646_vm4, %v2724_v28, %v2726_v42  ;;  %v2991_v56 = vrot.slane %v7676_v51, 4  ;;  %v2753_v57 = vrot.slane %v7709_v49, 3  ;;  %v8567_v54 = vld [vmem:[#allocation24_spill] sm:$0xff] }
 0x220   : > { %4837 = vmatpush3.bf16.xpose.msk.msra.mxu1 %vm7345_vm11, %v4832_v46  ;;  %5437 = vrot.lane.b32.xlu1 %v5436_v36, %s5472_s14  ;;  %v3201_v23 = vsel %vm3176_vm7, %v8563_v19, %v5185_v61  ;;  %v3018_v24 = vrot.slane %v7709_v49, 4  ;;  %v5165_v20 = vunpack.i.h.bf16 %v5163_v12  ;;  %v5164_v39 = vunpack.i.l.bf16 %v5163_v12 }
 0x221   : > { %4840 = vmatprep.subr.msk.bf16.mxu1 %vm7345_vm11, %v4838_v37  ;;  %v5190_v29 = vunpack.i.h.bf16 %v5188_v6  ;;  %v5189_v58 = vunpack.i.l.bf16 %v5188_v6  ;;  %v3200_v28 = vsel %vm3176_vm7, %v8564_v45, %v5184_v43  ;;  %v5170_v38 = vunpack.i.h.bf16 %v5168_v10 }
 0x222   : > { %v5173_v41 = vpop.permute.xlu1 %5172  ;;  %v5169_v1 = vunpack.i.l.bf16 %v5168_v10  ;;  %v8565_v11 = vrot.slane %v7733_v15, 2  ;;  %v5195_v7 = vunpack.i.h.bf16 %v5193_v3  ;;  %v5194_v26 = vunpack.i.l.bf16 %v5193_v3 }
 0x223   : > { %2566 = vrot.lane.b32.xlu0 %v2462_v34, %s5470_s12  ;;  %v5198_v40 = vpop.permute.xlu0 %5197  ;;  %v5175_v49 = vunpack.i.h.bf16 %v5173_v41  ;;  %v5174_v33 = vunpack.i.l.bf16 %v5173_v41  ;;  %v2992_v6 = vsel %vm2911_vm5, %v2989_v25, %v2991_v56  ;;  %v2754_v52 = vsel %vm2646_vm4, %v2751_v13, %v2753_v57 }
 0x224   : > { %2327 = vrot.lane.b32.xlu1 %v2224_v31, %s5469_s11  ;;  %v2489_v51 = vsel %vm2381_vm3, %v8565_v11, %v2488_v18  ;;  %v5200_v46 = vunpack.i.h.bf16 %v5198_v40  ;;  %v5199_v12 = vunpack.i.l.bf16 %v5198_v40  ;;  %v3199_v36 = vsel %vm3176_vm7, %v8566_v60, %v5165_v20  ;;  %v8568_v40 = vld [vmem:[#allocation29_spill] sm:$0xff] }
 0x225   : > { %v3198_v42 = vsel %vm3176_vm7, %v8567_v54, %v5164_v39  ;;  %v3253_v61 = vsel %vm3229_vm8, %v3200_v28, %v5189_v58  ;;  %v3254_v10 = vsel %vm3229_vm8, %v3201_v23, %v5190_v29  ;;  %v3252_v43 = vsel %vm3229_vm8, %v3199_v36, %v5170_v38  ;;  %v8570_v36 = vld [vmem:[#allocation32_spill] sm:$0xff] }
 0x226   : > { %v3251_v25 = vsel %vm3229_vm8, %v3198_v42, %v5169_v1  ;;  %v3306_v18 = vsel %vm3282_vm9, %v3253_v61, %v5194_v26  ;;  %v3307_v31 = vsel %vm3282_vm9, %v3254_v10, %v5195_v7  ;;  %v3305_v19 = vsel %vm3282_vm9, %v3252_v43, %v5175_v49 }
 0x227   : > { %2831 = vrot.lane.b32.xlu0 %v2727_v9, %s5471_s13  ;;  %v2541_v3 = vpop.permute.xlu0 %2540  ;;  %v3304_v9 = vsel %vm3282_vm9, %v3251_v25, %v5174_v33  ;;  %v3359_v23 = vsel %vm3335_vm10, %v3306_v18, %v5199_v12  ;;  %v3360_v56 = vsel %vm3335_vm10, %v3307_v31, %v5200_v46  ;;  %v3019_v28 = vsel %vm2911_vm5, %v3016_v59, %v3018_v24 }
 0x228   : > { %4843 = vmatpush3.bf16.xpose.msk.msra.mxu1 %vm7345_vm11, %v4838_v37  ;;  %2592 = vrot.lane.b32.xlu1 %v2489_v51, %s5470_s12  ;;  %v5178_v37 = vpop.permute.xlu1 %5177  ;;  %v4850_v41 = vpack.c.bf16 %v3360_v56, %v3359_v23 }
 0x229   : > { %v5180_v34 = vunpack.i.h.bf16 %v5178_v37  ;;  %v5179_v13 = vunpack.i.l.bf16 %v5178_v37 }
 0x22b   : > { %3096 = vrot.lane.b32.xlu0 %v2992_v6, %s5472_s14  ;;  %v3357_v57 = vsel %vm3335_vm10, %v3304_v9, %v5179_v13  ;;  %v3358_v20 = vsel %vm3335_vm10, %v3305_v19, %v5180_v34  ;;  %v2806_v58 = vpop.permute.xlu0 %2805 }
 0x22c   : > { %v4844_v39 = vpack.c.bf16 %v3358_v20, %v3357_v57  ;;  %2857 = vrot.lane.b32.xlu1 %v2754_v52, %s5471_s13  ;;  %v2276_v29 = vpop.permute.xlu1 %2275  ;;  %v8569_v52 = vld [vmem:[#allocation31_spill] sm:$0xff]  ;;  %s8262_s13 = scalar_lea.vmem %s8326_s5, %s4261_s10 }
 0x22d   : > { %v3202_v45 = vsel %vm3176_vm7, %v8568_v40, %v2276_v29  ;;  %v8571_v40 = vld [vmem:[#allocation33_spill] sm:$0xff] }
 0x22e   : > { %4846 = vmatprep.subr.msk.bf16.mxu1 %vm7345_vm11, %v4844_v39  ;;  %v3255_v11 = vsel %vm3229_vm8, %v3202_v45, %v2541_v3 }
 0x22f   : > { %v3071_v38 = vpop.permute.xlu0 %3070  ;;  %v3308_v51 = vsel %vm3282_vm9, %v3255_v11, %v2806_v58 }
 0x230   : > { %4849 = vmatpush3.bf16.xpose.msk.msra.mxu1 %vm7345_vm11, %v4844_v39  ;;  %3122 = vrot.lane.b32.xlu1 %v3019_v28, %s5472_s14  ;;  %v5203_v1 = vpop.permute.xlu1 %5202  ;;  %v3361_v24 = vsel %vm3335_vm10, %v3308_v51, %v3071_v38  ;;  %v8572_v28 = vld [vmem:[#allocation26_spill] sm:$0xff] }
 0x231   : > { %4852 = vmatprep.subr.msk.bf16.mxu1 %vm7345_vm11, %v4850_v41  ;;  %v5205_v49 = vunpack.i.h.bf16 %v5203_v1  ;;  %v5204_v33 = vunpack.i.l.bf16 %v5203_v1 }
 0x233   : > { %v5218_v7 = vpop.permute.xlu0 %5217  ;;  %v3204_v60 = vsel %vm3176_vm7, %v8569_v52, %v5205_v49  ;;  %v3203_v54 = vsel %vm3176_vm7, %v8570_v36, %v5204_v33 }
 0x234   : > { %v5208_v26 = vpop.permute.xlu1 %5207  ;;  %v5220_v10 = vunpack.i.h.bf16 %v5218_v7  ;;  %v5219_v37 = vunpack.i.l.bf16 %v5218_v7 }
 0x235   : > { %v5210_v46 = vunpack.i.h.bf16 %v5208_v26  ;;  %v5209_v59 = vunpack.i.l.bf16 %v5208_v26 }
 0x237   : > { %v5223_v6 = vpop.permute.xlu0 %5222  ;;  %v3256_v3 = vsel %vm3229_vm8, %v3203_v54, %v5209_v59  ;;  %v3257_v25 = vsel %vm3229_vm8, %v3204_v60, %v5210_v46 }
 0x238   : > { %4855 = vmatpush3.bf16.xpose.msk.msra.mxu1 %vm7345_vm11, %v4850_v41  ;;  %v5213_v12 = vpop.permute.xlu1 %5212  ;;  %v5225_v23 = vunpack.i.h.bf16 %v5223_v6  ;;  %v5224_v56 = vunpack.i.l.bf16 %v5223_v6 }
 0x239   : > { %4696 = vmatprep.subr.msk.mxu1 %vm3388_vm6, %v3361_v24  ;;  %v5215_v42 = vunpack.i.h.bf16 %v5213_v12  ;;  %v5214_v61 = vunpack.i.l.bf16 %v5213_v12  ;;  %v5442_v12 = vld [vmem:[%s8324_s3] sm:$0xff] }
 0x23a   : > { %v3206_v45 = vsel %vm3176_vm7, %v8571_v40, %v5225_v23  ;;  %v3205_v38 = vsel %vm3176_vm7, %v8572_v28, %v5224_v56 }
 0x23b   : > { %v3309_v43 = vsel %vm3282_vm9, %v3256_v3, %v5214_v61  ;;  %v3310_v34 = vsel %vm3282_vm9, %v3257_v25, %v5215_v42  ;;  %v5228_v13 = vpop.permute.xlu0 %5227 }
 0x23c   : > { %v8025_v18 = vpop.permute.xlu1 %5332  ;;  %v3362_v31 = vsel %vm3335_vm10, %v3309_v43, %v5219_v37  ;;  %v3363_v9 = vsel %vm3335_vm10, %v3310_v34, %v5220_v10  ;;  %v5230_v39 = vunpack.i.h.bf16 %v5228_v13  ;;  %v5229_v29 = vunpack.i.l.bf16 %v5228_v13  ;;  %v8573_v13 = vld [vmem:[#allocation36_spill] sm:$0xff] }
 0x23d   : > { %v4856_v19 = vpack.c.bf16 %v3363_v9, %v3362_v31  ;;  %v8574_v9 = vld [vmem:[#allocation37_spill] sm:$0xff] }
 0x23e   : > { %v3258_v11 = vsel %vm3229_vm8, %v3205_v38, %v5229_v29  ;;  %v3259_v51 = vsel %vm3229_vm8, %v3206_v45, %v5230_v39 }
 0x23f   : > { %4858 = vmatprep.subr.msk.bf16.mxu0 %vm7345_vm11, %v4856_v19  ;;  %v5233_v57 = vpop.permute.xlu0 %5232 }
 0x240   : > { %4697 = vmatpush3.xpose.msk.msra.mxu1 %vm3388_vm6, %v3361_v24  ;;  %v8032_v20 = vpop.permute.xlu1 %5337  ;;  %4861 = vmatpush3.bf16.xpose.msk.msra.mxu0 %vm7345_vm11, %v4856_v19  ;;  %v5235_v58 = vunpack.i.h.bf16 %v5233_v57  ;;  %v5234_v41 = vunpack.i.l.bf16 %v5233_v57 }
 0x242   : > { %v3311_v33 = vsel %vm3282_vm9, %v3258_v11, %v5234_v41  ;;  %v3312_v46 = vsel %vm3282_vm9, %v3259_v51, %v5235_v58 }
 0x243   : > { %4699 = vmatmul.mubr.msk.f32.vlgmr.msra.gmra.mrb[56].mxu1 %vm3388_vm6, %v7794_v27  ;;  %v5238_v1 = vpop.permute.xlu0 %5237 }
 0x244   : > { %4701 = vmatprep.mubr.msk.f32.mxu1 %vm3388_vm6, %v7806_v4  ;;  %v5240_v7 = vunpack.i.h.bf16 %v5238_v1  ;;  %v5239_v26 = vunpack.i.l.bf16 %v5238_v1  ;;  %v5343_v49 = vpop.permute.xlu1 %5342 }
 0x246   : > { %v3364_v59 = vsel %vm3335_vm10, %v3311_v33, %v5239_v26  ;;  %v3365_v24 = vsel %vm3335_vm10, %v3312_v46, %v5240_v7  ;;  %v5344_v26 = vunpack.i.l.bf16 %v5343_v49  ;;  %v5345_v46 = vunpack.i.h.bf16 %v5343_v49 }
 0x247   : > { %4702 = vmatmul.mubr.msk.f32.gmra.mrb[58].mxu1 %vm3388_vm6, %v7829_v32  ;;  %v4862_v6 = vpack.c.bf16 %v3365_v24, %v3364_v59  ;;  %v5243_v52 = vpop.permute.xlu0 %5242  ;;  %v5339_v49 = vunpack.i.l.bf16 %v8032_v20 }
 0x248   : > { %4762 = vmatprep.mubr.msk.f32.mxu1 %vm3388_vm6, %v5442_v12  ;;  %v5348_v60 = vpop.permute.xlu1 %5347  ;;  %v5245_v42 = vunpack.i.h.bf16 %v5243_v52  ;;  %v5244_v61 = vunpack.i.l.bf16 %v5243_v52 }
 0x249   : > { %4864 = vmatprep.subr.msk.bf16.mxu0 %vm7345_vm11, %v4862_v6  ;;  %v5349_v59 = vunpack.i.l.bf16 %v5348_v60  ;;  %v5350_v12 = vunpack.i.h.bf16 %v5348_v60 }
 0x24a   : > { %4867 = vmatpush3.bf16.xpose.msk.msra.mxu0 %vm7345_vm11, %v4862_v6  ;;  %v3208_v31 = vsel %vm3176_vm7, %v8573_v13, %v5245_v42  ;;  %v3207_v19 = vsel %vm3176_vm7, %v8574_v9, %v5244_v61  ;;  %v5335_v42 = vunpack.i.h.bf16 %v8025_v18  ;;  %v5334_v61 = vunpack.i.l.bf16 %v8025_v18 }
 0x24b   : > { %v5248_v36 = vpop.permute.xlu0 %5247 }
 0x24c   : > { %v5250_v37 = vunpack.i.h.bf16 %v5248_v36  ;;  %v5249_v3 = vunpack.i.l.bf16 %v5248_v36 }
 0x24d   : > { %v5353_v54 = vpop.permute.xlu1 %5352 }
 0x24e   : > { %v3260_v56 = vsel %vm3229_vm8, %v3207_v19, %v5249_v3  ;;  %v3261_v57 = vsel %vm3229_vm8, %v3208_v31, %v5250_v37  ;;  %v5354_v6 = vunpack.i.l.bf16 %v5353_v54  ;;  %v5355_v52 = vunpack.i.h.bf16 %v5353_v54 }
 0x250   : > { %v5253_v10 = vpop.permute.xlu0 %5252 }
 0x251   : > { %v5358_v25 = vpop.permute.xlu1 %5357  ;;  %v5255_v43 = vunpack.i.h.bf16 %v5253_v10  ;;  %v5254_v34 = vunpack.i.l.bf16 %v5253_v10  ;;  %v3218_v10 = vsel %vm3176_vm7, %v8531_v2, %v5344_v26 }
 0x252   : > { %v5359_v36 = vunpack.i.l.bf16 %v5358_v25  ;;  %v5360_v37 = vunpack.i.h.bf16 %v5358_v25  ;;  %v3271_v60 = vsel %vm3229_vm8, %v3218_v10, %v5349_v59 }
 0x253   : > { %v3313_v41 = vsel %vm3282_vm9, %v3260_v56, %v5254_v34  ;;  %v3314_v40 = vsel %vm3282_vm9, %v3261_v57, %v5255_v43  ;;  %v5340_v43 = vunpack.i.h.bf16 %v8032_v20  ;;  %v8575_v34 = vld [vmem:[#allocation45_spill] sm:$0xff]  ;;  %v3324_v18 = vsel %vm3282_vm9, %v3271_v60, %v5354_v6 }
 0x254   : > { %v5258_v23 = vpop.permute.xlu0 %5257  ;;  %v3219_v13 = vsel %vm3176_vm7, %v8575_v34, %v5345_v46  ;;  %v3377_v25 = vsel %vm3335_vm10, %v3324_v18, %v5359_v36 }
 0x255   : > { %v5260_v39 = vunpack.i.h.bf16 %v5258_v23  ;;  %v5259_v29 = vunpack.i.l.bf16 %v5258_v23  ;;  %v8066_v58 = vpop.permute.xlu1 %5362  ;;  %v3272_v31 = vsel %vm3229_vm8, %v3219_v13, %v5350_v12 }
 0x256   : > { %v3325_v2 = vsel %vm3282_vm9, %v3272_v31, %v5355_v52  ;;  %v5365_v57 = vunpack.i.h.bf16 %v8066_v58 }
 0x257   : > { %v3366_v45 = vsel %vm3335_vm10, %v3313_v41, %v5259_v29  ;;  %v3367_v28 = vsel %vm3335_vm10, %v3314_v40, %v5260_v39  ;;  %v3378_v20 = vsel %vm3335_vm10, %v3325_v2, %v5360_v37  ;;  %v5364_v40 = vunpack.i.l.bf16 %v8066_v58 }
 0x258   : > { %v4868_v38 = vpack.c.bf16 %v3367_v28, %v3366_v45  ;;  %v5263_v1 = vpop.permute.xlu0 %5262  ;;  %v4898_v2 = vpack.c.bf16 %v3378_v20, %v3377_v25 }
 0x259   : > { %v8072_v11 = vpop.permute.xlu1 %5367  ;;  %v5265_v23 = vunpack.i.h.bf16 %v5263_v1  ;;  %v5264_v56 = vunpack.i.l.bf16 %v5263_v1 }
 0x25a   : > { %4870 = vmatprep.subr.msk.bf16.mxu0 %vm7345_vm11, %v4868_v38  ;;  %v5370_v45 = vunpack.i.h.bf16 %v8072_v11  ;;  %v5369_v13 = vunpack.i.l.bf16 %v8072_v11 }
 0x25b   : > { %4873 = vmatpush3.bf16.xpose.msk.msra.mxu0 %vm7345_vm11, %v4868_v38  ;;  %v3209_v58 = vsel %vm3176_vm7, %v6866_v47, %v5264_v56  ;;  %v3221_v56 = vsel %vm3176_vm7, %v7035_v17, %v5365_v57 }
 0x25c   : > { %v5268_v51 = vpop.permute.xlu0 %5267  ;;  %v3274_v20 = vsel %vm3229_vm8, %v3221_v56, %v5370_v45 }
 0x25d   : > { %v8078_v7 = vpop.permute.xlu1 %5372  ;;  %v5270_v39 = vunpack.i.h.bf16 %v5268_v51  ;;  %v5269_v29 = vunpack.i.l.bf16 %v5268_v51  ;;  %v3210_v51 = vsel %vm3176_vm7, %v6864_v55, %v5265_v23 }
 0x25f   : > { %v3262_v36 = vsel %vm3229_vm8, %v3209_v58, %v5269_v29 }
 0x260   : > { %v5273_v33 = vpop.permute.xlu0 %5272 }
 0x261   : > { %v8080_v24 = vpop.permute.xlu1 %5377  ;;  %v5275_v46 = vunpack.i.h.bf16 %v5273_v33  ;;  %v5274_v59 = vunpack.i.l.bf16 %v5273_v33  ;;  %v3263_v33 = vsel %vm3229_vm8, %v3210_v51, %v5270_v39 }
 0x263   : > { %v3315_v60 = vsel %vm3282_vm9, %v3262_v36, %v5274_v59  ;;  %v3316_v31 = vsel %vm3282_vm9, %v3263_v33, %v5275_v46 }
 0x264   : > { %v5278_v3 = vpop.permute.xlu0 %5277 }
 0x265   : > { %v8091_v54 = vpop.permute.xlu1 %5382  ;;  %v5280_v9 = vunpack.i.h.bf16 %v5278_v3  ;;  %v5279_v19 = vunpack.i.l.bf16 %v5278_v3 }
 0x267   : > { %v3217_v1 = vsel %vm3176_vm7, %v6957_v8, %v5280_v9  ;;  %v3216_v12 = vsel %vm3176_vm7, %v6971_v50, %v5279_v19  ;;  %v5375_v9 = vunpack.i.h.bf16 %v8078_v7 }
 0x268   : > { %v5283_v41 = vpop.permute.xlu0 %5282 }
 0x269   : > { %v5285_v28 = vunpack.i.h.bf16 %v5283_v41  ;;  %v5284_v38 = vunpack.i.l.bf16 %v5283_v41  ;;  %v8101_v26 = vpop.permute.xlu1 %5387  ;;  %v3327_v17 = vsel %vm3282_vm9, %v3274_v20, %v5375_v9  ;;  %v5385_v41 = vunpack.i.h.bf16 %v8091_v54 }
 0x26b   : > { %v3269_v6 = vsel %vm3229_vm8, %v3216_v12, %v5284_v38  ;;  %v3270_v52 = vsel %vm3229_vm8, %v3217_v1, %v5285_v28  ;;  %v5390_v28 = vunpack.i.h.bf16 %v8101_v26  ;;  %v5389_v38 = vunpack.i.l.bf16 %v8101_v26 }
 0x26c   : > { %v3322_v10 = vsel %vm3282_vm9, %v3269_v6, %v5334_v61  ;;  %v3323_v8 = vsel %vm3282_vm9, %v3270_v52, %v5335_v42  ;;  %v5288_v37 = vpop.permute.xlu0 %5287  ;;  %v5374_v61 = vunpack.i.l.bf16 %v8078_v7  ;;  %v3220_v7 = vsel %vm3176_vm7, %v7064_v5, %v5364_v40 }
 0x26d   : > { %v5290_v50 = vunpack.i.h.bf16 %v5288_v37  ;;  %v5289_v3 = vunpack.i.l.bf16 %v5288_v37  ;;  %v5393_v34 = vpop.permute.xlu1 %5392  ;;  %v3375_v55 = vsel %vm3335_vm10, %v3322_v10, %v5339_v49  ;;  %v3376_v47 = vsel %vm3335_vm10, %v3323_v8, %v5340_v43 }
 0x26e   : > { %v4892_v18 = vpack.c.bf16 %v3376_v47, %v3375_v55  ;;  %v5380_v49 = vunpack.i.h.bf16 %v8080_v24  ;;  %v5379_v43 = vunpack.i.l.bf16 %v8080_v24  ;;  %v3273_v25 = vsel %vm3229_vm8, %v3220_v7, %v5369_v13 }
 0x26f   : > { %v3369_v42 = vsel %vm3335_vm10, %v3316_v31, %v5290_v50  ;;  %v3368_v19 = vsel %vm3335_vm10, %v3315_v60, %v5289_v3  ;;  %v3326_v24 = vsel %vm3282_vm9, %v3273_v25, %v5374_v61  ;;  %v5384_v40 = vunpack.i.l.bf16 %v8091_v54 }
 0x270   : > { %v4874_v23 = vpack.c.bf16 %v3369_v42, %v3368_v19  ;;  %v5293_v11 = vpop.permute.xlu0 %5292  ;;  %4894 = vmatprep.subr.msk.bf16.mxu1 %vm7345_vm11, %v4892_v18  ;;  %v3379_v5 = vsel %vm3335_vm10, %v3326_v24, %v5379_v43  ;;  %v3380_v57 = vsel %vm3335_vm10, %v3327_v17, %v5380_v49  ;;  %v5395_v59 = vunpack.i.h.bf16 %v5393_v34 }
 0x271   : > { %v5398_v39 = vpop.permute.xlu1 %5397  ;;  %4897 = vmatpush3.bf16.xpose.msk.msra.mxu1 %vm7345_vm11, %v4892_v18  ;;  %v4904_v46 = vpack.c.bf16 %v3380_v57, %v3379_v5  ;;  %v5394_v1 = vunpack.i.l.bf16 %v5393_v34  ;;  %v5295_v12 = vunpack.i.h.bf16 %v5293_v11  ;;  %v5294_v51 = vunpack.i.l.bf16 %v5293_v11 }
 0x272   : > { %4876 = vmatprep.subr.msk.bf16.mxu0 %vm7345_vm11, %v4874_v23  ;;  %4900 = vmatprep.subr.msk.bf16.mxu1 %vm7345_vm11, %v4898_v2  ;;  %v5400_v58 = vunpack.i.h.bf16 %v5398_v39  ;;  %v5399_v6 = vunpack.i.l.bf16 %v5398_v39  ;;  %v3223_v36 = vsel %vm3176_vm7, %v7273_v0, %v5385_v41  ;;  %v3222_v33 = vsel %vm3176_vm7, %v7206_v53, %v5384_v40 }
 0x273   : > { %4879 = vmatpush3.bf16.xpose.msk.msra.mxu0 %vm7345_vm11, %v4874_v23  ;;  %v3275_v26 = vsel %vm3229_vm8, %v3222_v33, %v5389_v38  ;;  %v3276_v8 = vsel %vm3229_vm8, %v3223_v36, %v5390_v28  ;;  %v3212_v53 = vsel %vm3176_vm7, %v8541_v14, %v5295_v12  ;;  %v3211_v55 = vsel %vm3176_vm7, %v6878_v35, %v5294_v51 }
 0x274   : > { %v5298_v29 = vpop.permute.xlu0 %5297  ;;  %v3328_v0 = vsel %vm3282_vm9, %v3275_v26, %v5394_v1  ;;  %v3329_v34 = vsel %vm3282_vm9, %v3276_v8, %v5395_v59 }
 0x275   : > { %v5403_v45 = vpop.permute.xlu1 %5402  ;;  %v5300_v54 = vunpack.i.h.bf16 %v5298_v29  ;;  %v5299_v10 = vunpack.i.l.bf16 %v5298_v29  ;;  %v3381_v47 = vsel %vm3335_vm10, %v3328_v0, %v5399_v6  ;;  %v3382_v13 = vsel %vm3335_vm10, %v3329_v34, %v5400_v58 }
 0x276   : > { %v5405_v42 = vunpack.i.h.bf16 %v5403_v45  ;;  %v5404_v19 = vunpack.i.l.bf16 %v5403_v45  ;;  %v4910_v56 = vpack.c.bf16 %v3382_v13, %v3381_v47 }
 0x277   : > { %v3264_v31 = vsel %vm3229_vm8, %v3211_v55, %v5299_v10  ;;  %v3265_v18 = vsel %vm3229_vm8, %v3212_v53, %v5300_v54 }
 0x278   : > { %v5303_v52 = vpop.permute.xlu0 %5302  ;;  %v3225_v24 = vsel %vm3176_vm7, %v7315_v48, %v5405_v42  ;;  %v3224_v17 = vsel %vm3176_vm7, %v7317_v16, %v5404_v19 }
 0x279   : > { %4903 = vmatpush3.bf16.xpose.msk.msra.mxu1 %vm7345_vm11, %v4898_v2  ;;  %v5305_v37 = vunpack.i.h.bf16 %v5303_v52  ;;  %v5304_v50 = vunpack.i.l.bf16 %v5303_v52  ;;  %v5408_v3 = vpop.permute.xlu1 %5407 }
 0x27a   : > { %4906 = vmatprep.subr.msk.bf16.mxu1 %vm7345_vm11, %v4904_v46  ;;  %v5410_v43 = vunpack.i.h.bf16 %v5408_v3  ;;  %v5409_v35 = vunpack.i.l.bf16 %v5408_v3 }
 0x27b   : > { %v3317_v2 = vsel %vm3282_vm9, %v3264_v31, %v5304_v50  ;;  %v3318_v14 = vsel %vm3282_vm9, %v3265_v18, %v5305_v37 }
 0x27c   : > { %v5308_v60 = vpop.permute.xlu0 %5307  ;;  %v3277_v57 = vsel %vm3229_vm8, %v3224_v17, %v5409_v35  ;;  %v3278_v29 = vsel %vm3229_vm8, %v3225_v24, %v5410_v43 }
 0x27d   : > { %v5310_v9 = vunpack.i.h.bf16 %v5308_v60  ;;  %v5309_v61 = vunpack.i.l.bf16 %v5308_v60  ;;  %v5413_v49 = vpop.permute.xlu1 %5412 }
 0x27e   : > { %v5415_v39 = vunpack.i.h.bf16 %v5413_v49  ;;  %v5414_v25 = vunpack.i.l.bf16 %v5413_v49 }
 0x27f   : > { %v3370_v23 = vsel %vm3335_vm10, %v3317_v2, %v5309_v61  ;;  %v3371_v11 = vsel %vm3335_vm10, %v3318_v14, %v5310_v9 }
 0x280   : > { %v4880_v7 = vpack.c.bf16 %v3371_v11, %v3370_v23  ;;  %v5313_v20 = vpop.permute.xlu0 %5312  ;;  %v3330_v48 = vsel %vm3282_vm9, %v3277_v57, %v5414_v25  ;;  %v3331_v16 = vsel %vm3282_vm9, %v3278_v29, %v5415_v39 }
 0x281   : > { %4909 = vmatpush3.bf16.xpose.msk.msra.mxu1 %vm7345_vm11, %v4904_v46  ;;  %v5418_v5 = vpop.permute.xlu1 %5417  ;;  %v5315_v59 = vunpack.i.h.bf16 %v5313_v20  ;;  %v5314_v1 = vunpack.i.l.bf16 %v5313_v20 }
 0x282   : > { %4882 = vmatprep.subr.msk.bf16.mxu0 %vm7345_vm11, %v4880_v7  ;;  %4912 = vmatprep.subr.msk.bf16.mxu1 %vm7345_vm11, %v4910_v56  ;;  %v5420_v41 = vunpack.i.h.bf16 %v5418_v5  ;;  %v5419_v40 = vunpack.i.l.bf16 %v5418_v5 }
 0x283   : > { %4885 = vmatpush3.bf16.xpose.msk.msra.mxu0 %vm7345_vm11, %v4880_v7  ;;  %v3214_v54 = vsel %vm3176_vm7, %v7673_v21, %v5315_v59  ;;  %v3213_v10 = vsel %vm3176_vm7, %v8544_v62, %v5314_v1 }
 0x284   : > { %v5318_v45 = vpop.permute.xlu0 %5317  ;;  %v3383_v28 = vsel %vm3335_vm10, %v3330_v48, %v5419_v40  ;;  %v3384_v38 = vsel %vm3335_vm10, %v3331_v16, %v5420_v41 }
 0x285   : > { %v5423_v46 = vpop.permute.xlu1 %5422  ;;  %v4916_v12 = vpack.c.bf16 %v3384_v38, %v3383_v28  ;;  %v5320_v58 = vunpack.i.h.bf16 %v5318_v45  ;;  %v5319_v6 = vunpack.i.l.bf16 %v5318_v45  ;;  %v8576_v45 = vld [vmem:[#allocation48_spill] sm:$0xff] }
 0x286   : > { %v5425_v0 = vunpack.i.h.bf16 %v5423_v46  ;;  %v5424_v34 = vunpack.i.l.bf16 %v5423_v46 }
 0x287   : > { %v3266_v8 = vsel %vm3229_vm8, %v3213_v10, %v5319_v6  ;;  %v3267_v37 = vsel %vm3229_vm8, %v3214_v54, %v5320_v58  ;;  %v8579_v6 = vld [vmem:[#allocation47_spill] sm:$0xff] }
 0x288   : > { %v5323_v51 = vpop.permute.xlu0 %5322  ;;  %v3227_v42 = vsel %vm3176_vm7, %v7685_v22, %v5425_v0  ;;  %v3226_v19 = vsel %vm3176_vm7, %v7649_v63, %v5424_v34 }
 0x289   : > { %4915 = vmatpush3.bf16.xpose.msk.msra.mxu1 %vm7345_vm11, %v4910_v56  ;;  %v5325_v52 = vunpack.i.h.bf16 %v5323_v51  ;;  %v5324_v36 = vunpack.i.l.bf16 %v5323_v51  ;;  %v5428_v33 = vpop.permute.xlu1 %5427 }
 0x28a   : > { %4918 = vmatprep.subr.msk.bf16.mxu1 %vm7345_vm11, %v4916_v12  ;;  %v5430_v13 = vunpack.i.h.bf16 %v5428_v33  ;;  %v5429_v60 = vunpack.i.l.bf16 %v5428_v33 }
 0x28b   : > { %v3319_v53 = vsel %vm3282_vm9, %v3266_v8, %v5324_v36  ;;  %v3320_v55 = vsel %vm3282_vm9, %v3267_v37, %v5325_v52 }
 0x28c   : > { %v3279_v14 = vsel %vm3229_vm8, %v3226_v19, %v5429_v60  ;;  %v3280_v49 = vsel %vm3229_vm8, %v3227_v42, %v5430_v13 }
 0x28d   : > { %v5328_v26 = vpop.permute.xlu0 %5327 }
 0x28e   : > { %v5330_v50 = vunpack.i.h.bf16 %v5328_v26  ;;  %v5329_v3 = vunpack.i.l.bf16 %v5328_v26  ;;  %v5433_v47 = vpop.permute.xlu1 %5432 }
 0x28f   : > { %v5435_v18 = vunpack.i.h.bf16 %v5433_v47  ;;  %v5434_v9 = vunpack.i.l.bf16 %v5433_v47 }
 0x290   : > { %v3372_v21 = vsel %vm3335_vm10, %v3319_v53, %v5329_v3  ;;  %v3373_v62 = vsel %vm3335_vm10, %v3320_v55, %v5330_v50 }
 0x291   : > { %v4886_v31 = vpack.c.bf16 %v3373_v62, %v3372_v21  ;;  %v2302_v61 = vpop.permute.xlu0 %2301  ;;  %4921 = vmatpush3.bf16.xpose.msk.msra.mxu1 %vm7345_vm11, %v4916_v12  ;;  %v3332_v23 = vsel %vm3282_vm9, %v3279_v14, %v5434_v9  ;;  %v3333_v22 = vsel %vm3282_vm9, %v3280_v49, %v5435_v18  ;;  %v8578_v12 = vld [vmem:[#allocation49_spill] sm:$0xff] }
 0x292   : > { %v5438_v2 = vpop.permute.xlu1 %5437  ;;  %v3215_v20 = vsel %vm3176_vm7, %v7682_v30, %v2302_v61 }
 0x293   : > { %4888 = vmatprep.subr.msk.bf16.mxu0 %vm7345_vm11, %v4886_v31  ;;  %v5440_v43 = vunpack.i.h.bf16 %v5438_v2  ;;  %v5439_v35 = vunpack.i.l.bf16 %v5438_v2 }
 0x294   : > { %4891 = vmatpush3.bf16.xpose.msk.msra.mxu0 %vm7345_vm11, %v4886_v31 }
 0x295   : > { %v2567_v11 = vpop.permute.xlu0 %2566  ;;  %v3385_v63 = vsel %vm3335_vm10, %v3332_v23, %v5439_v35  ;;  %v3386_v56 = vsel %vm3335_vm10, %v3333_v22, %v5440_v43 }
 0x296   : > { %v4922_v7 = vpack.c.bf16 %v3386_v56, %v3385_v63  ;;  %v2328_v39 = vpop.permute.xlu1 %2327  ;;  %v3268_v17 = vsel %vm3229_vm8, %v3215_v20, %v2567_v11 }
 0x297   : > { %v3228_v44 = vsel %vm3176_vm7, %v7733_v15, %v2328_v39  ;;  %v5443_v15 = vld [vmem:[%s8324_s3 + $0x8] sm:$0xff] }
 0x298   : > { %4924 = vmatprep.subr.msk.bf16.mxu1 %vm7345_vm11, %v4922_v7 }
 0x299   : > { %v2832_v25 = vpop.permute.xlu0 %2831  ;;  %4927 = vmatpush3.bf16.xpose.msk.msra.mxu1 %vm7345_vm11, %v4922_v7 }
 0x29a   : > { %v2593_v24 = vpop.permute.xlu1 %2592  ;;  %v3321_v5 = vsel %vm3282_vm9, %v3268_v17, %v2832_v25 }
 0x29b   : > { %v3281_v40 = vsel %vm3229_vm8, %v3228_v44, %v2593_v24 }
 0x29d   : > { %v3097_v57 = vpop.permute.xlu0 %3096 }
 0x29e   : > { %v3374_v29 = vsel %vm3335_vm10, %v3321_v5, %v3097_v57  ;;  %v2858_v41 = vpop.permute.xlu1 %2857 }
 0x29f   : > { %4728 = vmatprep.subr.msk.mxu0 %vm3388_vm6, %v3374_v29  ;;  %v3334_v30 = vsel %vm3282_vm9, %v3281_v40, %v2858_v41 }
 0x2a0   : > { %4729 = vmatpush3.xpose.msk.msra.mxu0 %vm3388_vm6, %v3374_v29 }
 0x2a2   : > { %v3123_v48 = vpop.permute.xlu1 %3122 }
 0x2a3   : > { %4731 = vmatmul.mubr.msk.f32.vlgmr.msra.gmra.mrb[60].mxu0 %vm3388_vm6, %v7794_v27  ;;  %v3387_v16 = vsel %vm3335_vm10, %v3334_v30, %v3123_v48 }
 0x2a4   : > { %4733 = vmatprep.mubr.msk.f32.mxu0 %vm3388_vm6, %v7806_v4  ;;  %4760 = vmatprep.subr.msk.mxu1 %vm3388_vm6, %v3387_v16 }
 0x2a5   : > { %4761 = vmatpush3.xpose.msk.msra.mxu1 %vm3388_vm6, %v3387_v16 }
 0x2a7   : > { %4734 = vmatmul.mubr.msk.f32.gmra.mrb[62].mxu0 %vm3388_vm6, %v7829_v32 }
 0x2a8   : > { %4763 = vmatmul.mubr.msk.f32.vlgmr.msra.gmra.mrb[60].mxu1 %vm3388_vm6, %v5443_v15 }
 0x2a9   : > { %4765 = vmatprep.mubr.msk.f32.mxu1 %vm3388_vm6, %v7806_v4  ;;  %v8577_v4 = vld [vmem:[#allocation35_spill] sm:$0xff] }
 0x2ac   : > { %4766 = vmatmul.mubr.msk.f32.gmra.mrb[62].mxu1 %vm3388_vm6, %v7829_v32 }
 0x2d8   : > { %v4668_v27 = vpop.f32.mrb[56].mxu0 }
 0x2d9   : > { %v3512_v28 = vadd.f32 %v4668_v27, %v8576_v45  ;;  %v3506_v38 = vpop.f32.mrb[57].mxu0 }
 0x2da   : > { %v3507_v32 = vadd.f32 %v3506_v38, %v8577_v4 }
 0x2db   : > { %v3526_v46 = vmax.f32 %v3512_v28, 0.0 }
 0x2dc   : > { %v3525_v59 = vmax.f32 %v3507_v32, 0.0  ;;  %v4671_v1 = vpop.f32.mrb[58].mxu0 }
 0x2dd   : > { %3531 = vst.msk [vmem:[%s8262_s13 + $0x8] sm:$0xff] %vm3529_vm12, %v3526_v46  ;;  %v3522_v51 = vadd.f32 %v4671_v1, %v8578_v12  ;;  %v3516_v58 = vpop.f32.mrb[59].mxu0 }
 0x2de   : > { %3530 = vst.msk [vmem:[%s8262_s13] sm:$0xff] %vm3529_vm12, %v3525_v59  ;;  %v3517_v52 = vadd.f32 %v3516_v58, %v8579_v6 }
 0x2df   : > { %v3528_v36 = vmax.f32 %v3522_v51, 0.0 }
 0x2e0   : > { %v3527_v33 = vmax.f32 %v3517_v52, 0.0 }
 0x2e1   : > { %3534 = vst.msk [vmem:[%s8262_s13 + $0x18] sm:$0xf] %vm3533_vm13, %v3528_v36 }
 0x2e2   : > { %3532 = vst.msk [vmem:[%s8262_s13 + $0x10] sm:$0xff] %vm3529_vm12, %v3527_v33 }
 0x316   : > { %v4700_v54 = vpop.f32.mrb[56].mxu1 }
 0x317   : > { %v3646_v10 = vadd.f32 %v4700_v54, %v8576_v45  ;;  %v3640_v26 = vpop.f32.mrb[57].mxu1 }
 0x318   : > { %v3641_v8 = vadd.f32 %v3640_v26, %v8577_v4 }
 0x319   : > { %v3660_v37 = vmax.f32 %v3646_v10, 0.0 }
 0x31a   : > { %v3659_v50 = vmax.f32 %v3641_v8, 0.0  ;;  %v4703_v3 = vpop.f32.mrb[58].mxu1 }
 0x31b   : > { %4213 = vst.msk [vmem:[%s8262_s13 + $0x28] sm:$0xff] %vm3529_vm12, %v3660_v37  ;;  %v3656_v0 = vadd.f32 %v4703_v3, %v8578_v12  ;;  %v3650_v34 = vpop.f32.mrb[59].mxu1 }
 0x31c   : > { %4212 = vst.msk [vmem:[%s8262_s13 + $0x20] sm:$0xff] %vm3529_vm12, %v3659_v50  ;;  %v3651_v53 = vadd.f32 %v3650_v34, %v8579_v6 }
 0x31d   : > { %v3662_v55 = vmax.f32 %v3656_v0, 0.0 }
 0x31e   : > { %v3661_v47 = vmax.f32 %v3651_v53, 0.0 }
 0x31f   : > { %4215 = vst.msk [vmem:[%s8262_s13 + $0x38] sm:$0xf] %vm3533_vm13, %v3662_v55 }
 0x320   : > { %4214 = vst.msk [vmem:[%s8262_s13 + $0x30] sm:$0xff] %vm3529_vm12, %v3661_v47 }
 0x376   : > { %v4732_v13 = vpop.f32.mrb[60].mxu0 }
 0x377   : > { %v3779_v60 = vadd.f32 %v4732_v13, %v8576_v45  ;;  %v3773_v21 = vpop.f32.mrb[61].mxu0 }
 0x378   : > { %v3774_v62 = vadd.f32 %v3773_v21, %v8577_v4 }
 0x379   : > { %v3793_v31 = vmax.f32 %v3779_v60, 0.0 }
 0x37a   : > { %v3792_v18 = vmax.f32 %v3774_v62, 0.0  ;;  %v4735_v9 = vpop.f32.mrb[62].mxu0 }
 0x37b   : > { %4234 = vst.msk [vmem:[%s8262_s13 + $0x48] sm:$0xff] %vm3529_vm12, %v3793_v31  ;;  %v3789_v61 = vadd.f32 %v4735_v9, %v8578_v12  ;;  %v3783_v42 = vpop.f32.mrb[63].mxu0  ;;  %v4764_v19 = vpop.f32.mrb[60].mxu1 }
 0x37c   : > { %4233 = vst.msk [vmem:[%s8262_s13 + $0x40] sm:$0xff] %vm3529_vm12, %v3792_v18  ;;  %v3784_v2 = vadd.f32 %v3783_v42, %v8579_v6  ;;  %v3912_v49 = vadd.f32 %v4764_v19, %v8576_v45  ;;  %v3906_v43 = vpop.f32.mrb[61].mxu1 }
 0x37d   : > { %v3795_v14 = vmax.f32 %v3789_v61, 0.0  ;;  %v3907_v23 = vadd.f32 %v3906_v43, %v8577_v4 }
 0x37e   : > { %v3794_v35 = vmax.f32 %v3784_v2, 0.0  ;;  %v3926_v22 = vmax.f32 %v3912_v49, 0.0 }
 0x37f   : > { %4236 = vst.msk [vmem:[%s8262_s13 + $0x58] sm:$0xf] %vm3533_vm13, %v3795_v14  ;;  %v3925_v11 = vmax.f32 %v3907_v23, 0.0  ;;  %v4767_v63 = vpop.f32.mrb[62].mxu1 }
 0x380   : > { %4235 = vst.msk [vmem:[%s8262_s13 + $0x50] sm:$0xff] %vm3529_vm12, %v3794_v35  ;;  %4255 = vst.msk [vmem:[%s8262_s13 + $0x68] sm:$0xff] %vm3529_vm12, %v3926_v22  ;;  %v3922_v56 = vadd.f32 %v4767_v63, %v8578_v12  ;;  %v3916_v7 = vpop.f32.mrb[63].mxu1 }
 0x381   : > { %4254 = vst.msk [vmem:[%s8262_s13 + $0x60] sm:$0xff] %vm3529_vm12, %v3925_v11  ;;  %v3917_v39 = vadd.f32 %v3916_v7, %v8579_v6 }
 0x382   : > { %v3928_v25 = vmax.f32 %v3922_v56, 0.0 }
 0x383   : > { %v3927_v20 = vmax.f32 %v3917_v39, 0.0 }
 0x384   : > { %4257 = vst.msk [vmem:[%s8262_s13 + $0x78] sm:$0xf] %vm3533_vm13, %v3928_v25 }
 0x385   : > { %4256 = vst.msk [vmem:[%s8262_s13 + $0x70] sm:$0xff] %vm3529_vm12, %v3927_v20 }
 0x386 PF: > { %p12_p9 = scmp.ge.s32.totalorder %s5520_s22, 4   ;;  %s8580_s18 = smov %s5462_s19 }
 0x387   : > { %s8581_s19 = smov %s5529_s25  ;;  %s8582_s20 = smov %s5520_s22 }
 0x388   :  { %14 = sbr.rel (!%p12_p9) target bundleno = 2 (0x2), region = 117 }

</bundles_post_ra>
